<compile_context>
chip_gen: v7x
topology: tpu7x:2x2x1
jax: 0.10.0
libtpu: 0.0.40
codegen_flags: <defaults>
</compile_context>

<pallas_src>
import functools

import jax
import jax.numpy as jnp
from jax.experimental import pallas as pl
from jax.experimental.pallas import tpu as pltpu

# ----------------------- scaled-down HuBERT-like config -----------------------
CONV_DIM = (16, 16, 16)        # (512,)*7 in chinese-hubert-base
CONV_KERNEL = (10, 3, 2)       # (10,3,3,3,3,2,2) in the real model
CONV_STRIDE = (5, 2, 2)        # (5,2,2,2,2,2,2)
HIDDEN = 32                    # 768
NUM_HEADS = 4                  # 12
FFN = 64                       # 3072
NUM_LAYERS = 2                 # 12
POS_CONV_K = 8                 # 128
POS_CONV_GROUPS = 2            # 16
EPS = 1e-5
N_MOUTH = 52                   # Model2Config.n_lumi_mouth_channels
N_EYE = 14                     # Model2Config.n_lumi_eye_channels
HEAD_PAD = 128                 # mouth+eye (66) padded to a lane-dense store width
NEG_BIAS = -1e9                # large finite (safer than finfo.min for softmax)
N_PHASE = 4                    # conv1.stride * conv2.stride


# ------------------------------ in-kernel helpers ------------------------------
def _ln(x, g, b, eps):
    # LayerNorm over the last (lane) axis; x (R, C), g/b (1, C)
    mu = jnp.mean(x, axis=-1, keepdims=True)
    var = jnp.mean((x - mu) ** 2, axis=-1, keepdims=True)
    return (x - mu) * jax.lax.rsqrt(var + eps) * g + b


def _ln_t(x, g, b, eps):
    # LayerNorm over the channel (sublane) axis; x (C, S), g/b (C, 1)
    mu = jnp.mean(x, axis=0, keepdims=True)
    var = jnp.mean((x - mu) ** 2, axis=0, keepdims=True)
    return (x - mu) * jax.lax.rsqrt(var + eps) * g + b


# ------------------------------- fused kernel ---------------------------------
def _model2_kernel(frames0_ref, mask_col_ref,
                   conv0_w_ref, gn_g_ref, gn_b_ref, conv1_w_ref, conv2_w_ref,
                   fp_ln_g_ref, fp_ln_b_ref, fp_w_ref, fp_b_ref,
                   pos_w_ref, pos_b_ref, enc_ln_g_ref, enc_ln_b_ref,
                   qkv_wt_ref, qkv_bt_ref, o_wt_ref, o_bt_ref,
                   ln1_g_ref, ln1_b_ref, ff1_wt_ref, ff1_bt_ref,
                   ff2_wt_ref, ff2_bt_ref, ln2_g_ref, ln2_b_ref,
                   head_w_ref, head_b_ref,
                   last_ref, head_ref, h_sc,
                   *, num_heads, eps, t0_valid):
    l = pl.program_id(1)
    n_layers = pl.num_programs(1)
    C, S = h_sc.shape
    Dh = C // num_heads
    bf16 = jnp.bfloat16

    # additive key mask over the key (sublane) axis: (S, 1)
    key_bias = (1.0 - mask_col_ref[...]) * NEG_BIAS

    # ---------------- prologue (layer 0): conv stack + projection + pos-conv ----------------
    @pl.when(l == 0)
    def _prologue():
        # conv0 (K=10, stride=5) as 4 stride-phase matmuls; phase p holds output steps t==p (mod 4)
        w0 = conv0_w_ref[...]
        n_phase = frames0_ref.shape[0]
        y0 = [jnp.dot(frames0_ref[p], w0, preferred_element_type=jnp.float32)
              for p in range(n_phase)]                          # each (T0p, C0); pad rows are zero
        tot = y0[0]
        sq = y0[0] * y0[0]
        for y in y0[1:]:
            tot = tot + y
            sq = sq + y * y
        # GroupNorm(num_groups == num_channels): per-channel stats over the (valid) time steps
        mu = jnp.sum(tot, axis=0, keepdims=True) / t0_valid
        ex2 = jnp.sum(sq, axis=0, keepdims=True) / t0_valid
        inv = jax.lax.rsqrt(ex2 - mu * mu + eps)
        y0 = [jax.nn.gelu((y - mu) * inv * gn_g_ref[...] + gn_b_ref[...], approximate=True)
              for y in y0]
        # conv1 (K=3, stride=2) + GELU, produced directly in even/odd output phases (no strides)
        y1e = (jnp.dot(y0[0][:S], conv1_w_ref[0], preferred_element_type=jnp.float32)
               + jnp.dot(y0[1][:S], conv1_w_ref[1], preferred_element_type=jnp.float32)
               + jnp.dot(y0[2][:S], conv1_w_ref[2], preferred_element_type=jnp.float32))
        y1o = (jnp.dot(y0[2][:S], conv1_w_ref[0], preferred_element_type=jnp.float32)
               + jnp.dot(y0[3][:S], conv1_w_ref[1], preferred_element_type=jnp.float32)
               + jnp.dot(y0[0][1:S + 1], conv1_w_ref[2], preferred_element_type=jnp.float32))
        y1e = jax.nn.gelu(y1e, approximate=True)
        y1o = jax.nn.gelu(y1o, approximate=True)
        # conv2 (K=2, stride=2) + GELU -> feature extractor output (S, Cf)
        x = jax.nn.gelu(
            jnp.dot(y1e, conv2_w_ref[0], preferred_element_type=jnp.float32)
            + jnp.dot(y1o, conv2_w_ref[1], preferred_element_type=jnp.float32),
            approximate=True)

        # feature projection: LayerNorm + Linear, then zero padded positions
        xln = _ln(x, fp_ln_g_ref[...], fp_ln_b_ref[...], eps)
        h = jnp.dot(xln.astype(bf16), fp_w_ref[...],
                    preferred_element_type=jnp.float32) + fp_b_ref[...]
        h = h * mask_col_ref[...]                               # (S, C)

        # positional conv embedding: grouped conv as 8 per-tap block-diagonal matmuls + GELU
        pad = pos_w_ref.shape[0] // 2
        zpad = jnp.zeros((pad, C), jnp.float32)
        hpad = jnp.concatenate([zpad, h, zpad], axis=0)         # (S + 2*pad, C); SamePad trims tail
        pc = jnp.zeros((S, C), jnp.float32)
        for k in range(pos_w_ref.shape[0]):
            pc = pc + jnp.dot(hpad[k:k + S].astype(bf16), pos_w_ref[k],
                              preferred_element_type=jnp.float32)
        pc = jax.nn.gelu(pc + pos_b_ref[...], approximate=True)
        h = _ln(h + pc, enc_ln_g_ref[...], enc_ln_b_ref[...], eps)
        h_sc[...] = h.T                                         # carry transposed (C, S) in VMEM

    # ---------------- transformer encoder layer l (channels-on-sublanes layout) ----------------
    hT = h_sc[...]                                              # (C, S)
    qkvT = jnp.dot(qkv_wt_ref[...], hT.astype(bf16),
                   preferred_element_type=jnp.float32) + qkv_bt_ref[...]     # (3C, S)

    heads = []
    for hd in range(num_heads):
        qh = qkvT[hd * Dh:(hd + 1) * Dh, :]                     # (Dh, S) — sublane slice
        kh = qkvT[C + hd * Dh:C + (hd + 1) * Dh, :]
        vh = qkvT[2 * C + hd * Dh:2 * C + (hd + 1) * Dh, :]
        # scores with keys on sublanes / queries on lanes: (S_k, S_q); scale folded into weights
        s = jnp.dot(kh.T.astype(bf16), qh.astype(bf16),
                    preferred_element_type=jnp.float32)
        s = s + key_bias
        m = jnp.max(s, axis=0, keepdims=True)
        p = jnp.exp(s - m)
        p = p / jnp.sum(p, axis=0, keepdims=True)               # exact divide (parity w/ softmax)
        heads.append(jnp.dot(vh.astype(bf16), p.astype(bf16),
                             preferred_element_type=jnp.float32))  # (Dh, S_q)
    oT = jnp.concatenate(heads, axis=0)                          # (C, S) — sublane concat
    attnT = jnp.dot(o_wt_ref[...], oT.astype(bf16),
                    preferred_element_type=jnp.float32) + o_bt_ref[...]      # single depth-C matmul

    h1T = _ln_t(hT + attnT, ln1_g_ref[...], ln1_b_ref[...], eps)
    ffT = jnp.dot(ff1_wt_ref[...], h1T.astype(bf16),
                  preferred_element_type=jnp.float32) + ff1_bt_ref[...]
    ffT = jax.nn.gelu(ffT, approximate=True)
    ffT = jnp.dot(ff2_wt_ref[...], ffT.astype(bf16),
                  preferred_element_type=jnp.float32) + ff2_bt_ref[...]
    outT = _ln_t(h1T + ffT, ln2_g_ref[...], ln2_b_ref[...], eps)
    h_sc[...] = outT

    # ---------------- epilogue (last layer): last_hidden + lane-dense merged heads ----------------
    @pl.when(l == n_layers - 1)
    def _epilogue():
        hout = outT.T                                            # (S, C)
        last_ref[...] = hout
        head_ref[...] = jnp.dot(hout.astype(bf16), head_w_ref[...],
                                preferred_element_type=jnp.float32) + head_b_ref[...]


# ------------------------------ model wrapper (JAX glue) ------------------------------
def model2_forward(params, audios, attention_mask):
    """Model2.forward: HubertModel(input_values, attention_mask) -> (last_hidden, padded heads)."""
    B, T = audios.shape
    K0, K1, K2 = CONV_KERNEL
    s0, s1, s2 = CONV_STRIDE
    assert (K0, K1, K2) == (10, 3, 2) and (s0, s1, s2) == (5, 2, 2)   # kernel hardcodes this shape
    T0 = (T - K0) // s0 + 1
    T1 = (T0 - K1) // s1 + 1
    S = (T1 - K2) // s2 + 1
    T0p = -(-T0 // N_PHASE)
    # bounds required by the in-kernel phase decomposition of the conv stack
    assert S + 1 <= T0p and 4 * S <= T0 - 1 and (T0 - 4) // 4 + 1 >= S

    # conv0 im2col, split into the 4 stride-phases consumed by the fused kernel (~1x audio bytes)
    taps = [audios[:, k:k + (T0 - 1) * s0 + 1:s0] for k in range(K0)]
    frames0 = jnp.stack(taps, axis=-1).astype(jnp.float32)             # (B, T0, K0)
    frames0 = jnp.pad(frames0, ((0, 0), (0, N_PHASE * T0p - T0), (0, 0)))
    frames0 = frames0.reshape(B, T0p, N_PHASE, K0).transpose(0, 2, 1, 3)  # (B, 4, T0p, K0)

    # _get_feat_extract_output_lengths + feature-level padding mask
    lengths = jnp.sum(attention_mask, axis=-1).astype(jnp.int32)
    for k, s in zip(CONV_KERNEL, CONV_STRIDE):
        lengths = (lengths - k) // s + 1
    feat_mask = (jnp.arange(S)[None, :] < lengths[:, None]).astype(jnp.float32)
    mask_col = feat_mask[:, :, None]                                    # (B, S, 1)

    C = HIDDEN
    kern = functools.partial(_model2_kernel, num_heads=NUM_HEADS, eps=EPS, t0_valid=T0)

    def cspec(shape):                       # shared weights, loaded once
        n = len(shape)
        return pl.BlockSpec(shape, lambda b, l: (0,) * n)

    def lspec(shape):                       # per-layer stacked weights, indexed by the layer axis
        return pl.BlockSpec((None,) + shape, lambda b, l: (l, 0, 0))

    def bspec(shape):                       # per-batch tensors
        n = len(shape)
        return pl.BlockSpec((None,) + shape, lambda b, l: (b,) + (0,) * n)

    in_specs = [
        bspec((N_PHASE, T0p, K0)),          # frames0
        bspec((S, 1)),                      # mask_col
        cspec((K0, CONV_DIM[0])),           # conv0_w
        cspec((1, CONV_DIM[0])),            # gn_g
        cspec((1, CONV_DIM[0])),            # gn_b
        cspec((K1, CONV_DIM[0], CONV_DIM[1])),   # conv1_w
        cspec((K2, CONV_DIM[1], CONV_DIM[2])),   # conv2_w
        cspec((1, CONV_DIM[2])),            # fp_ln_g
        cspec((1, CONV_DIM[2])),            # fp_ln_b
        cspec((CONV_DIM[2], C)),            # fp_w
        cspec((1, C)),                      # fp_b
        cspec((POS_CONV_K, C, C)),          # pos_conv_w
        cspec((1, C)),                      # pos_conv_b
        cspec((1, C)),                      # enc_ln_g
        cspec((1, C)),                      # enc_ln_b
        lspec((3 * C, C)),                  # qkv_wt
        lspec((3 * C, 1)),                  # qkv_bt
        lspec((C, C)),                      # o_wt
        lspec((C, 1)),                      # o_bt
        lspec((C, 1)),                      # ln1_g
        lspec((C, 1)),                      # ln1_b
        lspec((FFN, C)),                    # ff1_wt
        lspec((FFN, 1)),                    # ff1_bt
        lspec((C, FFN)),                    # ff2_wt
        lspec((C, 1)),                      # ff2_bt
        lspec((C, 1)),                      # ln2_g
        lspec((C, 1)),                      # ln2_b
        cspec((C, HEAD_PAD)),               # head_w (padded lane-dense)
        cspec((1, HEAD_PAD)),               # head_b
    ]

    last_hidden, head_out = pl.pallas_call(
        kern,
        out_shape=(jax.ShapeDtypeStruct((B, S, C), jnp.float32),
                   jax.ShapeDtypeStruct((B, S, HEAD_PAD), jnp.float32)),
        grid=(B, NUM_LAYERS),
        in_specs=in_specs,
        out_specs=(bspec((S, C)), bspec((S, HEAD_PAD))),
        scratch_shapes=[pltpu.VMEM((C, S), jnp.float32)],
        compiler_params=pltpu.CompilerParams(
            dimension_semantics=("parallel", "arbitrary")),
    )(frames0, mask_col,
      params["conv0_w"], params["gn_g"], params["gn_b"],
      params["conv1_w"], params["conv2_w"],
      params["fp_ln_g"], params["fp_ln_b"], params["fp_w"], params["fp_b"],
      params["pos_conv_w"], params["pos_conv_b"],
      params["enc_ln_g"], params["enc_ln_b"],
      params["qkv_wt"], params["qkv_bt"], params["o_wt"], params["o_bt"],
      params["ln1_g"], params["ln1_b"],
      params["ff1_wt"], params["ff1_bt"], params["ff2_wt"], params["ff2_bt"],
      params["ln2_g"], params["ln2_b"],
      params["head_w"], params["head_b"])
    return last_hidden, head_out


def apply_heads(head_out):
    # mouth_head / eye_head are fused into the kernel epilogue (128-wide padded); slice them here.
    return head_out[..., :N_MOUTH], head_out[..., N_MOUTH:N_MOUTH + N_EYE]


# ------------------------------- parameter init -------------------------------
def init_params(key):
    keys = iter(jax.random.split(key, 128))
    nrm = lambda shape, s=0.02: s * jax.random.normal(next(keys), shape, jnp.float32)
    zeros = lambda shape: jnp.zeros(shape, jnp.float32)
    ones = lambda shape: jnp.ones(shape, jnp.float32)
    p = {}
    cin = 1
    for i, (cout, k) in enumerate(zip(CONV_DIM, CONV_KERNEL)):
        p[f"conv{i}_w"] = nrm((cout, cin, k), 0.1)           # PyTorch (Cout, Cin, K), bias-free
        cin = cout
    p["gn_g"], p["gn_b"] = ones((CONV_DIM[0],)), zeros((CONV_DIM[0],))
    p["fp_ln_g"], p["fp_ln_b"] = ones((CONV_DIM[-1],)), zeros((CONV_DIM[-1],))
    p["fp_w"], p["fp_b"] = nrm((CONV_DIM[-1], HIDDEN)), zeros((HIDDEN,))
    p["pos_conv_w"] = nrm((HIDDEN, HIDDEN // POS_CONV_GROUPS, POS_CONV_K), 0.05)
    p["pos_conv_b"] = zeros((HIDDEN,))
    p["enc_ln_g"], p["enc_ln_b"] = ones((HIDDEN,)), zeros((HIDDEN,))
    for l in range(NUM_LAYERS):
        pre = f"layer{l}_"
        for nm in ("q", "k", "v", "o"):
            p[pre + nm + "_w"] = nrm((HIDDEN, HIDDEN))
            p[pre + nm + "_b"] = zeros((HIDDEN,))
        p[pre + "ln1_g"], p[pre + "ln1_b"] = ones((HIDDEN,)), zeros((HIDDEN,))
        p[pre + "ff1_w"], p[pre + "ff1_b"] = nrm((HIDDEN, FFN)), zeros((FFN,))
        p[pre + "ff2_w"], p[pre + "ff2_b"] = nrm((FFN, HIDDEN)), zeros((HIDDEN,))
        p[pre + "ln2_g"], p[pre + "ln2_b"] = ones((HIDDEN,)), zeros((HIDDEN,))
    p["mouth_w"], p["mouth_b"] = nrm((HIDDEN, N_MOUTH)), zeros((N_MOUTH,))
    p["eye_w"], p["eye_b"] = nrm((HIDDEN, N_EYE)), zeros((N_EYE,))
    return p


def prepare_params(p):
    """One-time re-layout outside the traced forward: MXU-friendly transposed (out,in) bf16
    matmul weights, merged+scaled QKV, per-tap block-diagonal grouped pos-conv, per-layer stacks
    with a leading L axis, and mouth/eye heads merged + padded to a lane-dense 128-wide output."""
    row = lambda v: jnp.asarray(v, jnp.float32).reshape(1, -1)
    col = lambda v: jnp.asarray(v, jnp.float32).reshape(-1, 1)
    bf = lambda v: jnp.asarray(v, jnp.bfloat16)
    pp = {}
    # conv0: (Cout, 1, K) -> (K, Cout) matmul weight (kept f32 — tiny, preserves audio precision)
    pp["conv0_w"] = jnp.transpose(p["conv0_w"], (2, 1, 0)).reshape(CONV_KERNEL[0], CONV_DIM[0])
    pp["gn_g"], pp["gn_b"] = row(p["gn_g"]), row(p["gn_b"])
    # conv1/conv2: per-tap (K, Cin, Cout)
    for i in (1, 2):
        pp[f"conv{i}_w"] = jnp.transpose(p[f"conv{i}_w"], (2, 1, 0))
    pp["fp_ln_g"], pp["fp_ln_b"] = row(p["fp_ln_g"]), row(p["fp_ln_b"])
    pp["fp_w"], pp["fp_b"] = bf(p["fp_w"]), row(p["fp_b"])
    # grouped pos-conv -> per-tap block-diagonal (K, C, C)
    C, G, K = HIDDEN, POS_CONV_GROUPS, POS_CONV_K
    Cg = C // G
    w = p["pos_conv_w"]                                      # (C_out, Cg_in, K)
    Wt = jnp.zeros((K, C, C), jnp.float32)
    for g in range(G):
        for k in range(K):
            blk = w[g * Cg:(g + 1) * Cg, :, k].T             # (Cg_in, Cg_out)
            Wt = Wt.at[k, g * Cg:(g + 1) * Cg, g * Cg:(g + 1) * Cg].set(blk)
    pp["pos_conv_w"], pp["pos_conv_b"] = bf(Wt), row(p["pos_conv_b"])
    pp["enc_ln_g"], pp["enc_ln_b"] = row(p["enc_ln_g"]), row(p["enc_ln_b"])
    # per-layer stacks (leading L axis), transposed to (out, in) for the (C, S) hidden layout;
    # attention scale folded into the Q rows.
    scale = (HIDDEN // NUM_HEADS) ** -0.5
    qw, qb, ow, ob = [], [], [], []
    l1g, l1b, f1w, f1b, f2w, f2b, l2g, l2b = [], [], [], [], [], [], [], []
    for l in range(NUM_LAYERS):
        pre = f"layer{l}_"
        qw.append(jnp.concatenate([p[pre + "q_w"].T * scale,
                                   p[pre + "k_w"].T, p[pre + "v_w"].T], axis=0))      # (3C, C)
        qb.append(jnp.concatenate([p[pre + "q_b"] * scale,
                                   p[pre + "k_b"], p[pre + "v_b"]], axis=0).reshape(-1, 1))
        ow.append(p[pre + "o_w"].T); ob.append(col(p[pre + "o_b"]))
        l1g.append(col(p[pre + "ln1_g"])); l1b.append(col(p[pre + "ln1_b"]))
        f1w.append(p[pre + "ff1_w"].T); f1b.append(col(p[pre + "ff1_b"]))
        f2w.append(p[pre + "ff2_w"].T); f2b.append(col(p[pre + "ff2_b"]))
        l2g.append(col(p[pre + "ln2_g"])); l2b.append(col(p[pre + "ln2_b"]))
    pp["qkv_wt"], pp["qkv_bt"] = bf(jnp.stack(qw)), jnp.stack(qb)
    pp["o_wt"], pp["o_bt"] = bf(jnp.stack(ow)), jnp.stack(ob)
    pp["ln1_g"], pp["ln1_b"] = jnp.stack(l1g), jnp.stack(l1b)
    pp["ff1_wt"], pp["ff1_bt"] = bf(jnp.stack(f1w)), jnp.stack(f1b)
    pp["ff2_wt"], pp["ff2_bt"] = bf(jnp.stack(f2w)), jnp.stack(f2b)
    pp["ln2_g"], pp["ln2_b"] = jnp.stack(l2g), jnp.stack(l2b)
    # merged mouth/eye heads, zero-padded to a lane-dense 128-wide output
    hw = jnp.concatenate([p["mouth_w"], p["eye_w"]], axis=1)      # (C, 66)
    hb = jnp.concatenate([p["mouth_b"], p["eye_b"]], axis=0)      # (66,)
    pp["head_w"] = bf(jnp.pad(hw, ((0, 0), (0, HEAD_PAD - hw.shape[1]))))
    pp["head_b"] = row(jnp.pad(hb, (0, HEAD_PAD - hb.shape[0])))
    return pp


# ------------------------------------ main ------------------------------------
if __name__ == "__main__":
    key = jax.random.PRNGKey(0)
    pkey, akey = jax.random.split(key)
    params = prepare_params(init_params(pkey))

    B, T = 2, 800                                            # small raw-audio batch
    audios = jax.random.normal(akey, (B, T), jnp.float32)
    valid_lens = jnp.array([800, 600], jnp.int32)
    padding_mask = (jnp.arange(T)[None, :] < valid_lens[:, None]).astype(jnp.float32)

    fwd = jax.jit(model2_forward)
    last_hidden, head_out = jax.block_until_ready(fwd(params, audios, padding_mask))
    mouth_pred, eye_pred = apply_heads(head_out)

    S_expected = T
    for k, s in zip(CONV_KERNEL, CONV_STRIDE):
        S_expected = (S_expected - k) // s + 1
    assert last_hidden.shape == (B, S_expected, HIDDEN), last_hidden.shape
    assert head_out.shape == (B, S_expected, HEAD_PAD), head_out.shape
    assert mouth_pred.shape == (B, S_expected, N_MOUTH)
    assert eye_pred.shape == (B, S_expected, N_EYE)
    assert bool(jnp.all(jnp.isfinite(last_hidden)))
    assert bool(jnp.all(jnp.isfinite(mouth_pred))) and bool(jnp.all(jnp.isfinite(eye_pred)))

    print("KERNEL_OK")
</pallas_src>

<mosaic_0001>
module attributes {stable_mosaic.version = 11 : i64} {
  func.func @_model2_kernel(%arg0: i32, %arg1: i32, %arg2: memref<1x4x40x10xf32, #tpu.memory_space<vmem>>, %arg3: memref<1x39x1xf32, #tpu.memory_space<vmem>>, %arg4: memref<10x16xf32, #tpu.memory_space<vmem>>, %arg5: memref<1x16xf32, #tpu.memory_space<vmem>>, %arg6: memref<1x16xf32, #tpu.memory_space<vmem>>, %arg7: memref<3x16x16xf32, #tpu.memory_space<vmem>>, %arg8: memref<2x16x16xf32, #tpu.memory_space<vmem>>, %arg9: memref<1x16xf32, #tpu.memory_space<vmem>>, %arg10: memref<1x16xf32, #tpu.memory_space<vmem>>, %arg11: memref<16x32xbf16, #tpu.memory_space<vmem>>, %arg12: memref<1x32xf32, #tpu.memory_space<vmem>>, %arg13: memref<8x32x32xbf16, #tpu.memory_space<vmem>>, %arg14: memref<1x32xf32, #tpu.memory_space<vmem>>, %arg15: memref<1x32xf32, #tpu.memory_space<vmem>>, %arg16: memref<1x32xf32, #tpu.memory_space<vmem>>, %arg17: memref<1x96x32xbf16, #tpu.memory_space<vmem>>, %arg18: memref<1x96x1xf32, #tpu.memory_space<vmem>>, %arg19: memref<1x32x32xbf16, #tpu.memory_space<vmem>>, %arg20: memref<1x32x1xf32, #tpu.memory_space<vmem>>, %arg21: memref<1x32x1xf32, #tpu.memory_space<vmem>>, %arg22: memref<1x32x1xf32, #tpu.memory_space<vmem>>, %arg23: memref<1x64x32xbf16, #tpu.memory_space<vmem>>, %arg24: memref<1x64x1xf32, #tpu.memory_space<vmem>>, %arg25: memref<1x32x64xbf16, #tpu.memory_space<vmem>>, %arg26: memref<1x32x1xf32, #tpu.memory_space<vmem>>, %arg27: memref<1x32x1xf32, #tpu.memory_space<vmem>>, %arg28: memref<1x32x1xf32, #tpu.memory_space<vmem>>, %arg29: memref<32x128xbf16, #tpu.memory_space<vmem>>, %arg30: memref<1x128xf32, #tpu.memory_space<vmem>>, %arg31: memref<1x39x32xf32, #tpu.memory_space<vmem>>, %arg32: memref<1x39x128xf32, #tpu.memory_space<vmem>>, %arg33: memref<32x39xf32, #tpu.memory_space<vmem>>) attributes {dimension_semantics = [#tpu.dimension_semantics<parallel>, #tpu.dimension_semantics<arbitrary>], iteration_bounds = array<i64: 2, 2>, scalar_prefetch = 0 : i64, scratch_operands = 1 : i64, tpu.core_type = #tpu.core_type<tc>, window_params = [{transform_indices = @transform_0, window_bounds = array<i64: 1, 4, 40, 10>}, {transform_indices = @transform_1, window_bounds = array<i64: 1, 39, 1>}, {pipeline_mode = #tpu.pipeline_mode<synchronous>, transform_indices = @transform_2, window_bounds = array<i64: 10, 16>}, {pipeline_mode = #tpu.pipeline_mode<synchronous>, transform_indices = @transform_3, window_bounds = array<i64: 1, 16>}, {pipeline_mode = #tpu.pipeline_mode<synchronous>, transform_indices = @transform_4, window_bounds = array<i64: 1, 16>}, {pipeline_mode = #tpu.pipeline_mode<synchronous>, transform_indices = @transform_5, window_bounds = array<i64: 3, 16, 16>}, {pipeline_mode = #tpu.pipeline_mode<synchronous>, transform_indices = @transform_6, window_bounds = array<i64: 2, 16, 16>}, {pipeline_mode = #tpu.pipeline_mode<synchronous>, transform_indices = @transform_7, window_bounds = array<i64: 1, 16>}, {pipeline_mode = #tpu.pipeline_mode<synchronous>, transform_indices = @transform_8, window_bounds = array<i64: 1, 16>}, {pipeline_mode = #tpu.pipeline_mode<synchronous>, transform_indices = @transform_9, window_bounds = array<i64: 16, 32>}, {pipeline_mode = #tpu.pipeline_mode<synchronous>, transform_indices = @transform_10, window_bounds = array<i64: 1, 32>}, {pipeline_mode = #tpu.pipeline_mode<synchronous>, transform_indices = @transform_11, window_bounds = array<i64: 8, 32, 32>}, {pipeline_mode = #tpu.pipeline_mode<synchronous>, transform_indices = @transform_12, window_bounds = array<i64: 1, 32>}, {pipeline_mode = #tpu.pipeline_mode<synchronous>, transform_indices = @transform_13, window_bounds = array<i64: 1, 32>}, {pipeline_mode = #tpu.pipeline_mode<synchronous>, transform_indices = @transform_14, window_bounds = array<i64: 1, 32>}, {transform_indices = @transform_15, window_bounds = array<i64: 1, 96, 32>}, {transform_indices = @transform_16, window_bounds = array<i64: 1, 96, 1>}, {transform_indices = @transform_17, window_bounds = array<i64: 1, 32, 32>}, {transform_indices = @transform_18, window_bounds = array<i64: 1, 32, 1>}, {transform_indices = @transform_19, window_bounds = array<i64: 1, 32, 1>}, {transform_indices = @transform_20, window_bounds = array<i64: 1, 32, 1>}, {transform_indices = @transform_21, window_bounds = array<i64: 1, 64, 32>}, {transform_indices = @transform_22, window_bounds = array<i64: 1, 64, 1>}, {transform_indices = @transform_23, window_bounds = array<i64: 1, 32, 64>}, {transform_indices = @transform_24, window_bounds = array<i64: 1, 32, 1>}, {transform_indices = @transform_25, window_bounds = array<i64: 1, 32, 1>}, {transform_indices = @transform_26, window_bounds = array<i64: 1, 32, 1>}, {pipeline_mode = #tpu.pipeline_mode<synchronous>, transform_indices = @transform_27, window_bounds = array<i64: 32, 128>}, {pipeline_mode = #tpu.pipeline_mode<synchronous>, transform_indices = @transform_28, window_bounds = array<i64: 1, 128>}, {transform_indices = @transform_29, window_bounds = array<i64: 1, 39, 32>}, {transform_indices = @transform_30, window_bounds = array<i64: 1, 39, 128>}]} {
    %c0 = arith.constant 0 : index
    %c0_0 = arith.constant 0 : index
    %c0_1 = arith.constant 0 : index
    %0 = vector.load %arg3[%c0, %c0_0, %c0_1] : memref<1x39x1xf32, #tpu.memory_space<vmem>>, vector<1x39x1xf32>
    %1 = vector.shape_cast %0 : vector<1x39x1xf32> to vector<39x1xf32>
    %cst = arith.constant 1.000000e+00 : f32
    %2 = vector.broadcast %cst : f32 to vector<39x1xf32>
    %3 = arith.subf %2, %1 : vector<39x1xf32>
    %cst_2 = arith.constant -1.000000e+09 : f32
    %4 = vector.broadcast %cst_2 : f32 to vector<39x1xf32>
    %5 = arith.mulf %3, %4 : vector<39x1xf32>
    %c0_i32 = arith.constant 0 : i32
    %6 = arith.cmpi eq, %arg1, %c0_i32 : i32
    %7 = arith.extui %6 : i1 to i32
    %c0_i32_3 = arith.constant 0 : i32
    %8 = arith.cmpi ne, %7, %c0_i32_3 : i32
    scf.if %8 {
      %c0_79 = arith.constant 0 : index
      %c0_80 = arith.constant 0 : index
      %198 = vector.load %arg4[%c0_79, %c0_80] : memref<10x16xf32, #tpu.memory_space<vmem>>, vector<10x16xf32>
      %c0_81 = arith.constant 0 : index
      %c0_82 = arith.constant 0 : index
      %c0_83 = arith.constant 0 : index
      %c0_84 = arith.constant 0 : index
      %199 = vector.load %arg2[%c0_81, %c0_82, %c0_83, %c0_84] : memref<1x4x40x10xf32, #tpu.memory_space<vmem>>, vector<1x1x40x10xf32>
      %200 = vector.shape_cast %199 : vector<1x1x40x10xf32> to vector<40x10xf32>
      %cst_85 = arith.constant dense<0.000000e+00> : vector<40x16xf32>
      %201 = tpu.matmul %200, %198, %cst_85 {dimension_numbers = #tpu.dot_dimension_numbers<[1], [0], [0], [1], [0, 0, 1, 1], [], []>} : vector<40x10xf32>, vector<10x16xf32>, vector<40x16xf32> -> vector<40x16xf32>
      %c0_86 = arith.constant 0 : index
      %c1 = arith.constant 1 : index
      %c0_87 = arith.constant 0 : index
      %c0_88 = arith.constant 0 : index
      %202 = vector.load %arg2[%c0_86, %c1, %c0_87, %c0_88] : memref<1x4x40x10xf32, #tpu.memory_space<vmem>>, vector<1x1x40x10xf32>
      %203 = vector.shape_cast %202 : vector<1x1x40x10xf32> to vector<40x10xf32>
      %cst_89 = arith.constant dense<0.000000e+00> : vector<40x16xf32>
      %204 = tpu.matmul %203, %198, %cst_89 {dimension_numbers = #tpu.dot_dimension_numbers<[1], [0], [0], [1], [0, 0, 1, 1], [], []>} : vector<40x10xf32>, vector<10x16xf32>, vector<40x16xf32> -> vector<40x16xf32>
      %c0_90 = arith.constant 0 : index
      %c2 = arith.constant 2 : index
      %c0_91 = arith.constant 0 : index
      %c0_92 = arith.constant 0 : index
      %205 = vector.load %arg2[%c0_90, %c2, %c0_91, %c0_92] : memref<1x4x40x10xf32, #tpu.memory_space<vmem>>, vector<1x1x40x10xf32>
      %206 = vector.shape_cast %205 : vector<1x1x40x10xf32> to vector<40x10xf32>
      %cst_93 = arith.constant dense<0.000000e+00> : vector<40x16xf32>
      %207 = tpu.matmul %206, %198, %cst_93 {dimension_numbers = #tpu.dot_dimension_numbers<[1], [0], [0], [1], [0, 0, 1, 1], [], []>} : vector<40x10xf32>, vector<10x16xf32>, vector<40x16xf32> -> vector<40x16xf32>
      %c0_94 = arith.constant 0 : index
      %c3 = arith.constant 3 : index
      %c0_95 = arith.constant 0 : index
      %c0_96 = arith.constant 0 : index
      %208 = vector.load %arg2[%c0_94, %c3, %c0_95, %c0_96] : memref<1x4x40x10xf32, #tpu.memory_space<vmem>>, vector<1x1x40x10xf32>
      %209 = vector.shape_cast %208 : vector<1x1x40x10xf32> to vector<40x10xf32>
      %cst_97 = arith.constant dense<0.000000e+00> : vector<40x16xf32>
      %210 = tpu.matmul %209, %198, %cst_97 {dimension_numbers = #tpu.dot_dimension_numbers<[1], [0], [0], [1], [0, 0, 1, 1], [], []>} : vector<40x10xf32>, vector<10x16xf32>, vector<40x16xf32> -> vector<40x16xf32>
      %211 = arith.mulf %201, %201 : vector<40x16xf32>
      %212 = arith.addf %201, %204 : vector<40x16xf32>
      %213 = arith.mulf %204, %204 : vector<40x16xf32>
      %214 = arith.addf %211, %213 : vector<40x16xf32>
      %215 = arith.addf %212, %207 : vector<40x16xf32>
      %216 = arith.mulf %207, %207 : vector<40x16xf32>
      %217 = arith.addf %214, %216 : vector<40x16xf32>
      %218 = arith.addf %215, %210 : vector<40x16xf32>
      %219 = arith.mulf %210, %210 : vector<40x16xf32>
      %220 = arith.addf %217, %219 : vector<40x16xf32>
      %cst_98 = arith.constant dense<0.000000e+00> : vector<16xf32>
      %221 = vector.multi_reduction <add>, %218, %cst_98 [0] : vector<40x16xf32> to vector<16xf32>
      %222 = vector.shape_cast %221 : vector<16xf32> to vector<1x16xf32>
      %cst_99 = arith.constant 1.590000e+02 : f32
      %223 = vector.broadcast %cst_99 : f32 to vector<1x16xf32>
      %224 = arith.divf %222, %223 : vector<1x16xf32>
      %cst_100 = arith.constant dense<0.000000e+00> : vector<16xf32>
      %225 = vector.multi_reduction <add>, %220, %cst_100 [0] : vector<40x16xf32> to vector<16xf32>
      %226 = vector.shape_cast %225 : vector<16xf32> to vector<1x16xf32>
      %cst_101 = arith.constant 1.590000e+02 : f32
      %227 = vector.broadcast %cst_101 : f32 to vector<1x16xf32>
      %228 = arith.divf %226, %227 : vector<1x16xf32>
      %229 = arith.mulf %224, %224 : vector<1x16xf32>
      %230 = arith.subf %228, %229 : vector<1x16xf32>
      %cst_102 = arith.constant 9.99999974E-6 : f32
      %231 = vector.broadcast %cst_102 : f32 to vector<1x16xf32>
      %232 = arith.addf %230, %231 : vector<1x16xf32>
      %233 = math.rsqrt %232 : vector<1x16xf32>
      %234 = vector.broadcast %224 : vector<1x16xf32> to vector<40x16xf32>
      %235 = arith.subf %201, %234 : vector<40x16xf32>
      %236 = vector.broadcast %233 : vector<1x16xf32> to vector<40x16xf32>
      %237 = arith.mulf %235, %236 : vector<40x16xf32>
      %c0_103 = arith.constant 0 : index
      %c0_104 = arith.constant 0 : index
      %238 = vector.load %arg5[%c0_103, %c0_104] : memref<1x16xf32, #tpu.memory_space<vmem>>, vector<1x16xf32>
      %239 = vector.broadcast %238 : vector<1x16xf32> to vector<40x16xf32>
      %240 = arith.mulf %237, %239 : vector<40x16xf32>
      %c0_105 = arith.constant 0 : index
      %c0_106 = arith.constant 0 : index
      %241 = vector.load %arg6[%c0_105, %c0_106] : memref<1x16xf32, #tpu.memory_space<vmem>>, vector<1x16xf32>
      %242 = vector.broadcast %241 : vector<1x16xf32> to vector<40x16xf32>
      %243 = arith.addf %240, %242 : vector<40x16xf32>
      %244 = arith.mulf %243, %243 : vector<40x16xf32>
      %245 = arith.mulf %243, %244 : vector<40x16xf32>
      %cst_107 = arith.constant 4.471500e-02 : f32
      %246 = vector.broadcast %cst_107 : f32 to vector<40x16xf32>
      %247 = arith.mulf %246, %245 : vector<40x16xf32>
      %248 = arith.addf %243, %247 : vector<40x16xf32>
      %cst_108 = arith.constant 0.797884583 : f32
      %249 = vector.broadcast %cst_108 : f32 to vector<40x16xf32>
      %250 = arith.mulf %249, %248 : vector<40x16xf32>
      %251 = math.tanh %250 : vector<40x16xf32>
      %cst_109 = arith.constant 1.000000e+00 : f32
      %252 = vector.broadcast %cst_109 : f32 to vector<40x16xf32>
      %253 = arith.addf %252, %251 : vector<40x16xf32>
      %cst_110 = arith.constant 5.000000e-01 : f32
      %254 = vector.broadcast %cst_110 : f32 to vector<40x16xf32>
      %255 = arith.mulf %254, %253 : vector<40x16xf32>
      %256 = arith.mulf %243, %255 : vector<40x16xf32>
      %257 = vector.broadcast %224 : vector<1x16xf32> to vector<40x16xf32>
      %258 = arith.subf %204, %257 : vector<40x16xf32>
      %259 = vector.broadcast %233 : vector<1x16xf32> to vector<40x16xf32>
      %260 = arith.mulf %258, %259 : vector<40x16xf32>
      %c0_111 = arith.constant 0 : index
      %c0_112 = arith.constant 0 : index
      %261 = vector.load %arg5[%c0_111, %c0_112] : memref<1x16xf32, #tpu.memory_space<vmem>>, vector<1x16xf32>
      %262 = vector.broadcast %261 : vector<1x16xf32> to vector<40x16xf32>
      %263 = arith.mulf %260, %262 : vector<40x16xf32>
      %c0_113 = arith.constant 0 : index
      %c0_114 = arith.constant 0 : index
      %264 = vector.load %arg6[%c0_113, %c0_114] : memref<1x16xf32, #tpu.memory_space<vmem>>, vector<1x16xf32>
      %265 = vector.broadcast %264 : vector<1x16xf32> to vector<40x16xf32>
      %266 = arith.addf %263, %265 : vector<40x16xf32>
      %267 = arith.mulf %266, %266 : vector<40x16xf32>
      %268 = arith.mulf %266, %267 : vector<40x16xf32>
      %cst_115 = arith.constant 4.471500e-02 : f32
      %269 = vector.broadcast %cst_115 : f32 to vector<40x16xf32>
      %270 = arith.mulf %269, %268 : vector<40x16xf32>
      %271 = arith.addf %266, %270 : vector<40x16xf32>
      %cst_116 = arith.constant 0.797884583 : f32
      %272 = vector.broadcast %cst_116 : f32 to vector<40x16xf32>
      %273 = arith.mulf %272, %271 : vector<40x16xf32>
      %274 = math.tanh %273 : vector<40x16xf32>
      %cst_117 = arith.constant 1.000000e+00 : f32
      %275 = vector.broadcast %cst_117 : f32 to vector<40x16xf32>
      %276 = arith.addf %275, %274 : vector<40x16xf32>
      %cst_118 = arith.constant 5.000000e-01 : f32
      %277 = vector.broadcast %cst_118 : f32 to vector<40x16xf32>
      %278 = arith.mulf %277, %276 : vector<40x16xf32>
      %279 = arith.mulf %266, %278 : vector<40x16xf32>
      %280 = vector.broadcast %224 : vector<1x16xf32> to vector<40x16xf32>
      %281 = arith.subf %207, %280 : vector<40x16xf32>
      %282 = vector.broadcast %233 : vector<1x16xf32> to vector<40x16xf32>
      %283 = arith.mulf %281, %282 : vector<40x16xf32>
      %c0_119 = arith.constant 0 : index
      %c0_120 = arith.constant 0 : index
      %284 = vector.load %arg5[%c0_119, %c0_120] : memref<1x16xf32, #tpu.memory_space<vmem>>, vector<1x16xf32>
      %285 = vector.broadcast %284 : vector<1x16xf32> to vector<40x16xf32>
      %286 = arith.mulf %283, %285 : vector<40x16xf32>
      %c0_121 = arith.constant 0 : index
      %c0_122 = arith.constant 0 : index
      %287 = vector.load %arg6[%c0_121, %c0_122] : memref<1x16xf32, #tpu.memory_space<vmem>>, vector<1x16xf32>
      %288 = vector.broadcast %287 : vector<1x16xf32> to vector<40x16xf32>
      %289 = arith.addf %286, %288 : vector<40x16xf32>
      %290 = arith.mulf %289, %289 : vector<40x16xf32>
      %291 = arith.mulf %289, %290 : vector<40x16xf32>
      %cst_123 = arith.constant 4.471500e-02 : f32
      %292 = vector.broadcast %cst_123 : f32 to vector<40x16xf32>
      %293 = arith.mulf %292, %291 : vector<40x16xf32>
      %294 = arith.addf %289, %293 : vector<40x16xf32>
      %cst_124 = arith.constant 0.797884583 : f32
      %295 = vector.broadcast %cst_124 : f32 to vector<40x16xf32>
      %296 = arith.mulf %295, %294 : vector<40x16xf32>
      %297 = math.tanh %296 : vector<40x16xf32>
      %cst_125 = arith.constant 1.000000e+00 : f32
      %298 = vector.broadcast %cst_125 : f32 to vector<40x16xf32>
      %299 = arith.addf %298, %297 : vector<40x16xf32>
      %cst_126 = arith.constant 5.000000e-01 : f32
      %300 = vector.broadcast %cst_126 : f32 to vector<40x16xf32>
      %301 = arith.mulf %300, %299 : vector<40x16xf32>
      %302 = arith.mulf %289, %301 : vector<40x16xf32>
      %303 = vector.broadcast %224 : vector<1x16xf32> to vector<40x16xf32>
      %304 = arith.subf %210, %303 : vector<40x16xf32>
      %305 = vector.broadcast %233 : vector<1x16xf32> to vector<40x16xf32>
      %306 = arith.mulf %304, %305 : vector<40x16xf32>
      %c0_127 = arith.constant 0 : index
      %c0_128 = arith.constant 0 : index
      %307 = vector.load %arg5[%c0_127, %c0_128] : memref<1x16xf32, #tpu.memory_space<vmem>>, vector<1x16xf32>
      %308 = vector.broadcast %307 : vector<1x16xf32> to vector<40x16xf32>
      %309 = arith.mulf %306, %308 : vector<40x16xf32>
      %c0_129 = arith.constant 0 : index
      %c0_130 = arith.constant 0 : index
      %310 = vector.load %arg6[%c0_129, %c0_130] : memref<1x16xf32, #tpu.memory_space<vmem>>, vector<1x16xf32>
      %311 = vector.broadcast %310 : vector<1x16xf32> to vector<40x16xf32>
      %312 = arith.addf %309, %311 : vector<40x16xf32>
      %313 = arith.mulf %312, %312 : vector<40x16xf32>
      %314 = arith.mulf %312, %313 : vector<40x16xf32>
      %cst_131 = arith.constant 4.471500e-02 : f32
      %315 = vector.broadcast %cst_131 : f32 to vector<40x16xf32>
      %316 = arith.mulf %315, %314 : vector<40x16xf32>
      %317 = arith.addf %312, %316 : vector<40x16xf32>
      %cst_132 = arith.constant 0.797884583 : f32
      %318 = vector.broadcast %cst_132 : f32 to vector<40x16xf32>
      %319 = arith.mulf %318, %317 : vector<40x16xf32>
      %320 = math.tanh %319 : vector<40x16xf32>
      %cst_133 = arith.constant 1.000000e+00 : f32
      %321 = vector.broadcast %cst_133 : f32 to vector<40x16xf32>
      %322 = arith.addf %321, %320 : vector<40x16xf32>
      %cst_134 = arith.constant 5.000000e-01 : f32
      %323 = vector.broadcast %cst_134 : f32 to vector<40x16xf32>
      %324 = arith.mulf %323, %322 : vector<40x16xf32>
      %325 = arith.mulf %312, %324 : vector<40x16xf32>
      %326 = vector.extract_strided_slice %256 {offsets = [0, 0], sizes = [39, 16], strides = [1, 1]} : vector<40x16xf32> to vector<39x16xf32>
      %c0_135 = arith.constant 0 : index
      %c0_136 = arith.constant 0 : index
      %c0_137 = arith.constant 0 : index
      %327 = vector.load %arg7[%c0_135, %c0_136, %c0_137] : memref<3x16x16xf32, #tpu.memory_space<vmem>>, vector<1x16x16xf32>
      %328 = vector.shape_cast %327 : vector<1x16x16xf32> to vector<16x16xf32>
      %cst_138 = arith.constant dense<0.000000e+00> : vector<39x16xf32>
      %329 = tpu.matmul %326, %328, %cst_138 {dimension_numbers = #tpu.dot_dimension_numbers<[1], [0], [0], [1], [0, 0, 1, 1], [], []>} : vector<39x16xf32>, vector<16x16xf32>, vector<39x16xf32> -> vector<39x16xf32>
      %330 = vector.extract_strided_slice %279 {offsets = [0, 0], sizes = [39, 16], strides = [1, 1]} : vector<40x16xf32> to vector<39x16xf32>
      %c1_139 = arith.constant 1 : index
      %c0_140 = arith.constant 0 : index
      %c0_141 = arith.constant 0 : index
      %331 = vector.load %arg7[%c1_139, %c0_140, %c0_141] : memref<3x16x16xf32, #tpu.memory_space<vmem>>, vector<1x16x16xf32>
      %332 = vector.shape_cast %331 : vector<1x16x16xf32> to vector<16x16xf32>
      %cst_142 = arith.constant dense<0.000000e+00> : vector<39x16xf32>
      %333 = tpu.matmul %330, %332, %cst_142 {dimension_numbers = #tpu.dot_dimension_numbers<[1], [0], [0], [1], [0, 0, 1, 1], [], []>} : vector<39x16xf32>, vector<16x16xf32>, vector<39x16xf32> -> vector<39x16xf32>
      %334 = arith.addf %329, %333 : vector<39x16xf32>
      %335 = vector.extract_strided_slice %302 {offsets = [0, 0], sizes = [39, 16], strides = [1, 1]} : vector<40x16xf32> to vector<39x16xf32>
      %c2_143 = arith.constant 2 : index
      %c0_144 = arith.constant 0 : index
      %c0_145 = arith.constant 0 : index
      %336 = vector.load %arg7[%c2_143, %c0_144, %c0_145] : memref<3x16x16xf32, #tpu.memory_space<vmem>>, vector<1x16x16xf32>
      %337 = vector.shape_cast %336 : vector<1x16x16xf32> to vector<16x16xf32>
      %cst_146 = arith.constant dense<0.000000e+00> : vector<39x16xf32>
      %338 = tpu.matmul %335, %337, %cst_146 {dimension_numbers = #tpu.dot_dimension_numbers<[1], [0], [0], [1], [0, 0, 1, 1], [], []>} : vector<39x16xf32>, vector<16x16xf32>, vector<39x16xf32> -> vector<39x16xf32>
      %339 = arith.addf %334, %338 : vector<39x16xf32>
      %340 = vector.extract_strided_slice %302 {offsets = [0, 0], sizes = [39, 16], strides = [1, 1]} : vector<40x16xf32> to vector<39x16xf32>
      %c0_147 = arith.constant 0 : index
      %c0_148 = arith.constant 0 : index
      %c0_149 = arith.constant 0 : index
      %341 = vector.load %arg7[%c0_147, %c0_148, %c0_149] : memref<3x16x16xf32, #tpu.memory_space<vmem>>, vector<1x16x16xf32>
      %342 = vector.shape_cast %341 : vector<1x16x16xf32> to vector<16x16xf32>
      %cst_150 = arith.constant dense<0.000000e+00> : vector<39x16xf32>
      %343 = tpu.matmul %340, %342, %cst_150 {dimension_numbers = #tpu.dot_dimension_numbers<[1], [0], [0], [1], [0, 0, 1, 1], [], []>} : vector<39x16xf32>, vector<16x16xf32>, vector<39x16xf32> -> vector<39x16xf32>
      %344 = vector.extract_strided_slice %325 {offsets = [0, 0], sizes = [39, 16], strides = [1, 1]} : vector<40x16xf32> to vector<39x16xf32>
      %c1_151 = arith.constant 1 : index
      %c0_152 = arith.constant 0 : index
      %c0_153 = arith.constant 0 : index
      %345 = vector.load %arg7[%c1_151, %c0_152, %c0_153] : memref<3x16x16xf32, #tpu.memory_space<vmem>>, vector<1x16x16xf32>
      %346 = vector.shape_cast %345 : vector<1x16x16xf32> to vector<16x16xf32>
      %cst_154 = arith.constant dense<0.000000e+00> : vector<39x16xf32>
      %347 = tpu.matmul %344, %346, %cst_154 {dimension_numbers = #tpu.dot_dimension_numbers<[1], [0], [0], [1], [0, 0, 1, 1], [], []>} : vector<39x16xf32>, vector<16x16xf32>, vector<39x16xf32> -> vector<39x16xf32>
      %348 = arith.addf %343, %347 : vector<39x16xf32>
      %349 = vector.extract_strided_slice %256 {offsets = [1, 0], sizes = [39, 16], strides = [1, 1]} : vector<40x16xf32> to vector<39x16xf32>
      %c2_155 = arith.constant 2 : index
      %c0_156 = arith.constant 0 : index
      %c0_157 = arith.constant 0 : index
      %350 = vector.load %arg7[%c2_155, %c0_156, %c0_157] : memref<3x16x16xf32, #tpu.memory_space<vmem>>, vector<1x16x16xf32>
      %351 = vector.shape_cast %350 : vector<1x16x16xf32> to vector<16x16xf32>
      %cst_158 = arith.constant dense<0.000000e+00> : vector<39x16xf32>
      %352 = tpu.matmul %349, %351, %cst_158 {dimension_numbers = #tpu.dot_dimension_numbers<[1], [0], [0], [1], [0, 0, 1, 1], [], []>} : vector<39x16xf32>, vector<16x16xf32>, vector<39x16xf32> -> vector<39x16xf32>
      %353 = arith.addf %348, %352 : vector<39x16xf32>
      %354 = arith.mulf %339, %339 : vector<39x16xf32>
      %355 = arith.mulf %339, %354 : vector<39x16xf32>
      %cst_159 = arith.constant 4.471500e-02 : f32
      %356 = vector.broadcast %cst_159 : f32 to vector<39x16xf32>
      %357 = arith.mulf %356, %355 : vector<39x16xf32>
      %358 = arith.addf %339, %357 : vector<39x16xf32>
      %cst_160 = arith.constant 0.797884583 : f32
      %359 = vector.broadcast %cst_160 : f32 to vector<39x16xf32>
      %360 = arith.mulf %359, %358 : vector<39x16xf32>
      %361 = math.tanh %360 : vector<39x16xf32>
      %cst_161 = arith.constant 1.000000e+00 : f32
      %362 = vector.broadcast %cst_161 : f32 to vector<39x16xf32>
      %363 = arith.addf %362, %361 : vector<39x16xf32>
      %cst_162 = arith.constant 5.000000e-01 : f32
      %364 = vector.broadcast %cst_162 : f32 to vector<39x16xf32>
      %365 = arith.mulf %364, %363 : vector<39x16xf32>
      %366 = arith.mulf %339, %365 : vector<39x16xf32>
      %367 = arith.mulf %353, %353 : vector<39x16xf32>
      %368 = arith.mulf %353, %367 : vector<39x16xf32>
      %cst_163 = arith.constant 4.471500e-02 : f32
      %369 = vector.broadcast %cst_163 : f32 to vector<39x16xf32>
      %370 = arith.mulf %369, %368 : vector<39x16xf32>
      %371 = arith.addf %353, %370 : vector<39x16xf32>
      %cst_164 = arith.constant 0.797884583 : f32
      %372 = vector.broadcast %cst_164 : f32 to vector<39x16xf32>
      %373 = arith.mulf %372, %371 : vector<39x16xf32>
      %374 = math.tanh %373 : vector<39x16xf32>
      %cst_165 = arith.constant 1.000000e+00 : f32
      %375 = vector.broadcast %cst_165 : f32 to vector<39x16xf32>
      %376 = arith.addf %375, %374 : vector<39x16xf32>
      %cst_166 = arith.constant 5.000000e-01 : f32
      %377 = vector.broadcast %cst_166 : f32 to vector<39x16xf32>
      %378 = arith.mulf %377, %376 : vector<39x16xf32>
      %379 = arith.mulf %353, %378 : vector<39x16xf32>
      %c0_167 = arith.constant 0 : index
      %c0_168 = arith.constant 0 : index
      %c0_169 = arith.constant 0 : index
      %380 = vector.load %arg8[%c0_167, %c0_168, %c0_169] : memref<2x16x16xf32, #tpu.memory_space<vmem>>, vector<1x16x16xf32>
      %381 = vector.shape_cast %380 : vector<1x16x16xf32> to vector<16x16xf32>
      %cst_170 = arith.constant dense<0.000000e+00> : vector<39x16xf32>
      %382 = tpu.matmul %366, %381, %cst_170 {dimension_numbers = #tpu.dot_dimension_numbers<[1], [0], [0], [1], [0, 0, 1, 1], [], []>} : vector<39x16xf32>, vector<16x16xf32>, vector<39x16xf32> -> vector<39x16xf32>
      %c1_171 = arith.constant 1 : index
      %c0_172 = arith.constant 0 : index
      %c0_173 = arith.constant 0 : index
      %383 = vector.load %arg8[%c1_171, %c0_172, %c0_173] : memref<2x16x16xf32, #tpu.memory_space<vmem>>, vector<1x16x16xf32>
      %384 = vector.shape_cast %383 : vector<1x16x16xf32> to vector<16x16xf32>
      %cst_174 = arith.constant dense<0.000000e+00> : vector<39x16xf32>
      %385 = tpu.matmul %379, %384, %cst_174 {dimension_numbers = #tpu.dot_dimension_numbers<[1], [0], [0], [1], [0, 0, 1, 1], [], []>} : vector<39x16xf32>, vector<16x16xf32>, vector<39x16xf32> -> vector<39x16xf32>
      %386 = arith.addf %382, %385 : vector<39x16xf32>
      %387 = arith.mulf %386, %386 : vector<39x16xf32>
      %388 = arith.mulf %386, %387 : vector<39x16xf32>
      %cst_175 = arith.constant 4.471500e-02 : f32
      %389 = vector.broadcast %cst_175 : f32 to vector<39x16xf32>
      %390 = arith.mulf %389, %388 : vector<39x16xf32>
      %391 = arith.addf %386, %390 : vector<39x16xf32>
      %cst_176 = arith.constant 0.797884583 : f32
      %392 = vector.broadcast %cst_176 : f32 to vector<39x16xf32>
      %393 = arith.mulf %392, %391 : vector<39x16xf32>
      %394 = math.tanh %393 : vector<39x16xf32>
      %cst_177 = arith.constant 1.000000e+00 : f32
      %395 = vector.broadcast %cst_177 : f32 to vector<39x16xf32>
      %396 = arith.addf %395, %394 : vector<39x16xf32>
      %cst_178 = arith.constant 5.000000e-01 : f32
      %397 = vector.broadcast %cst_178 : f32 to vector<39x16xf32>
      %398 = arith.mulf %397, %396 : vector<39x16xf32>
      %399 = arith.mulf %386, %398 : vector<39x16xf32>
      %c0_179 = arith.constant 0 : index
      %c0_180 = arith.constant 0 : index
      %400 = vector.load %arg9[%c0_179, %c0_180] : memref<1x16xf32, #tpu.memory_space<vmem>>, vector<1x16xf32>
      %c0_181 = arith.constant 0 : index
      %c0_182 = arith.constant 0 : index
      %401 = vector.load %arg10[%c0_181, %c0_182] : memref<1x16xf32, #tpu.memory_space<vmem>>, vector<1x16xf32>
      %cst_183 = arith.constant dense<0.000000e+00> : vector<39xf32>
      %402 = vector.multi_reduction <add>, %399, %cst_183 [1] : vector<39x16xf32> to vector<39xf32>
      %403 = vector.shape_cast %402 : vector<39xf32> to vector<39x1xf32>
      %cst_184 = arith.constant 1.600000e+01 : f32
      %404 = vector.broadcast %cst_184 : f32 to vector<39x1xf32>
      %405 = arith.divf %403, %404 : vector<39x1xf32>
      %406 = vector.broadcast %405 : vector<39x1xf32> to vector<39x16xf32>
      %407 = arith.subf %399, %406 : vector<39x16xf32>
      %408 = arith.mulf %407, %407 : vector<39x16xf32>
      %cst_185 = arith.constant dense<0.000000e+00> : vector<39xf32>
      %409 = vector.multi_reduction <add>, %408, %cst_185 [1] : vector<39x16xf32> to vector<39xf32>
      %410 = vector.shape_cast %409 : vector<39xf32> to vector<39x1xf32>
      %cst_186 = arith.constant 1.600000e+01 : f32
      %411 = vector.broadcast %cst_186 : f32 to vector<39x1xf32>
      %412 = arith.divf %410, %411 : vector<39x1xf32>
      %413 = vector.broadcast %405 : vector<39x1xf32> to vector<39x16xf32>
      %414 = arith.subf %399, %413 : vector<39x16xf32>
      %cst_187 = arith.constant 9.99999974E-6 : f32
      %415 = vector.broadcast %cst_187 : f32 to vector<39x1xf32>
      %416 = arith.addf %412, %415 : vector<39x1xf32>
      %417 = math.rsqrt %416 : vector<39x1xf32>
      %418 = vector.broadcast %417 : vector<39x1xf32> to vector<39x16xf32>
      %419 = arith.mulf %414, %418 : vector<39x16xf32>
      %420 = vector.broadcast %400 : vector<1x16xf32> to vector<39x16xf32>
      %421 = arith.mulf %419, %420 : vector<39x16xf32>
      %422 = vector.broadcast %401 : vector<1x16xf32> to vector<39x16xf32>
      %423 = arith.addf %421, %422 : vector<39x16xf32>
      %424 = arith.truncf %423 : vector<39x16xf32> to vector<39x16xbf16>
      %c0_188 = arith.constant 0 : index
      %c0_189 = arith.constant 0 : index
      %425 = vector.load %arg11[%c0_188, %c0_189] : memref<16x32xbf16, #tpu.memory_space<vmem>>, vector<16x32xbf16>
      %cst_190 = arith.constant dense<0.000000e+00> : vector<39x32xf32>
      %426 = tpu.matmul %424, %425, %cst_190 {dimension_numbers = #tpu.dot_dimension_numbers<[1], [0], [0], [1], [0, 0, 1, 1], [], []>} : vector<39x16xbf16>, vector<16x32xbf16>, vector<39x32xf32> -> vector<39x32xf32>
      %c0_191 = arith.constant 0 : index
      %c0_192 = arith.constant 0 : index
      %427 = vector.load %arg12[%c0_191, %c0_192] : memref<1x32xf32, #tpu.memory_space<vmem>>, vector<1x32xf32>
      %428 = vector.broadcast %427 : vector<1x32xf32> to vector<39x32xf32>
      %429 = arith.addf %426, %428 : vector<39x32xf32>
      %c0_193 = arith.constant 0 : index
      %c0_194 = arith.constant 0 : index
      %c0_195 = arith.constant 0 : index
      %430 = vector.load %arg3[%c0_193, %c0_194, %c0_195] : memref<1x39x1xf32, #tpu.memory_space<vmem>>, vector<1x39x1xf32>
      %431 = vector.shape_cast %430 : vector<1x39x1xf32> to vector<39x1xf32>
      %432 = vector.broadcast %431 : vector<39x1xf32> to vector<39x32xf32>
      %433 = arith.mulf %429, %432 : vector<39x32xf32>
      %cst_196 = arith.constant 0.000000e+00 : f32
      %434 = vector.broadcast %cst_196 : f32 to vector<4x32xf32>
      %435 = tpu.concatenate %434, %433, %434 in 0 : vector<4x32xf32>, vector<39x32xf32>, vector<4x32xf32> -> vector<47x32xf32>
      %cst_197 = arith.constant 0.000000e+00 : f32
      %436 = vector.broadcast %cst_197 : f32 to vector<39x32xf32>
      %437 = vector.extract_strided_slice %435 {offsets = [0, 0], sizes = [39, 32], strides = [1, 1]} : vector<47x32xf32> to vector<39x32xf32>
      %438 = arith.truncf %437 : vector<39x32xf32> to vector<39x32xbf16>
      %c0_198 = arith.constant 0 : index
      %c0_199 = arith.constant 0 : index
      %c0_200 = arith.constant 0 : index
      %439 = vector.load %arg13[%c0_198, %c0_199, %c0_200] : memref<8x32x32xbf16, #tpu.memory_space<vmem>>, vector<1x32x32xbf16>
      %440 = vector.shape_cast %439 : vector<1x32x32xbf16> to vector<32x32xbf16>
      %cst_201 = arith.constant dense<0.000000e+00> : vector<39x32xf32>
      %441 = tpu.matmul %438, %440, %cst_201 {dimension_numbers = #tpu.dot_dimension_numbers<[1], [0], [0], [1], [0, 0, 1, 1], [], []>} : vector<39x32xbf16>, vector<32x32xbf16>, vector<39x32xf32> -> vector<39x32xf32>
      %442 = arith.addf %436, %441 : vector<39x32xf32>
      %443 = vector.extract_strided_slice %435 {offsets = [1, 0], sizes = [39, 32], strides = [1, 1]} : vector<47x32xf32> to vector<39x32xf32>
      %444 = arith.truncf %443 : vector<39x32xf32> to vector<39x32xbf16>
      %c1_202 = arith.constant 1 : index
      %c0_203 = arith.constant 0 : index
      %c0_204 = arith.constant 0 : index
      %445 = vector.load %arg13[%c1_202, %c0_203, %c0_204] : memref<8x32x32xbf16, #tpu.memory_space<vmem>>, vector<1x32x32xbf16>
      %446 = vector.shape_cast %445 : vector<1x32x32xbf16> to vector<32x32xbf16>
      %cst_205 = arith.constant dense<0.000000e+00> : vector<39x32xf32>
      %447 = tpu.matmul %444, %446, %cst_205 {dimension_numbers = #tpu.dot_dimension_numbers<[1], [0], [0], [1], [0, 0, 1, 1], [], []>} : vector<39x32xbf16>, vector<32x32xbf16>, vector<39x32xf32> -> vector<39x32xf32>
      %448 = arith.addf %442, %447 : vector<39x32xf32>
      %449 = vector.extract_strided_slice %435 {offsets = [2, 0], sizes = [39, 32], strides = [1, 1]} : vector<47x32xf32> to vector<39x32xf32>
      %450 = arith.truncf %449 : vector<39x32xf32> to vector<39x32xbf16>
      %c2_206 = arith.constant 2 : index
      %c0_207 = arith.constant 0 : index
      %c0_208 = arith.constant 0 : index
      %451 = vector.load %arg13[%c2_206, %c0_207, %c0_208] : memref<8x32x32xbf16, #tpu.memory_space<vmem>>, vector<1x32x32xbf16>
      %452 = vector.shape_cast %451 : vector<1x32x32xbf16> to vector<32x32xbf16>
      %cst_209 = arith.constant dense<0.000000e+00> : vector<39x32xf32>
      %453 = tpu.matmul %450, %452, %cst_209 {dimension_numbers = #tpu.dot_dimension_numbers<[1], [0], [0], [1], [0, 0, 1, 1], [], []>} : vector<39x32xbf16>, vector<32x32xbf16>, vector<39x32xf32> -> vector<39x32xf32>
      %454 = arith.addf %448, %453 : vector<39x32xf32>
      %455 = vector.extract_strided_slice %435 {offsets = [3, 0], sizes = [39, 32], strides = [1, 1]} : vector<47x32xf32> to vector<39x32xf32>
      %456 = arith.truncf %455 : vector<39x32xf32> to vector<39x32xbf16>
      %c3_210 = arith.constant 3 : index
      %c0_211 = arith.constant 0 : index
      %c0_212 = arith.constant 0 : index
      %457 = vector.load %arg13[%c3_210, %c0_211, %c0_212] : memref<8x32x32xbf16, #tpu.memory_space<vmem>>, vector<1x32x32xbf16>
      %458 = vector.shape_cast %457 : vector<1x32x32xbf16> to vector<32x32xbf16>
      %cst_213 = arith.constant dense<0.000000e+00> : vector<39x32xf32>
      %459 = tpu.matmul %456, %458, %cst_213 {dimension_numbers = #tpu.dot_dimension_numbers<[1], [0], [0], [1], [0, 0, 1, 1], [], []>} : vector<39x32xbf16>, vector<32x32xbf16>, vector<39x32xf32> -> vector<39x32xf32>
      %460 = arith.addf %454, %459 : vector<39x32xf32>
      %461 = vector.extract_strided_slice %435 {offsets = [4, 0], sizes = [39, 32], strides = [1, 1]} : vector<47x32xf32> to vector<39x32xf32>
      %462 = arith.truncf %461 : vector<39x32xf32> to vector<39x32xbf16>
      %c4 = arith.constant 4 : index
      %c0_214 = arith.constant 0 : index
      %c0_215 = arith.constant 0 : index
      %463 = vector.load %arg13[%c4, %c0_214, %c0_215] : memref<8x32x32xbf16, #tpu.memory_space<vmem>>, vector<1x32x32xbf16>
      %464 = vector.shape_cast %463 : vector<1x32x32xbf16> to vector<32x32xbf16>
      %cst_216 = arith.constant dense<0.000000e+00> : vector<39x32xf32>
      %465 = tpu.matmul %462, %464, %cst_216 {dimension_numbers = #tpu.dot_dimension_numbers<[1], [0], [0], [1], [0, 0, 1, 1], [], []>} : vector<39x32xbf16>, vector<32x32xbf16>, vector<39x32xf32> -> vector<39x32xf32>
      %466 = arith.addf %460, %465 : vector<39x32xf32>
      %467 = vector.extract_strided_slice %435 {offsets = [5, 0], sizes = [39, 32], strides = [1, 1]} : vector<47x32xf32> to vector<39x32xf32>
      %468 = arith.truncf %467 : vector<39x32xf32> to vector<39x32xbf16>
      %c5 = arith.constant 5 : index
      %c0_217 = arith.constant 0 : index
      %c0_218 = arith.constant 0 : index
      %469 = vector.load %arg13[%c5, %c0_217, %c0_218] : memref<8x32x32xbf16, #tpu.memory_space<vmem>>, vector<1x32x32xbf16>
      %470 = vector.shape_cast %469 : vector<1x32x32xbf16> to vector<32x32xbf16>
      %cst_219 = arith.constant dense<0.000000e+00> : vector<39x32xf32>
      %471 = tpu.matmul %468, %470, %cst_219 {dimension_numbers = #tpu.dot_dimension_numbers<[1], [0], [0], [1], [0, 0, 1, 1], [], []>} : vector<39x32xbf16>, vector<32x32xbf16>, vector<39x32xf32> -> vector<39x32xf32>
      %472 = arith.addf %466, %471 : vector<39x32xf32>
      %473 = vector.extract_strided_slice %435 {offsets = [6, 0], sizes = [39, 32], strides = [1, 1]} : vector<47x32xf32> to vector<39x32xf32>
      %474 = arith.truncf %473 : vector<39x32xf32> to vector<39x32xbf16>
      %c6 = arith.constant 6 : index
      %c0_220 = arith.constant 0 : index
      %c0_221 = arith.constant 0 : index
      %475 = vector.load %arg13[%c6, %c0_220, %c0_221] : memref<8x32x32xbf16, #tpu.memory_space<vmem>>, vector<1x32x32xbf16>
      %476 = vector.shape_cast %475 : vector<1x32x32xbf16> to vector<32x32xbf16>
      %cst_222 = arith.constant dense<0.000000e+00> : vector<39x32xf32>
      %477 = tpu.matmul %474, %476, %cst_222 {dimension_numbers = #tpu.dot_dimension_numbers<[1], [0], [0], [1], [0, 0, 1, 1], [], []>} : vector<39x32xbf16>, vector<32x32xbf16>, vector<39x32xf32> -> vector<39x32xf32>
      %478 = arith.addf %472, %477 : vector<39x32xf32>
      %479 = vector.extract_strided_slice %435 {offsets = [7, 0], sizes = [39, 32], strides = [1, 1]} : vector<47x32xf32> to vector<39x32xf32>
      %480 = arith.truncf %479 : vector<39x32xf32> to vector<39x32xbf16>
      %c7 = arith.constant 7 : index
      %c0_223 = arith.constant 0 : index
      %c0_224 = arith.constant 0 : index
      %481 = vector.load %arg13[%c7, %c0_223, %c0_224] : memref<8x32x32xbf16, #tpu.memory_space<vmem>>, vector<1x32x32xbf16>
      %482 = vector.shape_cast %481 : vector<1x32x32xbf16> to vector<32x32xbf16>
      %cst_225 = arith.constant dense<0.000000e+00> : vector<39x32xf32>
      %483 = tpu.matmul %480, %482, %cst_225 {dimension_numbers = #tpu.dot_dimension_numbers<[1], [0], [0], [1], [0, 0, 1, 1], [], []>} : vector<39x32xbf16>, vector<32x32xbf16>, vector<39x32xf32> -> vector<39x32xf32>
      %484 = arith.addf %478, %483 : vector<39x32xf32>
      %c0_226 = arith.constant 0 : index
      %c0_227 = arith.constant 0 : index
      %485 = vector.load %arg14[%c0_226, %c0_227] : memref<1x32xf32, #tpu.memory_space<vmem>>, vector<1x32xf32>
      %486 = vector.broadcast %485 : vector<1x32xf32> to vector<39x32xf32>
      %487 = arith.addf %484, %486 : vector<39x32xf32>
      %488 = arith.mulf %487, %487 : vector<39x32xf32>
      %489 = arith.mulf %487, %488 : vector<39x32xf32>
      %cst_228 = arith.constant 4.471500e-02 : f32
      %490 = vector.broadcast %cst_228 : f32 to vector<39x32xf32>
      %491 = arith.mulf %490, %489 : vector<39x32xf32>
      %492 = arith.addf %487, %491 : vector<39x32xf32>
      %cst_229 = arith.constant 0.797884583 : f32
      %493 = vector.broadcast %cst_229 : f32 to vector<39x32xf32>
      %494 = arith.mulf %493, %492 : vector<39x32xf32>
      %495 = math.tanh %494 : vector<39x32xf32>
      %cst_230 = arith.constant 1.000000e+00 : f32
      %496 = vector.broadcast %cst_230 : f32 to vector<39x32xf32>
      %497 = arith.addf %496, %495 : vector<39x32xf32>
      %cst_231 = arith.constant 5.000000e-01 : f32
      %498 = vector.broadcast %cst_231 : f32 to vector<39x32xf32>
      %499 = arith.mulf %498, %497 : vector<39x32xf32>
      %500 = arith.mulf %487, %499 : vector<39x32xf32>
      %501 = arith.addf %433, %500 : vector<39x32xf32>
      %c0_232 = arith.constant 0 : index
      %c0_233 = arith.constant 0 : index
      %502 = vector.load %arg15[%c0_232, %c0_233] : memref<1x32xf32, #tpu.memory_space<vmem>>, vector<1x32xf32>
      %c0_234 = arith.constant 0 : index
      %c0_235 = arith.constant 0 : index
      %503 = vector.load %arg16[%c0_234, %c0_235] : memref<1x32xf32, #tpu.memory_space<vmem>>, vector<1x32xf32>
      %cst_236 = arith.constant dense<0.000000e+00> : vector<39xf32>
      %504 = vector.multi_reduction <add>, %501, %cst_236 [1] : vector<39x32xf32> to vector<39xf32>
      %505 = vector.shape_cast %504 : vector<39xf32> to vector<39x1xf32>
      %cst_237 = arith.constant 3.200000e+01 : f32
      %506 = vector.broadcast %cst_237 : f32 to vector<39x1xf32>
      %507 = arith.divf %505, %506 : vector<39x1xf32>
      %508 = vector.broadcast %507 : vector<39x1xf32> to vector<39x32xf32>
      %509 = arith.subf %501, %508 : vector<39x32xf32>
      %510 = arith.mulf %509, %509 : vector<39x32xf32>
      %cst_238 = arith.constant dense<0.000000e+00> : vector<39xf32>
      %511 = vector.multi_reduction <add>, %510, %cst_238 [1] : vector<39x32xf32> to vector<39xf32>
      %512 = vector.shape_cast %511 : vector<39xf32> to vector<39x1xf32>
      %cst_239 = arith.constant 3.200000e+01 : f32
      %513 = vector.broadcast %cst_239 : f32 to vector<39x1xf32>
      %514 = arith.divf %512, %513 : vector<39x1xf32>
      %515 = vector.broadcast %507 : vector<39x1xf32> to vector<39x32xf32>
      %516 = arith.subf %501, %515 : vector<39x32xf32>
      %cst_240 = arith.constant 9.99999974E-6 : f32
      %517 = vector.broadcast %cst_240 : f32 to vector<39x1xf32>
      %518 = arith.addf %514, %517 : vector<39x1xf32>
      %519 = math.rsqrt %518 : vector<39x1xf32>
      %520 = vector.broadcast %519 : vector<39x1xf32> to vector<39x32xf32>
      %521 = arith.mulf %516, %520 : vector<39x32xf32>
      %522 = vector.broadcast %502 : vector<1x32xf32> to vector<39x32xf32>
      %523 = arith.mulf %521, %522 : vector<39x32xf32>
      %524 = vector.broadcast %503 : vector<1x32xf32> to vector<39x32xf32>
      %525 = arith.addf %523, %524 : vector<39x32xf32>
      %526 = tpu.transpose %525, [1, 0] : vector<39x32xf32> -> vector<32x39xf32>
      %c0_241 = arith.constant 0 : index
      %c0_242 = arith.constant 0 : index
      %527 = vector.load %arg33[%c0_241, %c0_242] : memref<32x39xf32, #tpu.memory_space<vmem>>, vector<32x39xf32>
      tpu.vector_store %arg33[%c0_241, %c0_242], %526 {strides = array<i32>} : memref<32x39xf32, #tpu.memory_space<vmem>>, vector<32x39xf32>,
    } else {
    }
    %c0_4 = arith.constant 0 : index
    %c0_5 = arith.constant 0 : index
    %9 = vector.load %arg33[%c0_4, %c0_5] : memref<32x39xf32, #tpu.memory_space<vmem>>, vector<32x39xf32>
    %c0_6 = arith.constant 0 : index
    %c0_7 = arith.constant 0 : index
    %c0_8 = arith.constant 0 : index
    %10 = vector.load %arg17[%c0_6, %c0_7, %c0_8] : memref<1x96x32xbf16, #tpu.memory_space<vmem>>, vector<1x96x32xbf16>
    %11 = vector.shape_cast %10 : vector<1x96x32xbf16> to vector<96x32xbf16>
    %12 = arith.truncf %9 : vector<32x39xf32> to vector<32x39xbf16>
    %cst_9 = arith.constant dense<0.000000e+00> : vector<96x39xf32>
    %13 = tpu.matmul %11, %12, %cst_9 {dimension_numbers = #tpu.dot_dimension_numbers<[1], [0], [0], [1], [0, 0, 1, 1], [], []>} : vector<96x32xbf16>, vector<32x39xbf16>, vector<96x39xf32> -> vector<96x39xf32>
    %c0_10 = arith.constant 0 : index
    %c0_11 = arith.constant 0 : index
    %c0_12 = arith.constant 0 : index
    %14 = vector.load %arg18[%c0_10, %c0_11, %c0_12] : memref<1x96x1xf32, #tpu.memory_space<vmem>>, vector<1x96x1xf32>
    %15 = vector.shape_cast %14 : vector<1x96x1xf32> to vector<96x1xf32>
    %16 = vector.broadcast %15 : vector<96x1xf32> to vector<96x39xf32>
    %17 = arith.addf %13, %16 : vector<96x39xf32>
    %18 = vector.extract_strided_slice %17 {offsets = [0, 0], sizes = [8, 39], strides = [1, 1]} : vector<96x39xf32> to vector<8x39xf32>
    %19 = vector.extract_strided_slice %17 {offsets = [32, 0], sizes = [8, 39], strides = [1, 1]} : vector<96x39xf32> to vector<8x39xf32>
    %20 = vector.extract_strided_slice %17 {offsets = [64, 0], sizes = [8, 39], strides = [1, 1]} : vector<96x39xf32> to vector<8x39xf32>
    %21 = tpu.transpose %19, [1, 0] : vector<8x39xf32> -> vector<39x8xf32>
    %22 = arith.truncf %21 : vector<39x8xf32> to vector<39x8xbf16>
    %23 = arith.truncf %18 : vector<8x39xf32> to vector<8x39xbf16>
    %cst_13 = arith.constant dense<0.000000e+00> : vector<39x39xf32>
    %24 = tpu.matmul %22, %23, %cst_13 {dimension_numbers = #tpu.dot_dimension_numbers<[1], [0], [0], [1], [0, 0, 1, 1], [], []>} : vector<39x8xbf16>, vector<8x39xbf16>, vector<39x39xf32> -> vector<39x39xf32>
    %25 = vector.broadcast %5 : vector<39x1xf32> to vector<39x39xf32>
    %26 = arith.addf %24, %25 : vector<39x39xf32>
    %cst_14 = arith.constant dense<0xFF800000> : vector<39xf32>
    %27 = vector.multi_reduction <maximumf>, %26, %cst_14 [0] : vector<39x39xf32> to vector<39xf32>
    %28 = vector.shape_cast %27 : vector<39xf32> to vector<1x39xf32>
    %29 = vector.broadcast %28 : vector<1x39xf32> to vector<39x39xf32>
    %30 = arith.subf %26, %29 : vector<39x39xf32>
    %31 = math.exp %30 : vector<39x39xf32>
    %cst_15 = arith.constant dense<0.000000e+00> : vector<39xf32>
    %32 = vector.multi_reduction <add>, %31, %cst_15 [0] : vector<39x39xf32> to vector<39xf32>
    %33 = vector.shape_cast %32 : vector<39xf32> to vector<1x39xf32>
    %34 = vector.broadcast %33 : vector<1x39xf32> to vector<39x39xf32>
    %35 = arith.divf %31, %34 : vector<39x39xf32>
    %36 = arith.truncf %20 : vector<8x39xf32> to vector<8x39xbf16>
    %37 = arith.truncf %35 : vector<39x39xf32> to vector<39x39xbf16>
    %cst_16 = arith.constant dense<0.000000e+00> : vector<8x39xf32>
    %38 = tpu.matmul %36, %37, %cst_16 {dimension_numbers = #tpu.dot_dimension_numbers<[1], [0], [0], [1], [0, 0, 1, 1], [], []>} : vector<8x39xbf16>, vector<39x39xbf16>, vector<8x39xf32> -> vector<8x39xf32>
    %39 = vector.extract_strided_slice %17 {offsets = [8, 0], sizes = [8, 39], strides = [1, 1]} : vector<96x39xf32> to vector<8x39xf32>
    %40 = vector.extract_strided_slice %17 {offsets = [40, 0], sizes = [8, 39], strides = [1, 1]} : vector<96x39xf32> to vector<8x39xf32>
    %41 = vector.extract_strided_slice %17 {offsets = [72, 0], sizes = [8, 39], strides = [1, 1]} : vector<96x39xf32> to vector<8x39xf32>
    %42 = tpu.transpose %40, [1, 0] : vector<8x39xf32> -> vector<39x8xf32>
    %43 = arith.truncf %42 : vector<39x8xf32> to vector<39x8xbf16>
    %44 = arith.truncf %39 : vector<8x39xf32> to vector<8x39xbf16>
    %cst_17 = arith.constant dense<0.000000e+00> : vector<39x39xf32>
    %45 = tpu.matmul %43, %44, %cst_17 {dimension_numbers = #tpu.dot_dimension_numbers<[1], [0], [0], [1], [0, 0, 1, 1], [], []>} : vector<39x8xbf16>, vector<8x39xbf16>, vector<39x39xf32> -> vector<39x39xf32>
    %46 = vector.broadcast %5 : vector<39x1xf32> to vector<39x39xf32>
    %47 = arith.addf %45, %46 : vector<39x39xf32>
    %cst_18 = arith.constant dense<0xFF800000> : vector<39xf32>
    %48 = vector.multi_reduction <maximumf>, %47, %cst_18 [0] : vector<39x39xf32> to vector<39xf32>
    %49 = vector.shape_cast %48 : vector<39xf32> to vector<1x39xf32>
    %50 = vector.broadcast %49 : vector<1x39xf32> to vector<39x39xf32>
    %51 = arith.subf %47, %50 : vector<39x39xf32>
    %52 = math.exp %51 : vector<39x39xf32>
    %cst_19 = arith.constant dense<0.000000e+00> : vector<39xf32>
    %53 = vector.multi_reduction <add>, %52, %cst_19 [0] : vector<39x39xf32> to vector<39xf32>
    %54 = vector.shape_cast %53 : vector<39xf32> to vector<1x39xf32>
    %55 = vector.broadcast %54 : vector<1x39xf32> to vector<39x39xf32>
    %56 = arith.divf %52, %55 : vector<39x39xf32>
    %57 = arith.truncf %41 : vector<8x39xf32> to vector<8x39xbf16>
    %58 = arith.truncf %56 : vector<39x39xf32> to vector<39x39xbf16>
    %cst_20 = arith.constant dense<0.000000e+00> : vector<8x39xf32>
    %59 = tpu.matmul %57, %58, %cst_20 {dimension_numbers = #tpu.dot_dimension_numbers<[1], [0], [0], [1], [0, 0, 1, 1], [], []>} : vector<8x39xbf16>, vector<39x39xbf16>, vector<8x39xf32> -> vector<8x39xf32>
    %60 = vector.extract_strided_slice %17 {offsets = [16, 0], sizes = [8, 39], strides = [1, 1]} : vector<96x39xf32> to vector<8x39xf32>
    %61 = vector.extract_strided_slice %17 {offsets = [48, 0], sizes = [8, 39], strides = [1, 1]} : vector<96x39xf32> to vector<8x39xf32>
    %62 = vector.extract_strided_slice %17 {offsets = [80, 0], sizes = [8, 39], strides = [1, 1]} : vector<96x39xf32> to vector<8x39xf32>
    %63 = tpu.transpose %61, [1, 0] : vector<8x39xf32> -> vector<39x8xf32>
    %64 = arith.truncf %63 : vector<39x8xf32> to vector<39x8xbf16>
    %65 = arith.truncf %60 : vector<8x39xf32> to vector<8x39xbf16>
    %cst_21 = arith.constant dense<0.000000e+00> : vector<39x39xf32>
    %66 = tpu.matmul %64, %65, %cst_21 {dimension_numbers = #tpu.dot_dimension_numbers<[1], [0], [0], [1], [0, 0, 1, 1], [], []>} : vector<39x8xbf16>, vector<8x39xbf16>, vector<39x39xf32> -> vector<39x39xf32>
    %67 = vector.broadcast %5 : vector<39x1xf32> to vector<39x39xf32>
    %68 = arith.addf %66, %67 : vector<39x39xf32>
    %cst_22 = arith.constant dense<0xFF800000> : vector<39xf32>
    %69 = vector.multi_reduction <maximumf>, %68, %cst_22 [0] : vector<39x39xf32> to vector<39xf32>
    %70 = vector.shape_cast %69 : vector<39xf32> to vector<1x39xf32>
    %71 = vector.broadcast %70 : vector<1x39xf32> to vector<39x39xf32>
    %72 = arith.subf %68, %71 : vector<39x39xf32>
    %73 = math.exp %72 : vector<39x39xf32>
    %cst_23 = arith.constant dense<0.000000e+00> : vector<39xf32>
    %74 = vector.multi_reduction <add>, %73, %cst_23 [0] : vector<39x39xf32> to vector<39xf32>
    %75 = vector.shape_cast %74 : vector<39xf32> to vector<1x39xf32>
    %76 = vector.broadcast %75 : vector<1x39xf32> to vector<39x39xf32>
    %77 = arith.divf %73, %76 : vector<39x39xf32>
    %78 = arith.truncf %62 : vector<8x39xf32> to vector<8x39xbf16>
    %79 = arith.truncf %77 : vector<39x39xf32> to vector<39x39xbf16>
    %cst_24 = arith.constant dense<0.000000e+00> : vector<8x39xf32>
    %80 = tpu.matmul %78, %79, %cst_24 {dimension_numbers = #tpu.dot_dimension_numbers<[1], [0], [0], [1], [0, 0, 1, 1], [], []>} : vector<8x39xbf16>, vector<39x39xbf16>, vector<8x39xf32> -> vector<8x39xf32>
    %81 = vector.extract_strided_slice %17 {offsets = [24, 0], sizes = [8, 39], strides = [1, 1]} : vector<96x39xf32> to vector<8x39xf32>
    %82 = vector.extract_strided_slice %17 {offsets = [56, 0], sizes = [8, 39], strides = [1, 1]} : vector<96x39xf32> to vector<8x39xf32>
    %83 = vector.extract_strided_slice %17 {offsets = [88, 0], sizes = [8, 39], strides = [1, 1]} : vector<96x39xf32> to vector<8x39xf32>
    %84 = tpu.transpose %82, [1, 0] : vector<8x39xf32> -> vector<39x8xf32>
    %85 = arith.truncf %84 : vector<39x8xf32> to vector<39x8xbf16>
    %86 = arith.truncf %81 : vector<8x39xf32> to vector<8x39xbf16>
    %cst_25 = arith.constant dense<0.000000e+00> : vector<39x39xf32>
    %87 = tpu.matmul %85, %86, %cst_25 {dimension_numbers = #tpu.dot_dimension_numbers<[1], [0], [0], [1], [0, 0, 1, 1], [], []>} : vector<39x8xbf16>, vector<8x39xbf16>, vector<39x39xf32> -> vector<39x39xf32>
    %88 = vector.broadcast %5 : vector<39x1xf32> to vector<39x39xf32>
    %89 = arith.addf %87, %88 : vector<39x39xf32>
    %cst_26 = arith.constant dense<0xFF800000> : vector<39xf32>
    %90 = vector.multi_reduction <maximumf>, %89, %cst_26 [0] : vector<39x39xf32> to vector<39xf32>
    %91 = vector.shape_cast %90 : vector<39xf32> to vector<1x39xf32>
    %92 = vector.broadcast %91 : vector<1x39xf32> to vector<39x39xf32>
    %93 = arith.subf %89, %92 : vector<39x39xf32>
    %94 = math.exp %93 : vector<39x39xf32>
    %cst_27 = arith.constant dense<0.000000e+00> : vector<39xf32>
    %95 = vector.multi_reduction <add>, %94, %cst_27 [0] : vector<39x39xf32> to vector<39xf32>
    %96 = vector.shape_cast %95 : vector<39xf32> to vector<1x39xf32>
    %97 = vector.broadcast %96 : vector<1x39xf32> to vector<39x39xf32>
    %98 = arith.divf %94, %97 : vector<39x39xf32>
    %99 = arith.truncf %83 : vector<8x39xf32> to vector<8x39xbf16>
    %100 = arith.truncf %98 : vector<39x39xf32> to vector<39x39xbf16>
    %cst_28 = arith.constant dense<0.000000e+00> : vector<8x39xf32>
    %101 = tpu.matmul %99, %100, %cst_28 {dimension_numbers = #tpu.dot_dimension_numbers<[1], [0], [0], [1], [0, 0, 1, 1], [], []>} : vector<8x39xbf16>, vector<39x39xbf16>, vector<8x39xf32> -> vector<8x39xf32>
    %102 = tpu.concatenate %38, %59, %80, %101 in 0 : vector<8x39xf32>, vector<8x39xf32>, vector<8x39xf32>, vector<8x39xf32> -> vector<32x39xf32>
    %c0_29 = arith.constant 0 : index
    %c0_30 = arith.constant 0 : index
    %c0_31 = arith.constant 0 : index
    %103 = vector.load %arg19[%c0_29, %c0_30, %c0_31] : memref<1x32x32xbf16, #tpu.memory_space<vmem>>, vector<1x32x32xbf16>
    %104 = vector.shape_cast %103 : vector<1x32x32xbf16> to vector<32x32xbf16>
    %105 = arith.truncf %102 : vector<32x39xf32> to vector<32x39xbf16>
    %cst_32 = arith.constant dense<0.000000e+00> : vector<32x39xf32>
    %106 = tpu.matmul %104, %105, %cst_32 {dimension_numbers = #tpu.dot_dimension_numbers<[1], [0], [0], [1], [0, 0, 1, 1], [], []>} : vector<32x32xbf16>, vector<32x39xbf16>, vector<32x39xf32> -> vector<32x39xf32>
    %c0_33 = arith.constant 0 : index
    %c0_34 = arith.constant 0 : index
    %c0_35 = arith.constant 0 : index
    %107 = vector.load %arg20[%c0_33, %c0_34, %c0_35] : memref<1x32x1xf32, #tpu.memory_space<vmem>>, vector<1x32x1xf32>
    %108 = vector.shape_cast %107 : vector<1x32x1xf32> to vector<32x1xf32>
    %109 = vector.broadcast %108 : vector<32x1xf32> to vector<32x39xf32>
    %110 = arith.addf %106, %109 : vector<32x39xf32>
    %111 = arith.addf %9, %110 : vector<32x39xf32>
    %c0_36 = arith.constant 0 : index
    %c0_37 = arith.constant 0 : index
    %c0_38 = arith.constant 0 : index
    %112 = vector.load %arg21[%c0_36, %c0_37, %c0_38] : memref<1x32x1xf32, #tpu.memory_space<vmem>>, vector<1x32x1xf32>
    %113 = vector.shape_cast %112 : vector<1x32x1xf32> to vector<32x1xf32>
    %c0_39 = arith.constant 0 : index
    %c0_40 = arith.constant 0 : index
    %c0_41 = arith.constant 0 : index
    %114 = vector.load %arg22[%c0_39, %c0_40, %c0_41] : memref<1x32x1xf32, #tpu.memory_space<vmem>>, vector<1x32x1xf32>
    %115 = vector.shape_cast %114 : vector<1x32x1xf32> to vector<32x1xf32>
    %cst_42 = arith.constant dense<0.000000e+00> : vector<39xf32>
    %116 = vector.multi_reduction <add>, %111, %cst_42 [0] : vector<32x39xf32> to vector<39xf32>
    %117 = vector.shape_cast %116 : vector<39xf32> to vector<1x39xf32>
    %cst_43 = arith.constant 3.200000e+01 : f32
    %118 = vector.broadcast %cst_43 : f32 to vector<1x39xf32>
    %119 = arith.divf %117, %118 : vector<1x39xf32>
    %120 = vector.broadcast %119 : vector<1x39xf32> to vector<32x39xf32>
    %121 = arith.subf %111, %120 : vector<32x39xf32>
    %122 = arith.mulf %121, %121 : vector<32x39xf32>
    %cst_44 = arith.constant dense<0.000000e+00> : vector<39xf32>
    %123 = vector.multi_reduction <add>, %122, %cst_44 [0] : vector<32x39xf32> to vector<39xf32>
    %124 = vector.shape_cast %123 : vector<39xf32> to vector<1x39xf32>
    %cst_45 = arith.constant 3.200000e+01 : f32
    %125 = vector.broadcast %cst_45 : f32 to vector<1x39xf32>
    %126 = arith.divf %124, %125 : vector<1x39xf32>
    %127 = vector.broadcast %119 : vector<1x39xf32> to vector<32x39xf32>
    %128 = arith.subf %111, %127 : vector<32x39xf32>
    %cst_46 = arith.constant 9.99999974E-6 : f32
    %129 = vector.broadcast %cst_46 : f32 to vector<1x39xf32>
    %130 = arith.addf %126, %129 : vector<1x39xf32>
    %131 = math.rsqrt %130 : vector<1x39xf32>
    %132 = vector.broadcast %131 : vector<1x39xf32> to vector<32x39xf32>
    %133 = arith.mulf %128, %132 : vector<32x39xf32>
    %134 = vector.broadcast %113 : vector<32x1xf32> to vector<32x39xf32>
    %135 = arith.mulf %133, %134 : vector<32x39xf32>
    %136 = vector.broadcast %115 : vector<32x1xf32> to vector<32x39xf32>
    %137 = arith.addf %135, %136 : vector<32x39xf32>
    %c0_47 = arith.constant 0 : index
    %c0_48 = arith.constant 0 : index
    %c0_49 = arith.constant 0 : index
    %138 = vector.load %arg23[%c0_47, %c0_48, %c0_49] : memref<1x64x32xbf16, #tpu.memory_space<vmem>>, vector<1x64x32xbf16>
    %139 = vector.shape_cast %138 : vector<1x64x32xbf16> to vector<64x32xbf16>
    %140 = arith.truncf %137 : vector<32x39xf32> to vector<32x39xbf16>
    %cst_50 = arith.constant dense<0.000000e+00> : vector<64x39xf32>
    %141 = tpu.matmul %139, %140, %cst_50 {dimension_numbers = #tpu.dot_dimension_numbers<[1], [0], [0], [1], [0, 0, 1, 1], [], []>} : vector<64x32xbf16>, vector<32x39xbf16>, vector<64x39xf32> -> vector<64x39xf32>
    %c0_51 = arith.constant 0 : index
    %c0_52 = arith.constant 0 : index
    %c0_53 = arith.constant 0 : index
    %142 = vector.load %arg24[%c0_51, %c0_52, %c0_53] : memref<1x64x1xf32, #tpu.memory_space<vmem>>, vector<1x64x1xf32>
    %143 = vector.shape_cast %142 : vector<1x64x1xf32> to vector<64x1xf32>
    %144 = vector.broadcast %143 : vector<64x1xf32> to vector<64x39xf32>
    %145 = arith.addf %141, %144 : vector<64x39xf32>
    %146 = arith.mulf %145, %145 : vector<64x39xf32>
    %147 = arith.mulf %145, %146 : vector<64x39xf32>
    %cst_54 = arith.constant 4.471500e-02 : f32
    %148 = vector.broadcast %cst_54 : f32 to vector<64x39xf32>
    %149 = arith.mulf %148, %147 : vector<64x39xf32>
    %150 = arith.addf %145, %149 : vector<64x39xf32>
    %cst_55 = arith.constant 0.797884583 : f32
    %151 = vector.broadcast %cst_55 : f32 to vector<64x39xf32>
    %152 = arith.mulf %151, %150 : vector<64x39xf32>
    %153 = math.tanh %152 : vector<64x39xf32>
    %cst_56 = arith.constant 1.000000e+00 : f32
    %154 = vector.broadcast %cst_56 : f32 to vector<64x39xf32>
    %155 = arith.addf %154, %153 : vector<64x39xf32>
    %cst_57 = arith.constant 5.000000e-01 : f32
    %156 = vector.broadcast %cst_57 : f32 to vector<64x39xf32>
    %157 = arith.mulf %156, %155 : vector<64x39xf32>
    %158 = arith.mulf %145, %157 : vector<64x39xf32>
    %c0_58 = arith.constant 0 : index
    %c0_59 = arith.constant 0 : index
    %c0_60 = arith.constant 0 : index
    %159 = vector.load %arg25[%c0_58, %c0_59, %c0_60] : memref<1x32x64xbf16, #tpu.memory_space<vmem>>, vector<1x32x64xbf16>
    %160 = vector.shape_cast %159 : vector<1x32x64xbf16> to vector<32x64xbf16>
    %161 = arith.truncf %158 : vector<64x39xf32> to vector<64x39xbf16>
    %cst_61 = arith.constant dense<0.000000e+00> : vector<32x39xf32>
    %162 = tpu.matmul %160, %161, %cst_61 {dimension_numbers = #tpu.dot_dimension_numbers<[1], [0], [0], [1], [0, 0, 1, 1], [], []>} : vector<32x64xbf16>, vector<64x39xbf16>, vector<32x39xf32> -> vector<32x39xf32>
    %c0_62 = arith.constant 0 : index
    %c0_63 = arith.constant 0 : index
    %c0_64 = arith.constant 0 : index
    %163 = vector.load %arg26[%c0_62, %c0_63, %c0_64] : memref<1x32x1xf32, #tpu.memory_space<vmem>>, vector<1x32x1xf32>
    %164 = vector.shape_cast %163 : vector<1x32x1xf32> to vector<32x1xf32>
    %165 = vector.broadcast %164 : vector<32x1xf32> to vector<32x39xf32>
    %166 = arith.addf %162, %165 : vector<32x39xf32>
    %167 = arith.addf %137, %166 : vector<32x39xf32>
    %c0_65 = arith.constant 0 : index
    %c0_66 = arith.constant 0 : index
    %c0_67 = arith.constant 0 : index
    %168 = vector.load %arg27[%c0_65, %c0_66, %c0_67] : memref<1x32x1xf32, #tpu.memory_space<vmem>>, vector<1x32x1xf32>
    %169 = vector.shape_cast %168 : vector<1x32x1xf32> to vector<32x1xf32>
    %c0_68 = arith.constant 0 : index
    %c0_69 = arith.constant 0 : index
    %c0_70 = arith.constant 0 : index
    %170 = vector.load %arg28[%c0_68, %c0_69, %c0_70] : memref<1x32x1xf32, #tpu.memory_space<vmem>>, vector<1x32x1xf32>
    %171 = vector.shape_cast %170 : vector<1x32x1xf32> to vector<32x1xf32>
    %cst_71 = arith.constant dense<0.000000e+00> : vector<39xf32>
    %172 = vector.multi_reduction <add>, %167, %cst_71 [0] : vector<32x39xf32> to vector<39xf32>
    %173 = vector.shape_cast %172 : vector<39xf32> to vector<1x39xf32>
    %cst_72 = arith.constant 3.200000e+01 : f32
    %174 = vector.broadcast %cst_72 : f32 to vector<1x39xf32>
    %175 = arith.divf %173, %174 : vector<1x39xf32>
    %176 = vector.broadcast %175 : vector<1x39xf32> to vector<32x39xf32>
    %177 = arith.subf %167, %176 : vector<32x39xf32>
    %178 = arith.mulf %177, %177 : vector<32x39xf32>
    %cst_73 = arith.constant dense<0.000000e+00> : vector<39xf32>
    %179 = vector.multi_reduction <add>, %178, %cst_73 [0] : vector<32x39xf32> to vector<39xf32>
    %180 = vector.shape_cast %179 : vector<39xf32> to vector<1x39xf32>
    %cst_74 = arith.constant 3.200000e+01 : f32
    %181 = vector.broadcast %cst_74 : f32 to vector<1x39xf32>
    %182 = arith.divf %180, %181 : vector<1x39xf32>
    %183 = vector.broadcast %175 : vector<1x39xf32> to vector<32x39xf32>
    %184 = arith.subf %167, %183 : vector<32x39xf32>
    %cst_75 = arith.constant 9.99999974E-6 : f32
    %185 = vector.broadcast %cst_75 : f32 to vector<1x39xf32>
    %186 = arith.addf %182, %185 : vector<1x39xf32>
    %187 = math.rsqrt %186 : vector<1x39xf32>
    %188 = vector.broadcast %187 : vector<1x39xf32> to vector<32x39xf32>
    %189 = arith.mulf %184, %188 : vector<32x39xf32>
    %190 = vector.broadcast %169 : vector<32x1xf32> to vector<32x39xf32>
    %191 = arith.mulf %189, %190 : vector<32x39xf32>
    %192 = vector.broadcast %171 : vector<32x1xf32> to vector<32x39xf32>
    %193 = arith.addf %191, %192 : vector<32x39xf32>
    %c0_76 = arith.constant 0 : index
    %c0_77 = arith.constant 0 : index
    %194 = vector.load %arg33[%c0_76, %c0_77] : memref<32x39xf32, #tpu.memory_space<vmem>>, vector<32x39xf32>
    tpu.vector_store %arg33[%c0_76, %c0_77], %193 {strides = array<i32>} : memref<32x39xf32, #tpu.memory_space<vmem>>, vector<32x39xf32>,
    %c1_i32 = arith.constant 1 : i32
    %195 = arith.cmpi eq, %arg1, %c1_i32 : i32
    %196 = arith.extui %195 : i1 to i32
    %c0_i32_78 = arith.constant 0 : i32
    %197 = arith.cmpi ne, %196, %c0_i32_78 : i32
    scf.if %197 {
      %198 = tpu.transpose %193, [1, 0] : vector<32x39xf32> -> vector<39x32xf32>
      %c0_79 = arith.constant 0 : index
      %c0_80 = arith.constant 0 : index
      %c0_81 = arith.constant 0 : index
      %199 = vector.load %arg31[%c0_79, %c0_80, %c0_81] : memref<1x39x32xf32, #tpu.memory_space<vmem>>, vector<1x39x32xf32>
      %200 = vector.shape_cast %199 : vector<1x39x32xf32> to vector<39x32xf32>
      %201 = vector.shape_cast %198 : vector<39x32xf32> to vector<1x39x32xf32>
      tpu.vector_store %arg31[%c0_79, %c0_80, %c0_81], %201 {strides = array<i32>} : memref<1x39x32xf32, #tpu.memory_space<vmem>>, vector<1x39x32xf32>,
      %202 = arith.truncf %198 : vector<39x32xf32> to vector<39x32xbf16>
      %c0_82 = arith.constant 0 : index
      %c0_83 = arith.constant 0 : index
      %203 = vector.load %arg29[%c0_82, %c0_83] : memref<32x128xbf16, #tpu.memory_space<vmem>>, vector<32x128xbf16>
      %cst_84 = arith.constant dense<0.000000e+00> : vector<39x128xf32>
      %204 = tpu.matmul %202, %203, %cst_84 {dimension_numbers = #tpu.dot_dimension_numbers<[1], [0], [0], [1], [0, 0, 1, 1], [], []>} : vector<39x32xbf16>, vector<32x128xbf16>, vector<39x128xf32> -> vector<39x128xf32>
      %c0_85 = arith.constant 0 : index
      %c0_86 = arith.constant 0 : index
      %205 = vector.load %arg30[%c0_85, %c0_86] : memref<1x128xf32, #tpu.memory_space<vmem>>, vector<1x128xf32>
      %206 = vector.broadcast %205 : vector<1x128xf32> to vector<39x128xf32>
      %207 = arith.addf %204, %206 : vector<39x128xf32>
      %c0_87 = arith.constant 0 : index
      %c0_88 = arith.constant 0 : index
      %c0_89 = arith.constant 0 : index
      %208 = vector.load %arg32[%c0_87, %c0_88, %c0_89] : memref<1x39x128xf32, #tpu.memory_space<vmem>>, vector<1x39x128xf32>
      %209 = vector.shape_cast %208 : vector<1x39x128xf32> to vector<39x128xf32>
      %210 = vector.shape_cast %207 : vector<39x128xf32> to vector<1x39x128xf32>
      tpu.vector_store %arg32[%c0_87, %c0_88, %c0_89], %210 {strides = array<i32>} : memref<1x39x128xf32, #tpu.memory_space<vmem>>, vector<1x39x128xf32>,
    } else {
    }
    return
  }
  func.func @transform_0(%arg0: i32, %arg1: i32) -> (i32, i32, i32, i32) {
    %c0_i32 = arith.constant 0 : i32
    %c0_i32_0 = arith.constant 0 : i32
    %c0_i32_1 = arith.constant 0 : i32
    %c0_i32_2 = arith.constant 0 : i32
    return %arg0, %c0_i32, %c0_i32_0, %c0_i32_1 : i32, i32, i32, i32
  }
  func.func @transform_1(%arg0: i32, %arg1: i32) -> (i32, i32, i32) {
    %c0_i32 = arith.constant 0 : i32
    %c0_i32_0 = arith.constant 0 : i32
    %c0_i32_1 = arith.constant 0 : i32
    return %arg0, %c0_i32, %c0_i32_0 : i32, i32, i32
  }
  func.func @transform_2(%arg0: i32, %arg1: i32) -> (i32, i32) {
    %c0_i32 = arith.constant 0 : i32
    %c0_i32_0 = arith.constant 0 : i32
    %c0_i32_1 = arith.constant 0 : i32
    return %c0_i32, %c0_i32_0 : i32, i32
  }
  func.func @transform_3(%arg0: i32, %arg1: i32) -> (i32, i32) {
    %c0_i32 = arith.constant 0 : i32
    %c0_i32_0 = arith.constant 0 : i32
    %c0_i32_1 = arith.constant 0 : i32
    return %c0_i32, %c0_i32_0 : i32, i32
  }
  func.func @transform_4(%arg0: i32, %arg1: i32) -> (i32, i32) {
    %c0_i32 = arith.constant 0 : i32
    %c0_i32_0 = arith.constant 0 : i32
    %c0_i32_1 = arith.constant 0 : i32
    return %c0_i32, %c0_i32_0 : i32, i32
  }
  func.func @transform_5(%arg0: i32, %arg1: i32) -> (i32, i32, i32) {
    %c0_i32 = arith.constant 0 : i32
    %c0_i32_0 = arith.constant 0 : i32
    %c0_i32_1 = arith.constant 0 : i32
    %c0_i32_2 = arith.constant 0 : i32
    return %c0_i32, %c0_i32_0, %c0_i32_1 : i32, i32, i32
  }
  func.func @transform_6(%arg0: i32, %arg1: i32) -> (i32, i32, i32) {
    %c0_i32 = arith.constant 0 : i32
    %c0_i32_0 = arith.constant 0 : i32
    %c0_i32_1 = arith.constant 0 : i32
    %c0_i32_2 = arith.constant 0 : i32
    return %c0_i32, %c0_i32_0, %c0_i32_1 : i32, i32, i32
  }
  func.func @transform_7(%arg0: i32, %arg1: i32) -> (i32, i32) {
    %c0_i32 = arith.constant 0 : i32
    %c0_i32_0 = arith.constant 0 : i32
    %c0_i32_1 = arith.constant 0 : i32
    return %c0_i32, %c0_i32_0 : i32, i32
  }
  func.func @transform_8(%arg0: i32, %arg1: i32) -> (i32, i32) {
    %c0_i32 = arith.constant 0 : i32
    %c0_i32_0 = arith.constant 0 : i32
    %c0_i32_1 = arith.constant 0 : i32
    return %c0_i32, %c0_i32_0 : i32, i32
  }
  func.func @transform_9(%arg0: i32, %arg1: i32) -> (i32, i32) {
    %c0_i32 = arith.constant 0 : i32
    %c0_i32_0 = arith.constant 0 : i32
    %c0_i32_1 = arith.constant 0 : i32
    return %c0_i32, %c0_i32_0 : i32, i32
  }
  func.func @transform_10(%arg0: i32, %arg1: i32) -> (i32, i32) {
    %c0_i32 = arith.constant 0 : i32
    %c0_i32_0 = arith.constant 0 : i32
    %c0_i32_1 = arith.constant 0 : i32
    return %c0_i32, %c0_i32_0 : i32, i32
  }
  func.func @transform_11(%arg0: i32, %arg1: i32) -> (i32, i32, i32) {
    %c0_i32 = arith.constant 0 : i32
    %c0_i32_0 = arith.constant 0 : i32
    %c0_i32_1 = arith.constant 0 : i32
    %c0_i32_2 = arith.constant 0 : i32
    return %c0_i32, %c0_i32_0, %c0_i32_1 : i32, i32, i32
  }
  func.func @transform_12(%arg0: i32, %arg1: i32) -> (i32, i32) {
    %c0_i32 = arith.constant 0 : i32
    %c0_i32_0 = arith.constant 0 : i32
    %c0_i32_1 = arith.constant 0 : i32
    return %c0_i32, %c0_i32_0 : i32, i32
  }
  func.func @transform_13(%arg0: i32, %arg1: i32) -> (i32, i32) {
    %c0_i32 = arith.constant 0 : i32
    %c0_i32_0 = arith.constant 0 : i32
    %c0_i32_1 = arith.constant 0 : i32
    return %c0_i32, %c0_i32_0 : i32, i32
  }
  func.func @transform_14(%arg0: i32, %arg1: i32) -> (i32, i32) {
    %c0_i32 = arith.constant 0 : i32
    %c0_i32_0 = arith.constant 0 : i32
    %c0_i32_1 = arith.constant 0 : i32
    return %c0_i32, %c0_i32_0 : i32, i32
  }
  func.func @transform_15(%arg0: i32, %arg1: i32) -> (i32, i32, i32) {
    %c0_i32 = arith.constant 0 : i32
    %c0_i32_0 = arith.constant 0 : i32
    %c0_i32_1 = arith.constant 0 : i32
    return %arg1, %c0_i32, %c0_i32_0 : i32, i32, i32
  }
  func.func @transform_16(%arg0: i32, %arg1: i32) -> (i32, i32, i32) {
    %c0_i32 = arith.constant 0 : i32
    %c0_i32_0 = arith.constant 0 : i32
    %c0_i32_1 = arith.constant 0 : i32
    return %arg1, %c0_i32, %c0_i32_0 : i32, i32, i32
  }
  func.func @transform_17(%arg0: i32, %arg1: i32) -> (i32, i32, i32) {
    %c0_i32 = arith.constant 0 : i32
    %c0_i32_0 = arith.constant 0 : i32
    %c0_i32_1 = arith.constant 0 : i32
    return %arg1, %c0_i32, %c0_i32_0 : i32, i32, i32
  }
  func.func @transform_18(%arg0: i32, %arg1: i32) -> (i32, i32, i32) {
    %c0_i32 = arith.constant 0 : i32
    %c0_i32_0 = arith.constant 0 : i32
    %c0_i32_1 = arith.constant 0 : i32
    return %arg1, %c0_i32, %c0_i32_0 : i32, i32, i32
  }
  func.func @transform_19(%arg0: i32, %arg1: i32) -> (i32, i32, i32) {
    %c0_i32 = arith.constant 0 : i32
    %c0_i32_0 = arith.constant 0 : i32
    %c0_i32_1 = arith.constant 0 : i32
    return %arg1, %c0_i32, %c0_i32_0 : i32, i32, i32
  }
  func.func @transform_20(%arg0: i32, %arg1: i32) -> (i32, i32, i32) {
    %c0_i32 = arith.constant 0 : i32
    %c0_i32_0 = arith.constant 0 : i32
    %c0_i32_1 = arith.constant 0 : i32
    return %arg1, %c0_i32, %c0_i32_0 : i32, i32, i32
  }
  func.func @transform_21(%arg0: i32, %arg1: i32) -> (i32, i32, i32) {
    %c0_i32 = arith.constant 0 : i32
    %c0_i32_0 = arith.constant 0 : i32
    %c0_i32_1 = arith.constant 0 : i32
    return %arg1, %c0_i32, %c0_i32_0 : i32, i32, i32
  }
  func.func @transform_22(%arg0: i32, %arg1: i32) -> (i32, i32, i32) {
    %c0_i32 = arith.constant 0 : i32
    %c0_i32_0 = arith.constant 0 : i32
    %c0_i32_1 = arith.constant 0 : i32
    return %arg1, %c0_i32, %c0_i32_0 : i32, i32, i32
  }
  func.func @transform_23(%arg0: i32, %arg1: i32) -> (i32, i32, i32) {
    %c0_i32 = arith.constant 0 : i32
    %c0_i32_0 = arith.constant 0 : i32
    %c0_i32_1 = arith.constant 0 : i32
    return %arg1, %c0_i32, %c0_i32_0 : i32, i32, i32
  }
  func.func @transform_24(%arg0: i32, %arg1: i32) -> (i32, i32, i32) {
    %c0_i32 = arith.constant 0 : i32
    %c0_i32_0 = arith.constant 0 : i32
    %c0_i32_1 = arith.constant 0 : i32
    return %arg1, %c0_i32, %c0_i32_0 : i32, i32, i32
  }
  func.func @transform_25(%arg0: i32, %arg1: i32) -> (i32, i32, i32) {
    %c0_i32 = arith.constant 0 : i32
    %c0_i32_0 = arith.constant 0 : i32
    %c0_i32_1 = arith.constant 0 : i32
    return %arg1, %c0_i32, %c0_i32_0 : i32, i32, i32
  }
  func.func @transform_26(%arg0: i32, %arg1: i32) -> (i32, i32, i32) {
    %c0_i32 = arith.constant 0 : i32
    %c0_i32_0 = arith.constant 0 : i32
    %c0_i32_1 = arith.constant 0 : i32
    return %arg1, %c0_i32, %c0_i32_0 : i32, i32, i32
  }
  func.func @transform_27(%arg0: i32, %arg1: i32) -> (i32, i32) {
    %c0_i32 = arith.constant 0 : i32
    %c0_i32_0 = arith.constant 0 : i32
    %c0_i32_1 = arith.constant 0 : i32
    return %c0_i32, %c0_i32_0 : i32, i32
  }
  func.func @transform_28(%arg0: i32, %arg1: i32) -> (i32, i32) {
    %c0_i32 = arith.constant 0 : i32
    %c0_i32_0 = arith.constant 0 : i32
    %c0_i32_1 = arith.constant 0 : i32
    return %c0_i32, %c0_i32_0 : i32, i32
  }
  func.func @transform_29(%arg0: i32, %arg1: i32) -> (i32, i32, i32) {
    %c0_i32 = arith.constant 0 : i32
    %c0_i32_0 = arith.constant 0 : i32
    %c0_i32_1 = arith.constant 0 : i32
    return %arg0, %c0_i32, %c0_i32_0 : i32, i32, i32
  }
  func.func @transform_30(%arg0: i32, %arg1: i32) -> (i32, i32, i32) {
    %c0_i32 = arith.constant 0 : i32
    %c0_i32_0 = arith.constant 0 : i32
    %c0_i32_1 = arith.constant 0 : i32
    return %arg0, %c0_i32, %c0_i32_0 : i32, i32, i32
  }
}

</mosaic_0001>

<bundles_post_ra>
// kernel: model2_forward.1
= control target key start
LH: loop header
LB: loop body
LE: loop exit
PB: predicated region body
PF: predicated region fallthrough
CT: control target
= control target key end

     0   :  { %s7767_s6 = smov 1   ;;  %s7768_s10 = smov 2   ;;  %s9457_s0 = inlined_call_operand.smem [shape: u32[31], index: -1, kind: input, shape index: {}] }
   0x1   :  { %s7816_s5 = sld [smem:[%s9457_s0]]   ;;  %s7769_s14 = smov 3  }
   0x2   :  { %s7821_s9 = sld [smem:[%s9457_s0 + %s7767_s6]]   ;;  %s7770_s18 = smov 4  }
   0x3   :  { %s7826_s13 = sld [smem:[%s9457_s0 + %s7768_s10]]   ;;  %s7771_s22 = smov 5  }
   0x4   :  { %s7831_s17 = sld [smem:[%s9457_s0 + %s7769_s14]]   ;;  %s7772_s26 = smov 6  }
   0x5   :  { %s7836_s21 = sld [smem:[%s9457_s0 + %s7770_s18]]   ;;  %s7773_s30 = smov 7  }
   0x6   :  { %s7841_s25 = sld [smem:[%s9457_s0 + %s7771_s22]]   ;;  %s7774_s4 = smov 8  }
   0x7   :  { %9465 = sst [smem:[#allocation3_spill]] %s7816_s5  ;;  %s7775_s10 = smov 9  }
   0x8   :  { %9466 = sst [smem:[#allocation4_spill]] %s7821_s9  ;;  %s7776_s15 = smov 10  }
   0x9   :  { %9467 = sst [smem:[#allocation5_spill]] %s7826_s13  ;;  %s7777_s20 = smov 11  }
   0xa   :  { %9468 = sst [smem:[#allocation6_spill]] %s7831_s17  ;;  %s7779_s1 = smov 13  }
   0xb   :  { %9469 = sst [smem:[#allocation7_spill]] %s7836_s21  ;;  %s7780_s7 = smov 14  }
   0xc   :  { %9470 = sst [smem:[#allocation8_spill]] %s7841_s25  ;;  %s7782_s22 = smov 16  }
   0xd   :  { %s7846_s29 = sld [smem:[%s9457_s0 + %s7772_s26]]   ;;  %s7778_s26 = smov 12  }
   0xe   :  { %s7851_s3 = sld [smem:[%s9457_s0 + %s7773_s30]]   ;;  %s7783_s28 = smov 17  }
   0xf   :  { %s7856_s8 = sld [smem:[%s9457_s0 + %s7774_s4]]   ;;  %s7970_s16 = smov 0  }
  0x10   :  { %s7861_s14 = sld [smem:[%s9457_s0 + %s7775_s10]]   ;;  %s7972_s18 = smov 0  }
  0x11   :  { %s7866_s19 = sld [smem:[%s9457_s0 + %s7776_s15]]   ;;  %s7781_s15 = smov 15  }
  0x12   :  { %s7871_s24 = sld [smem:[%s9457_s0 + %s7777_s20]]   ;;  %s7976_s23 = smov 0  }
  0x13   :  { %9471 = sst [smem:[#allocation9_spill]] %s7846_s29 }
  0x14   :  { %9472 = sst [smem:[#allocation10_spill]] %s7851_s3 }
  0x15   :  { %9473 = sst [smem:[#allocation11_spill]] %s7856_s8 }
  0x16   :  { %9474 = sst [smem:[#allocation12_spill]] %s7861_s14 }
  0x17   :  { %9475 = sst [smem:[#allocation13_spill]] %s7866_s19 }
  0x18   :  { %9476 = sst [smem:[#allocation14_spill]] %s7871_s24 }
  0x19   :  { %s7876_s30 = sld [smem:[%s9457_s0 + %s7778_s26]]  }
  0x1a   :  { %s7881_s6 = sld [smem:[%s9457_s0 + %s7779_s1]]  }
  0x1b   :  { %s7886_s12 = sld [smem:[%s9457_s0 + %s7780_s7]]   ;;  %s7784_s7 = smov 18  }
  0x1c   :  { %s7891_s20 = sld [smem:[%s9457_s0 + %s7781_s15]]   ;;  %s7785_s15 = smov 19  }
  0x1d   :  { %s7896_s27 = sld [smem:[%s9457_s0 + %s7782_s22]]   ;;  %s7786_s22 = smov 20  }
  0x1e   :  { %s7901_s4 = sld [smem:[%s9457_s0 + %s7783_s28]]   ;;  %s7787_s28 = smov 21  }
  0x1f   :  { %9477 = sst [smem:[#allocation15_spill]] %s7876_s30 }
  0x20   :  { %9478 = sst [smem:[#allocation16_spill]] %s7881_s6 }
  0x21   :  { %9479 = sst [smem:[#allocation17_spill]] %s7886_s12 }
  0x22   :  { %9480 = sst [smem:[#allocation18_spill]] %s7891_s20 }
  0x23   :  { %9481 = sst [smem:[#allocation19_spill]] %s7896_s27 }
  0x24   :  { %9482 = sst [smem:[#allocation20_spill]] %s7901_s4 }
  0x25   :  { %s7906_s12 = sld [smem:[%s9457_s0 + %s7784_s7]]   ;;  %s7788_s7 = smov 22  }
  0x26   :  { %s7911_s6 = sld [smem:[%s9457_s0 + %s7785_s15]]   ;;  %s7789_s15 = smov 23  }
  0x27   :  { %s7916_s30 = sld [smem:[%s9457_s0 + %s7786_s22]]   ;;  %s7790_s22 = smov 24  }
  0x28   :  { %s7921_s19 = sld [smem:[%s9457_s0 + %s7787_s28]]   ;;  %s7791_s28 = smov 25  }
  0x29   :  { %s7926_s24 = sld [smem:[%s9457_s0 + %s7788_s7]]   ;;  %s7792_s7 = smov 26  }
  0x2a   :  { %s7931_s8 = sld [smem:[%s9457_s0 + %s7789_s15]]   ;;  %s7793_s15 = smov 27  }
  0x2b   :  { %9483 = sst [smem:[#allocation21_spill]] %s7906_s12 }
  0x2c   :  { %9484 = sst [smem:[#allocation22_spill]] %s7911_s6 }
  0x2d   :  { %9485 = sst [smem:[#allocation23_spill]] %s7916_s30 }
  0x2e   :  { %9486 = sst [smem:[#allocation24_spill]] %s7921_s19 }
  0x2f   :  { %s7936_s3 = sld [smem:[%s9457_s0 + %s7790_s22]]   ;;  %s7794_s22 = smov 28  }
  0x30   :  { %s7941_s14 = sld [smem:[%s9457_s0 + %s7791_s28]]   ;;  %s7795_s28 = smov 29  }
  0x31   :  { %s7946_s29 = sld [smem:[%s9457_s0 + %s7792_s7]]   ;;  %s7796_s7 = smov 30  }
  0x32   :  { %s7951_s21 = sld [smem:[%s9457_s0 + %s7793_s15]]   ;;  %s7968_s15 = smov 0  }
  0x33   :  { %s7956_s17 = sld [smem:[%s9457_s0 + %s7794_s22]]   ;;  %s7974_s22 = smov 0  }
  0x34   :  { %s7961_s25 = sld [smem:[%s9457_s0 + %s7795_s28]]  }
  0x35   :  { %s7966_s13 = sld [smem:[%s9457_s0 + %s7796_s7]]  }
  0x36 LB: > { %9487 = sst [smem:[#allocation25_spill]] %s7757_s18  ;;  %s81_s0 = sadd.s32 1, %s7757_s18  ;;  %s7765_s23 = sphi %s7976_s23, %s72_s23   ;;  %s7761_s22 = sphi %s7974_s22, %s9520_s22   ;;  %s7757_s18 = sphi %s7972_s18, %s9519_s18   ;;  %s7753_s16 = sphi %s7970_s16, %s9518_s16   ;;  %s7749_s15 = sphi %s7968_s15, %s9517_s15  }
  0x37   : > { %9488 = sst [smem:[#allocation26_spill]] %s7761_s22  ;;  %s84_s26 = sadd.s32 1, %s7761_s22 }
  0x38   : > { %9489 = sst [smem:[#allocation27_spill]] %s7765_s23  ;;  %p82_p0 = scmp.ge.s32.totalorder %s81_s0, 2 }
  0x39   : > { %p6360_p1 = scmp.ge.s32.totalorder %s7765_s23, 1  ;;  %p988_p2 = scmp.lt.s32.totalorder %s7765_s23, 5 }
  0x3a   : > { %s9522_s0 = smov (%p82_p0, %s81_s0), 0  ;;  %s9524_s26 = smov (!%p82_p0, %s84_s26), %s7761_s22 }
  0x3b   : > { %9490 = sst [smem:[#allocation28_spill]] %s9522_s0  ;;  %p989_p3 = pnand %p6360_p1, %p988_p2 }
  0x3c   : > { %p86_p4 = scmp.ge.s32.totalorder %s9524_s26, 2  ;;  %p1136_p5 = scmp.lt.s32.totalorder (!%p989_p3), %s7753_s16, 1 }
  0x3d   : > { %992 = sbr.rel (%p989_p3) target bundleno = 5057 (0x13c1), region = 136  ;;  %s9492_s5 = sld [smem:[#allocation3_spill]] (!%p989_p3) }
  0x3e   : > { %s9526_s26 = smov (%p86_p4, %s9524_s26), 0  ;;  %s9493_s9 = sld [smem:[#allocation4_spill]] (!%p989_p3) }
  0x3f   : > { %9491 = sst [smem:[#allocation29_spill]] %s9526_s26  ;;  %s9494_s20 = sld [smem:[#allocation18_spill]] (!%p989_p3) }
  0x40   : > { %s9495_s4 = sld [smem:[#allocation20_spill]] (!%p989_p3)  ;;  %s9496_s27 = sld [smem:[#allocation19_spill]] (!%p989_p3) }
  0x41   : > { %p1146_p6 = scmp.lt.s32.totalorder (!%p989_p3), %s7749_s15, 1  ;;  %s9497_s12 = sld [smem:[#allocation21_spill]] (!%p989_p3) }
  0x42   : > { %s9498_s6 = sld [smem:[#allocation22_spill]] (!%p989_p3)  ;;  %s9499_s30 = sld [smem:[#allocation23_spill]] (!%p989_p3) }
  0x43   : > { %s9500_s19 = sld [smem:[#allocation24_spill]] (!%p989_p3)  ;;  %p6387_p7 = scmp.ne.s32.totalorder (!%p989_p3), %s7749_s15, 0 }
  0x44   : > { %s9528_s16 = smov (!%p1136_p5, %s7753_s16), 1  ;;  %vm1259_vm0 = vcmask (!%p6387_p7), 1041408   ;;  %v7797_v17 = vmov (!%p6387_p7), 0.0|0.0   ;;  %vm7798_vm1 = vmmov (!%p6387_p7), 1   ;;  %vm7799_vm3 = vmmov (!%p6387_p7), 0  }
  0x45   : > { %s8002_s28 = scalar_select %p1146_p6, %s7749_s15, 1 }
  0x46   : > { %s7431_s1 = smul.u32 160, %s9528_s16  ;;  %7335 = vmatprep.subr.bf16.mxu0 (!%p6387_p7), %v7797_v17  ;;  %7375 = vmatprep.subr.bf16.mxu1 (!%p6387_p7), %v7797_v17  ;;  %vm8082_vm2 = vmpackc.low (!%p6387_p7), %vm1259_vm0, %vm7798_vm1  ;;  %v7800_v20 = vmov (!%p6387_p7), 0.0   ;;  %vm1243_vm4 = vcmask (!%p6387_p7), 80896   ;;  %vm1736_vm5 = vcmask (!%p6387_p7), 130048   ;;  %vm2571_vm6 = vcmask (!%p6387_p7), 1046528  }
  0x47   : > { %s8004_s2 = smul.u32 40, %s9528_s16  ;;  %s6606_s7 = sshll.u32 %s8002_s28, 4  ;;  %6809 = vmatprep.mubr.msk.f32.mxu0 (!%p6387_p7), %vm7799_vm3, %v7800_v20  ;;  %6818 = vmatprep.mubr.msk.f32.mxu1 (!%p6387_p7), %vm7799_vm3, %v7800_v20  ;;  %vm3050_vm7 = vcmask (!%p6387_p7), 129024   ;;  %vm3250_vm8 = vcmask (!%p6387_p7), 1043456   ;;  %vm3317_vm9 = vcmask (!%p6387_p7), 261120   ;;  %vm3267_vm10 = vcmask (!%p6387_p7), 1042432  }
  0x48   : > { %s8008_s10 = scalar_lea.vmem %s9492_s5, %s7431_s1  ;;  %s7433_s11 = smul.u32 48, %s8002_s28  ;;  %vm3281_vm11 = vsmask.f32 (!%p6387_p7), 7424  ;;  %vm3855_vm12 = vcmask (!%p6387_p7), 1044480   ;;  %vm3559_vm13 = vsmask.f32 (!%p6387_p7), 6400 }
  0x49   : > { %s8013_s26 = scalar_lea.vmem %s9493_s9, %s8004_s2  ;;  %s7434_s0 = smul.u32 96, %s8002_s28  ;;  %v1238_v21 = vld [vmem:[%s8008_s10] sm:$0xff] (!%p6387_p7)  ;;  %v1241_v22 = vld [vmem:[%s8008_s10 + $0x18] sm:$0xff] (!%p6387_p7)  ;;  %v1239_v23 = vld [vmem:[%s8008_s10 + $0x8] sm:$0xff] (!%p6387_p7)  ;;  %vm3756_vm14 = vsmask.f32 (!%p6387_p7), 5376 }
  0x4a   : > { %s8017_s22 = scalar_lea.vmem %s9494_s20, %s7433_s11  ;;  %s8020_s16 = scalar_lea.vmem %s9495_s4, %s6606_s7  ;;  %v1217_v0 = vld [vmem:[%s8013_s26] sm:$0xff]  ;;  %v1218_v1 = vld [vmem:[%s8013_s26 + $0x8] sm:$0xff]  ;;  %v1219_v2 = vld [vmem:[%s8013_s26 + $0x10] sm:$0xff]  ;;  %vm3663_vm15 = vcmask (!%p6387_p7), 1045504   ;;  %vm3948_vm0 = vsmask.f32 (!%p6387_p7), 4352 }
  0x4b   : > { %s8026_s1 = scalar_lea.vmem %s9496_s27, %s7434_s0  ;;  %s6607_s5 = sshll.u32 %s8002_s28, 5  ;;  %v1220_v3 = vld [vmem:[%s8013_s26 + $0x18] sm:$0xff]  ;;  %v1221_v4 = vld [vmem:[%s8013_s26 + $0x20] sm:$0x7f]  ;;  %v1222_v5 = vsub.f32 1.0, %v1217_v0  ;;  %v1223_v6 = vsub.f32 1.0, %v1218_v1 }
  0x4c   : > { %s8032_s11 = scalar_lea.vmem %s9497_s12, %s6607_s5  ;;  %s8035_s4 = scalar_lea.vmem %s9498_s6, %s6607_s5  ;;  %v1224_v7 = vsub.f32 1.0, %v1219_v2  ;;  %v1225_v8 = vsub.f32 1.0, %v1220_v3  ;;  %v1226_v9 = vsub.f32 1.0, %v1221_v4  ;;  %v1242_v24 = vld [vmem:[%s8008_s10 + $0x20] sm:$0xff] (!%p6387_p7)  ;;  %v1240_v25 = vld [vmem:[%s8008_s10 + $0x10] sm:$0xff] (!%p6387_p7)  ;;  %v6394_v26 = vld [vmem:[%s8008_s10 + $0x28] sm:$0xff] (!%p6387_p7) }
  0x4d   : > { %s8038_s0 = scalar_lea.vmem %s9499_s30, %s6607_s5  ;;  %s8041_s9 = scalar_lea.vmem %s9500_s19, %s6607_s5  ;;  %v8043_v10 = vmul.f32 -1e+09, %v1222_v5  ;;  %v8045_v11 = vmul.f32 -1e+09, %v1223_v6  ;;  %v6395_v27 = vld [vmem:[%s8008_s10 + $0x30] sm:$0xff] (!%p6387_p7)  ;;  %v6396_v29 = vld [vmem:[%s8008_s10 + $0x38] sm:$0xff] (!%p6387_p7) }
  0x4e   : > { %s6611_s12 = sshll.u32 %s8002_s28, 6  ;;  %s8049_s20 = scalar_lea.vmem %s7931_s8, %s6606_s7  ;;  %v8051_v12 = vmul.f32 -1e+09, %v1224_v7  ;;  %v8053_v13 = vmul.f32 -1e+09, %v1225_v8  ;;  %v6405_v28 = vld [vmem:[%s8008_s10 + $0x50] sm:$0xff] (!%p6387_p7) }
  0x4f   : > { %s8056_s6 = scalar_lea.vmem %s7926_s24, %s6611_s12  ;;  %s8059_s27 = scalar_lea.vmem %s7936_s3, %s6607_s5  ;;  %v8061_v14 = vmul.f32 -1e+09, %v1226_v9  ;;  %v6406_v30 = vld [vmem:[%s8008_s10 + $0x58] sm:$0xff] (!%p6387_p7)  ;;  %v6397_v31 = vld [vmem:[%s8008_s10 + $0x40] sm:$0xff] (!%p6387_p7)  ;;  %v6398_v33 = vld [vmem:[%s8008_s10 + $0x48] sm:$0xff] (!%p6387_p7)  ;;  %vm4118_vm1 = vcmask (!%p6387_p7), 260096  }
  0x50   : > { %s8064_s30 = scalar_lea.vmem %s7941_s14, %s6607_s5  ;;  %s8067_s19 = scalar_lea.vmem %s7946_s29, %s6607_s5  ;;  %v6407_v32 = vld [vmem:[%s8008_s10 + $0x60] sm:$0xff] (!%p6387_p7)  ;;  %v6408_v34 = vld [vmem:[%s8008_s10 + $0x68] sm:$0xff] (!%p6387_p7)  ;;  %v6409_v35 = vld [vmem:[%s8008_s10 + $0x70] sm:$0xff] (!%p6387_p7) }
  0x51   : > { %s8071_s18 = scalar_lea.vmem %s7961_s25, %s8004_s2  ;;  %s8075_s23 = scalar_lea.vmem %s7966_s13, %s8004_s2  ;;  %v6416_v36 = vld [vmem:[%s8008_s10 + $0x78] sm:$0xff] (!%p6387_p7)  ;;  %v6417_v37 = vld [vmem:[%s8008_s10 + $0x80] sm:$0xff] (!%p6387_p7)  ;;  %v6418_v38 = vld [vmem:[%s8008_s10 + $0x88] sm:$0xff] (!%p6387_p7) }
  0x52   : > { %1235 = sbr.rel (%p6387_p7) target bundleno = 2298 (0x8fa), region = 140  ;;  %s9501_s28 = sld [smem:[#allocation5_spill]] (!%p6387_p7)  ;;  %v6419_v39 = vld [vmem:[%s8008_s10 + $0x90] sm:$0xff] (!%p6387_p7)  ;;  %v6420_v40 = vld [vmem:[%s8008_s10 + $0x98] sm:$0xff] (!%p6387_p7) }
  0x53   : > { %s9504_s5 = sld [smem:[#allocation8_spill]] (!%p6387_p7)  ;;  %s9505_s12 = sld [smem:[#allocation6_spill]] (!%p6387_p7) }
  0x54   : > { %s9506_s2 = sld [smem:[#allocation7_spill]] (!%p6387_p7)  ;;  %s9507_s7 = sld [smem:[#allocation9_spill]] (!%p6387_p7) }
  0x55   : > { %s9508_s10 = sld [smem:[#allocation12_spill]] (!%p6387_p7) }
  0x58   : > { %v1236_v15 = vld [vmem:[%s9501_s28] sm:$0xff] (!%p6387_p7)  ;;  %v1237_v16 = vld [vmem:[%s9501_s28 + $0x8] sm:$0x3] (!%p6387_p7) }
  0x59   : > { %v7336_v18 = vpack.c.bf16 %v1237_v16, %v1236_v15  ;;  %v6429_v41 = vld [vmem:[%s9504_s5 + $0x10] sm:$0xff]  ;;  %v6430_v42 = vld [vmem:[%s9504_s5 + $0x18] sm:$0xff] }
  0x5a   : > { %v7352_v43 = vpack.c.bf16 %v6430_v42, %v6429_v41 }
  0x5b   : > { %7338 = vmatpush3.bf16.msk.msra.mxu0 %vm8082_vm2, %v7336_v18  ;;  %7376 = vmatpush3.bf16.msk.msra.mxu1 %vm8082_vm2, %v7336_v18 }
  0x5c   : > { %7339 = vmatprep.subr.bf16.mxu1 %v7797_v17  ;;  %7343 = vmatprep.subr.bf16.mxu0 %v7797_v17 }
  0x5e   : > { %6810 = vmatmul.mubr.msk.f32.vlgmr.msra.gmra.mrb[0].mxu0 %vm1243_vm4, %v1238_v21  ;;  %6819 = vmatmul.mubr.msk.f32.vlgmr.msra.gmra.mrb[0].mxu1 %vm1243_vm4, %v1241_v22 }
  0x5f   : > { %7342 = vmatpush3.bf16.msk.msra.mxu1 %vm8082_vm2, %v7336_v18  ;;  %6812 = vmatprep.mubr.msk.f32.mxu0 %vm7799_vm3, %v7800_v20 }
  0x60   : > { %6821 = vmatprep.mubr.msk.f32.mxu1 %vm7799_vm3, %v7800_v20  ;;  %7347 = vmatprep.subr.bf16.mxu1 %v7797_v17 }
  0x61   : > { %7346 = vmatpush3.bf16.msk.msra.mxu0 %vm8082_vm2, %v7336_v18 }
  0x62   : > { %6813 = vmatmul.mubr.msk.f32.gmra.mrb[2].mxu0 %vm1243_vm4, %v1239_v23  ;;  %6822 = vmatmul.mubr.msk.f32.gmra.mrb[2].mxu1 %vm1243_vm4, %v1242_v24 }
  0x63   : > { %6815 = vmatprep.mubr.msk.f32.mxu0 %vm7799_vm3, %v7800_v20  ;;  %6828 = vmatprep.mubr.msk.f32.mxu1 %vm7799_vm3, %v7800_v20 }
  0x64   : > { %7351 = vmatprep.subr.bf16.mxu0 %v7797_v17 }
  0x66   : > { %6816 = vmatmul.mubr.msk.f32.gmra.mrb[4].mxu0 %vm1243_vm4, %v1240_v25  ;;  %6829 = vmatmul.mubr.msk.f32.vlgmr.msra.gmra.mrb[4].mxu1 %vm1243_vm4, %v6394_v26 }
  0x67   : > { %7350 = vmatpush3.bf16.msk.msra.mxu1 %vm8082_vm2, %v7336_v18  ;;  %6831 = vmatprep.mubr.msk.f32.mxu1 %vm7799_vm3, %v7800_v20  ;;  %vm4227_vm2 = vcmask 318464  }
  0x68   : > { %6847 = vmatprep.mubr.msk.f32.mxu0 %vm7799_vm3, %v7800_v20  ;;  %7360 = vmatprep.subr.bf16.mxu1 %v7797_v17 }
  0x6a   : > { %6832 = vmatmul.mubr.msk.f32.gmra.mrb[6].mxu1 %vm1243_vm4, %v6395_v27  ;;  %6848 = vmatmul.mubr.msk.f32.vlgmr.msra.gmra.mrb[6].mxu0 %vm1243_vm4, %v6405_v28 }
  0x6b   : > { %6834 = vmatprep.mubr.msk.f32.mxu1 %vm7799_vm3, %v7800_v20  ;;  %6850 = vmatprep.mubr.msk.f32.mxu0 %vm7799_vm3, %v7800_v20 }
  0x6c   : > { %7353 = vmatpush3.bf16.msra.mxu0 %v7352_v43 }
  0x6d   : > { %7354 = vmatprep.subr.bf16.mxu0 %v7797_v17 }
  0x6e   : > { %6835 = vmatmul.mubr.msk.f32.gmra.mrb[8].mxu1 %vm1243_vm4, %v6396_v29  ;;  %6851 = vmatmul.mubr.msk.f32.gmra.mrb[8].mxu0 %vm1243_vm4, %v6406_v30 }
  0x6f   : > { %6837 = vmatprep.mubr.msk.f32.mxu1 %vm7799_vm3, %v7800_v20  ;;  %6853 = vmatprep.mubr.msk.f32.mxu0 %vm7799_vm3, %v7800_v20 }
  0x72   : > { %6838 = vmatmul.mubr.msk.f32.gmra.mrb[10].mxu1 %vm1243_vm4, %v6397_v31  ;;  %6854 = vmatmul.mubr.msk.f32.gmra.mrb[10].mxu0 %vm1243_vm4, %v6407_v32 }
  0x73   : > { %6840 = vmatprep.mubr.msk.f32.mxu1 %vm7799_vm3, %v7800_v20  ;;  %6856 = vmatprep.mubr.msk.f32.mxu0 %vm7799_vm3, %v7800_v20 }
  0x76   : > { %6841 = vmatmul.mubr.msk.f32.gmra.mrb[12].mxu1 %vm1243_vm4, %v6398_v33  ;;  %6857 = vmatmul.mubr.msk.f32.gmra.mrb[12].mxu0 %vm1243_vm4, %v6408_v34 }
  0x77   : > { %6859 = vmatprep.mubr.msk.f32.mxu0 %vm7799_vm3, %v7800_v20  ;;  %6866 = vmatprep.mubr.msk.f32.mxu1 %vm7799_vm3, %v7800_v20 }
  0x7a   : > { %6860 = vmatmul.mubr.msk.f32.gmra.mrb[14].mxu0 %vm1243_vm4, %v6409_v35  ;;  %6867 = vmatmul.mubr.msk.f32.vlgmr.msra.gmra.mrb[14].mxu1 %vm1243_vm4, %v6416_v36 }
  0x7b   : > { %6869 = vmatprep.mubr.msk.f32.mxu1 %vm7799_vm3, %v7800_v20  ;;  %6885 = vmatprep.mubr.msk.f32.mxu0 %vm7799_vm3, %v7800_v20 }
  0x7c   : > { %7362 = vmatpush3.bf16.msra.mxu1 %v7352_v43 }
  0x7d   : > { %7363 = vmatprep.subr.bf16.mxu1 %v7797_v17 }
  0x7e   : > { %6870 = vmatmul.mubr.msk.f32.gmra.mrb[16].mxu1 %vm1243_vm4, %v6417_v37 }
  0x7f   : > { %6872 = vmatprep.mubr.msk.f32.mxu1 %vm7799_vm3, %v7800_v20 }
  0x82   : > { %6873 = vmatmul.mubr.msk.f32.gmra.mrb[18].mxu1 %vm1243_vm4, %v6418_v38 }
  0x83   : > { %6875 = vmatprep.mubr.msk.f32.mxu1 %vm7799_vm3, %v7800_v20 }
  0x86   : > { %6876 = vmatmul.mubr.msk.f32.gmra.mrb[20].mxu1 %vm1243_vm4, %v6419_v39 }
  0x87   : > { %6878 = vmatprep.mubr.msk.f32.mxu1 %vm7799_vm3, %v7800_v20 }
  0x8a   : > { %6879 = vmatmul.mubr.msk.f32.gmra.mrb[22].mxu1 %vm1243_vm4, %v6420_v40 }
  0x8b   : > { %6942 = vmatprep.mubr.msk.f32.mxu1 %vm7799_vm3, %v7800_v20 }
 0x131   : > { %v8189_v44 = vpop.f32.mrb[0].mxu1  ;;  %v8191_v45 = vpop.f32.mrb[0].mxu0 }
 0x132   : > { %v6820_v46 = vpop.f32.mrb[1].mxu1  ;;  %v6811_v47 = vpop.f32.mrb[1].mxu0  ;;  %v1686_v52 = vmul.f32 %v8191_v45, %v8191_v45  ;;  %v1689_v25 = vmul.f32 %v8189_v44, %v8189_v44 }
 0x135   : > { %v8193_v48 = vpop.f32.mrb[2].mxu1  ;;  %v8195_v49 = vpop.f32.mrb[2].mxu0 }
 0x136   : > { %v6823_v50 = vpop.f32.mrb[3].mxu1  ;;  %v6814_v51 = vpop.f32.mrb[3].mxu0  ;;  %v1687_v59 = vmul.f32 %v8195_v49, %v8195_v49  ;;  %v1690_v36 = vmul.f32 %v8193_v48, %v8193_v48 }
 0x139   : > { %v8199_v53 = vpop.f32.mrb[4].mxu1  ;;  %v8201_v54 = vpop.f32.mrb[4].mxu0 }
 0x13a   : > { %v1691_v55 = vadd.f32 %v8199_v53, %v8191_v45  ;;  %v1696_v56 = vmul.f32 %v8199_v53, %v8199_v53  ;;  %v6830_v57 = vpop.f32.mrb[5].mxu1  ;;  %v6817_v58 = vpop.f32.mrb[5].mxu0  ;;  %v1688_v5 = vmul.f32 %v8201_v54, %v8201_v54 }
 0x13c   : > { %v1701_v60 = vadd.f32 %v1696_v56, %v1686_v52 }
 0x13d   : > { %v8209_v61 = vpop.f32.mrb[6].mxu1  ;;  %v8211_v62 = vpop.f32.mrb[6].mxu0 }
 0x13e   : > { %v1692_v63 = vadd.f32 %v8209_v61, %v8195_v49  ;;  %v1697_v0 = vmul.f32 %v8209_v61, %v8209_v61  ;;  %v1706_v1 = vadd.f32 %v1691_v55, %v8211_v62  ;;  %v1711_v2 = vmul.f32 %v8211_v62, %v8211_v62  ;;  %v6833_v3 = vpop.f32.mrb[7].mxu1  ;;  %v6849_v4 = vpop.f32.mrb[7].mxu0 }
 0x140   : > { %v1702_v6 = vadd.f32 %v1697_v0, %v1687_v59  ;;  %v1716_v7 = vadd.f32 %v1711_v2, %v1701_v60 }
 0x141   : > { %v8222_v8 = vpop.f32.mrb[8].mxu1  ;;  %v8224_v9 = vpop.f32.mrb[8].mxu0 }
 0x142   : > { %v1693_v15 = vadd.f32 %v8222_v8, %v8201_v54  ;;  %v1698_v16 = vmul.f32 %v8222_v8, %v8222_v8  ;;  %v1707_v18 = vadd.f32 %v1692_v63, %v8224_v9  ;;  %v1712_v19 = vmul.f32 %v8224_v9, %v8224_v9  ;;  %v6836_v21 = vpop.f32.mrb[9].mxu1  ;;  %v6852_v22 = vpop.f32.mrb[9].mxu0 }
 0x144   : > { %v1703_v23 = vadd.f32 %v1698_v16, %v1688_v5  ;;  %v1717_v24 = vadd.f32 %v1712_v19, %v1702_v6 }
 0x145   : > { %v8235_v26 = vpop.f32.mrb[10].mxu1  ;;  %v8237_v27 = vpop.f32.mrb[10].mxu0 }
 0x146   : > { %v1694_v28 = vadd.f32 %v8235_v26, %v8189_v44  ;;  %v1699_v29 = vmul.f32 %v8235_v26, %v8235_v26  ;;  %v1708_v30 = vadd.f32 %v1693_v15, %v8237_v27  ;;  %v1713_v31 = vmul.f32 %v8237_v27, %v8237_v27  ;;  %v6839_v32 = vpop.f32.mrb[11].mxu1  ;;  %v6855_v33 = vpop.f32.mrb[11].mxu0 }
 0x148   : > { %v1704_v34 = vadd.f32 %v1699_v29, %v1689_v25  ;;  %v1718_v35 = vadd.f32 %v1713_v31, %v1703_v23 }
 0x149   : > { %v8248_v37 = vpop.f32.mrb[12].mxu1  ;;  %v8250_v38 = vpop.f32.mrb[12].mxu0 }
 0x14a   : > { %v1695_v39 = vadd.f32 %v8248_v37, %v8193_v48  ;;  %v1700_v40 = vmul.f32 %v8248_v37, %v8248_v37  ;;  %v1709_v41 = vadd.f32 %v1694_v28, %v8250_v38  ;;  %v1714_v42 = vmul.f32 %v8250_v38, %v8250_v38  ;;  %v6842_v43 = vpop.f32.mrb[13].mxu1  ;;  %v6858_v46 = vpop.f32.mrb[13].mxu0 }
 0x14c   : > { %v1705_v47 = vadd.f32 %v1700_v40, %v1690_v36  ;;  %v1719_v50 = vadd.f32 %v1714_v42, %v1704_v34 }
 0x14d   : > { %v8259_v51 = vpop.f32.mrb[14].mxu0  ;;  %v8261_v52 = vpop.f32.mrb[14].mxu1 }
 0x14e   : > { %v1710_v55 = vadd.f32 %v1695_v39, %v8259_v51  ;;  %v1715_v56 = vmul.f32 %v8259_v51, %v8259_v51  ;;  %v1721_v57 = vadd.f32 %v1706_v1, %v8261_v52  ;;  %v1726_v58 = vmul.f32 %v8261_v52, %v8261_v52  ;;  %v6868_v59 = vpop.f32.mrb[15].mxu1  ;;  %v6861_v60 = vpop.f32.mrb[15].mxu0 }
 0x150   : > { %v1720_v63 = vadd.f32 %v1715_v56, %v1705_v47  ;;  %v1731_v0 = vadd.f32 %v1726_v58, %v1716_v7  ;;  %v1737_v6 = vsel %vm1736_vm5, %v1721_v57, 0.0 }
 0x151   : > { %v8269_v2 = vpop.f32.mrb[16].mxu1 }
 0x152   : > { %v1722_v3 = vadd.f32 %v1707_v18, %v8269_v2  ;;  %v1727_v4 = vmul.f32 %v8269_v2, %v8269_v2  ;;  %v6871_v5 = vpop.f32.mrb[17].mxu1  ;;  %v1754_v21 = vsel %vm1736_vm5, %v1731_v0, 0.0 }
 0x154   : > { %v1732_v15 = vadd.f32 %v1727_v4, %v1717_v24  ;;  %v1738_v1 = vsel %vm1736_vm5, %v1722_v3, 0.0 }
 0x155   : > { %v1739_v16 = vadd.f32 %v1738_v1, %v1737_v6  ;;  %v8276_v19 = vpop.f32.mrb[18].mxu1 }
 0x156   : > { %v1755_v7 = vsel %vm1736_vm5, %v1732_v15, 0.0  ;;  %v1723_v22 = vadd.f32 %v1708_v30, %v8276_v19  ;;  %v1728_v18 = vmul.f32 %v8276_v19, %v8276_v19  ;;  %v6874_v23 = vpop.f32.mrb[19].mxu1 }
 0x157   : > { %v1756_v25 = vadd.f32 %v1755_v7, %v1754_v21 }
 0x158   : > { %v1733_v28 = vadd.f32 %v1728_v18, %v1718_v35  ;;  %v1740_v29 = vsel %vm1736_vm5, %v1723_v22, 0.0 }
 0x159   : > { %v1741_v24 = vadd.f32 %v1740_v29, %v1739_v16  ;;  %v8284_v31 = vpop.f32.mrb[20].mxu1 }
 0x15a   : > { %v1757_v32 = vsel %vm1736_vm5, %v1733_v28, 0.0  ;;  %v1724_v33 = vadd.f32 %v1709_v41, %v8284_v31  ;;  %v1729_v34 = vmul.f32 %v8284_v31, %v8284_v31  ;;  %v6877_v36 = vpop.f32.mrb[21].mxu1 }
 0x15b   : > { %v1758_v30 = vadd.f32 %v1757_v32, %v1756_v25 }
 0x15c   : > { %v1734_v39 = vadd.f32 %v1729_v34, %v1719_v50  ;;  %v1742_v40 = vsel %vm1736_vm5, %v1724_v33, 0.0 }
 0x15d   : > { %v1743_v42 = vadd.f32 %v1742_v40, %v1741_v24  ;;  %v1682_v43 = vpop.f32.mrb[22].mxu1 }
 0x15e   : > { %v1759_v35 = vsel %vm1736_vm5, %v1734_v39, 0.0  ;;  %v1725_v46 = vadd.f32 %v1710_v55, %v1682_v43  ;;  %v1730_v47 = vmul.f32 %v1682_v43, %v1682_v43  ;;  %v6880_v56 = vpop.f32.mrb[23].mxu1 }
 0x15f   : > { %v1760_v57 = vadd.f32 %v1759_v35, %v1758_v30 }
 0x160   : > { %v1735_v58 = vadd.f32 %v1730_v47, %v1720_v63  ;;  %v1744_v59 = vsel %vm1736_vm5, %v1725_v46, 0.0  ;;  %v2048_v46 = vld [vmem:[%s9504_s5] sm:$0xff]  ;;  %v2049_v47 = vld [vmem:[%s9504_s5 + $0x8] sm:$0xff] }
 0x161   : > { %v1745_v41 = vadd.f32 %v1744_v59, %v1743_v42 }
 0x162   : > { %v1761_v60 = vsel %vm1736_vm5, %v1735_v58, 0.0  ;;  %v8344_v58 = vpack.c.bf16 %v2049_v47, %v2048_v46 }
 0x163   : > { %v1746_v0 = vrot.slane %v1745_v41, 4  ;;  %v1762_v3 = vadd.f32 %v1761_v60, %v1760_v57  ;;  %v8342_v57 = vld [vmem:[%s9505_s12] ss:$0 sm:$0xff]  ;;  %s9509_s12 = sld [smem:[#allocation10_spill]] }
 0x165   : > { %v1747_v4 = vadd.f32 %v1746_v0, %v1745_v41  ;;  %v1763_v50 = vrot.slane %v1762_v3, 4 }
 0x167   : > { %v1748_v5 = vrot.slane %v1747_v4, 2  ;;  %v1764_v6 = vadd.f32 %v1763_v50, %v1762_v3  ;;  %v8351_v3 = vld [vmem:[%s9506_s2] ss:$0 sm:$0xff]  ;;  %s9510_s2 = sld [smem:[#allocation11_spill]] }
 0x169   : > { %v1749_v15 = vadd.f32 %v1748_v5, %v1747_v4  ;;  %v1765_v1 = vrot.slane %v1764_v6, 2 }
 0x16b   : > { %v1750_v16 = vrot.slane %v1749_v15, 1  ;;  %v1766_v21 = vadd.f32 %v1765_v1, %v1764_v6 }
 0x16d   : > { %v1751_v55 = vadd.f32 %v1750_v16, %v1749_v15  ;;  %v1767_v7 = vrot.slane %v1766_v21, 1 }
 0x16f   : > { %v8294_v22 = vmul.f32 0.006289308, %v1751_v55  ;;  %v1768_v63 = vadd.f32 %v1767_v7, %v1766_v21 }
 0x171   : > { %v1769_v18 = vmul.f32 0.006289308, %v1768_v63  ;;  %v1770_v23 = vmul.f32 %v8294_v22, %v8294_v22  ;;  %v1987_v25 = vsub.f32 %v1682_v43, %v8294_v22  ;;  %v1853_v28 = vsub.f32 %v8199_v53, %v8294_v22 }
 0x172   : > { %v1983_v29 = vsub.f32 %v8261_v52, %v8294_v22  ;;  %v1854_v24 = vsub.f32 %v8209_v61, %v8294_v22  ;;  %v1984_v32 = vsub.f32 %v8269_v2, %v8294_v22  ;;  %v1855_v33 = vsub.f32 %v8222_v8, %v8294_v22 }
 0x173   : > { %v1771_v34 = vsub.f32 %v1769_v18, %v1770_v23  ;;  %v1985_v36 = vsub.f32 %v8276_v19, %v8294_v22  ;;  %v1856_v53 = vsub.f32 %v8235_v26, %v8294_v22  ;;  %v1986_v52 = vsub.f32 %v8284_v31, %v8294_v22 }
 0x174   : > { %v1857_v61 = vsub.f32 %v8248_v37, %v8294_v22  ;;  %v1774_v2 = vsub.f32 %v8191_v45, %v8294_v22  ;;  %v1918_v8 = vsub.f32 %v8211_v62, %v8294_v22  ;;  %v1775_v19 = vsub.f32 %v8195_v49, %v8294_v22 }
 0x175   : > { %v1772_v30 = vadd.f32 1e-05, %v1771_v34  ;;  %v1919_v26 = vsub.f32 %v8224_v9, %v8294_v22  ;;  %v1776_v31 = vsub.f32 %v8201_v54, %v8294_v22  ;;  %v1920_v39 = vsub.f32 %v8237_v27, %v8294_v22 }
 0x176   : > { %v1777_v40 = vsub.f32 %v8189_v44, %v8294_v22  ;;  %v1921_v42 = vsub.f32 %v8250_v38, %v8294_v22  ;;  %v1778_v43 = vsub.f32 %v8193_v48, %v8294_v22  ;;  %v1922_v35 = vsub.f32 %v8259_v51, %v8294_v22 }
 0x177   : > { %7535 = vrsqrt.f32 %v1772_v30 }
 0x181   : > { %v8339_v56 = vpop.eup %7535 }
 0x182   : > { %v1992_v59 = vmul.f32 %v8339_v56, %v1987_v25  ;;  %v1858_v41 = vmul.f32 %v8339_v56, %v1853_v28  ;;  %v1988_v60 = vmul.f32 %v8339_v56, %v1983_v29  ;;  %v1859_v0 = vmul.f32 %v8339_v56, %v1854_v24 }
 0x183   : > { %v1989_v4 = vmul.f32 %v8339_v56, %v1984_v32  ;;  %v1860_v50 = vmul.f32 %v8339_v56, %v1855_v33  ;;  %v1990_v5 = vmul.f32 %v8339_v56, %v1985_v36  ;;  %v1861_v6 = vmul.f32 %v8339_v56, %v1856_v53 }
 0x184   : > { %v1997_v15 = vmul.f32 %v8342_v57, %v1992_v59  ;;  %v1863_v1 = vmul.f32 %v8342_v57, %v1858_v41  ;;  %v1993_v16 = vmul.f32 %v8342_v57, %v1988_v60  ;;  %v1864_v21 = vmul.f32 %v8342_v57, %v1859_v0 }
 0x185   : > { %v1994_v55 = vmul.f32 %v8342_v57, %v1989_v4  ;;  %v1865_v7 = vmul.f32 %v8342_v57, %v1860_v50  ;;  %v1995_v63 = vmul.f32 %v8342_v57, %v1990_v5  ;;  %v1866_v18 = vmul.f32 %v8342_v57, %v1861_v6 }
 0x186   : > { %v8366_v23 = vadd.f32 %v8351_v3, %v1997_v15  ;;  %v8369_v25 = vadd.f32 %v8351_v3, %v1863_v1  ;;  %v8372_v28 = vadd.f32 %v8351_v3, %v1993_v16  ;;  %v8375_v29 = vadd.f32 %v8351_v3, %v1864_v21 }
 0x187   : > { %v8378_v24 = vadd.f32 %v8351_v3, %v1994_v55  ;;  %v8381_v32 = vadd.f32 %v8351_v3, %v1865_v7  ;;  %v8384_v33 = vadd.f32 %v8351_v3, %v1995_v63  ;;  %v8387_v34 = vadd.f32 %v8351_v3, %v1866_v18 }
 0x188   : > { %v2007_v36 = vmul.f32 %v8366_v23, %v8366_v23  ;;  %v1873_v53 = vmul.f32 %v8369_v25, %v8369_v25  ;;  %v2003_v30 = vmul.f32 %v8372_v28, %v8372_v28  ;;  %v1874_v46 = vmul.f32 %v8375_v29, %v8375_v29 }
 0x189   : > { %v2004_v47 = vmul.f32 %v8378_v24, %v8378_v24  ;;  %v1875_v59 = vmul.f32 %v8381_v32, %v8381_v32  ;;  %v2005_v41 = vmul.f32 %v8384_v33, %v8384_v33  ;;  %v1876_v60 = vmul.f32 %v8387_v34, %v8387_v34 }
 0x18a   : > { %v1878_v0 = vmul.f32 %v1873_v53, %v8369_v25  ;;  %v2008_v4 = vmul.f32 %v2003_v30, %v8372_v28  ;;  %v1879_v50 = vmul.f32 %v1874_v46, %v8375_v29  ;;  %v1991_v5 = vmul.f32 %v8339_v56, %v1986_v52 }
 0x18b   : > { %v2009_v6 = vmul.f32 %v2004_v47, %v8378_v24  ;;  %v1880_v15 = vmul.f32 %v1875_v59, %v8381_v32  ;;  %v2010_v1 = vmul.f32 %v2005_v41, %v8384_v33  ;;  %v1881_v16 = vmul.f32 %v1876_v60, %v8387_v34 }
 0x18c   : > { %v1883_v21 = vmul.f32 0.044715, %v1878_v0  ;;  %v2013_v55 = vmul.f32 0.044715, %v2008_v4  ;;  %v1884_v7 = vmul.f32 0.044715, %v1879_v50  ;;  %v1996_v63 = vmul.f32 %v8342_v57, %v1991_v5 }
 0x18d   : > { %v2014_v18 = vmul.f32 0.044715, %v2009_v6  ;;  %v1885_v53 = vmul.f32 0.044715, %v1880_v15  ;;  %v2015_v30 = vmul.f32 0.044715, %v2010_v1  ;;  %v1862_v52 = vmul.f32 %v8339_v56, %v1857_v61 }
 0x18e   : > { %v1888_v46 = vadd.f32 %v1883_v21, %v8369_v25  ;;  %v2018_v47 = vadd.f32 %v2013_v55, %v8372_v28  ;;  %v1889_v59 = vadd.f32 %v1884_v7, %v8375_v29  ;;  %v1886_v41 = vmul.f32 0.044715, %v1881_v16 }
 0x18f   : > { %v2019_v60 = vadd.f32 %v2014_v18, %v8378_v24  ;;  %v1890_v0 = vadd.f32 %v1885_v53, %v8381_v32  ;;  %v2020_v4 = vadd.f32 %v2015_v30, %v8384_v33  ;;  %v8425_v50 = vadd.f32 %v8351_v3, %v1996_v63 }
 0x190   : > { %v1893_v5 = vmul.f32 0.7978846, %v1888_v46  ;;  %v2023_v37 = vmul.f32 0.7978846, %v2018_v47  ;;  %v1894_v6 = vmul.f32 0.7978846, %v1889_v59  ;;  %v1891_v61 = vadd.f32 %v1886_v41, %v8387_v34 }
 0x191   : > { %v2024_v15 = vmul.f32 0.7978846, %v2019_v60  ;;  %v1895_v1 = vmul.f32 0.7978846, %v1890_v0  ;;  %v2025_v21 = vmul.f32 0.7978846, %v2020_v4  ;;  %v2006_v16 = vmul.f32 %v8425_v50, %v8425_v50 }
 0x192   : > { %7537 = vtanh.f32 %v1893_v5  ;;  %v1896_v55 = vmul.f32 0.7978846, %v1891_v61  ;;  %v1867_v7 = vmul.f32 %v8342_v57, %v1862_v52  ;;  %v2012_v18 = vmul.f32 %v2007_v36, %v8366_v23 }
 0x193   : > { %7539 = vtanh.f32 %v2023_v37  ;;  %v2011_v63 = vmul.f32 %v2006_v16, %v8425_v50  ;;  %v1779_v53 = vmul.f32 %v8339_v56, %v1774_v2  ;;  %v1923_v30 = vmul.f32 %v8339_v56, %v1918_v8 }
 0x194   : > { %7541 = vtanh.f32 %v1894_v6  ;;  %v8442_v46 = vadd.f32 %v8351_v3, %v1867_v7  ;;  %v2017_v52 = vmul.f32 0.044715, %v2012_v18  ;;  %v1780_v36 = vmul.f32 %v8339_v56, %v1775_v19 }
 0x195   : > { %7543 = vtanh.f32 %v2024_v15  ;;  %v2016_v47 = vmul.f32 0.044715, %v2011_v63  ;;  %v1791_v45 = vmul.f32 %v8342_v57, %v1779_v53  ;;  %v1928_v2 = vmul.f32 %v8342_v57, %v1923_v30 }
 0x196   : > { %7545 = vtanh.f32 %v1895_v1  ;;  %v1877_v62 = vmul.f32 %v8442_v46, %v8442_v46  ;;  %v2022_v8 = vadd.f32 %v2017_v52, %v8366_v23  ;;  %v1792_v59 = vmul.f32 %v8342_v57, %v1780_v36 }
 0x197   : > { %7547 = vtanh.f32 %v2025_v21  ;;  %v2021_v41 = vadd.f32 %v2016_v47, %v8425_v50  ;;  %v8456_v49 = vadd.f32 %v8351_v3, %v1791_v45  ;;  %v8459_v19 = vadd.f32 %v8351_v3, %v1928_v2 }
 0x198   : > { %7549 = vtanh.f32 %v1896_v55  ;;  %v1882_v60 = vmul.f32 %v1877_v62, %v8442_v46  ;;  %v2027_v0 = vmul.f32 0.7978846, %v2022_v8  ;;  %v8463_v4 = vadd.f32 %v8351_v3, %v1792_v59 }
 0x199   : > { %v2026_v5 = vmul.f32 0.7978846, %v2021_v41  ;;  %v1808_v37 = vmul.f32 %v8456_v49, %v8456_v49  ;;  %v1938_v6 = vmul.f32 %v8459_v19, %v8459_v19  ;;  %v1924_v61 = vmul.f32 %v8339_v56, %v1919_v26 }
 0x19a   : > { %v1887_v15 = vmul.f32 0.044715, %v1882_v60  ;;  %7551 = vtanh.f32 %v2027_v0  ;;  %v1809_v1 = vmul.f32 %v8463_v4, %v8463_v4  ;;  %v1781_v21 = vmul.f32 %v8339_v56, %v1776_v31 }
 0x19b   : > { %7553 = vtanh.f32 %v2026_v5  ;;  %v1813_v16 = vmul.f32 %v1808_v37, %v8456_v49  ;;  %v1943_v55 = vmul.f32 %v1938_v6, %v8459_v19  ;;  %v1929_v7 = vmul.f32 %v8342_v57, %v1924_v61 }
 0x19c   : > { %v7538_v9 = vpop.eup %7537  ;;  %v1892_v26 = vadd.f32 %v1887_v15, %v8442_v46  ;;  %v1814_v18 = vmul.f32 %v1809_v1, %v8463_v4  ;;  %v1793_v63 = vmul.f32 %v8342_v57, %v1781_v21  ;;  %v1925_v54 = vmul.f32 %v8339_v56, %v1920_v39 }
 0x19d   : > { %v7540_v31 = vpop.eup %7539  ;;  %v1903_v53 = vadd.f32 1.0, %v7538_v9  ;;  %v1818_v30 = vmul.f32 0.044715, %v1813_v16  ;;  %v1948_v52 = vmul.f32 0.044715, %v1943_v55  ;;  %v8490_v36 = vadd.f32 %v8351_v3, %v1929_v7 }
 0x19e   : > { %v7542_v47 = vpop.eup %7541  ;;  %v2033_v45 = vadd.f32 1.0, %v7540_v31  ;;  %v1897_v2 = vmul.f32 0.7978846, %v1892_v26  ;;  %v1819_v62 = vmul.f32 0.044715, %v1814_v18  ;;  %v8493_v8 = vadd.f32 %v8351_v3, %v1793_v63 }
 0x19f   : > { %v7544_v59 = vpop.eup %7543  ;;  %v1908_v41 = vmul.f32 0.5, %v1903_v53  ;;  %v1904_v60 = vadd.f32 1.0, %v7542_v47  ;;  %v1823_v27 = vadd.f32 %v1818_v30, %v8456_v49  ;;  %v1953_v39 = vadd.f32 %v1948_v52, %v8459_v19 }
 0x1a0   : > { %v7546_v0 = vpop.eup %7545  ;;  %v2038_v5 = vmul.f32 0.5, %v2033_v45  ;;  %v2034_v37 = vadd.f32 1.0, %v7544_v59  ;;  %7555 = vtanh.f32 %v1897_v2  ;;  %v1824_v6 = vadd.f32 %v1819_v62, %v8463_v4 }
 0x1a1   : > { %v7548_v61 = vpop.eup %7547  ;;  %v1913_v15 = vmul.f32 %v1908_v41, %v8369_v25  ;;  %v1909_v1 = vmul.f32 0.5, %v1904_v60  ;;  %v1905_v21 = vadd.f32 1.0, %v7546_v0  ;;  %v1828_v16 = vmul.f32 0.7978846, %v1823_v27 }
 0x1a2   : > { %v7550_v55 = vpop.eup %7549  ;;  %v2043_v7 = vmul.f32 %v2038_v5, %v8372_v28  ;;  %v2039_v9 = vmul.f32 0.5, %v2034_v37  ;;  %v2035_v26 = vadd.f32 1.0, %v7548_v61  ;;  %v1958_v18 = vmul.f32 0.7978846, %v1953_v39 }
 0x1a3   : > { %6886 = vmatmul.mubr.msk.f32.vlgmr.msra.gmra.mrb[16].mxu0 %vm1736_vm5, %v1913_v15  ;;  %v1914_v63 = vmul.f32 %v1909_v1, %v8375_v29  ;;  %v1910_v31 = vmul.f32 0.5, %v1905_v21  ;;  %v1906_v53 = vadd.f32 1.0, %v7550_v55  ;;  %7557 = vtanh.f32 %v1828_v16 }
 0x1a4   : > { %v7552_v30 = vpop.eup %7551  ;;  %6943 = vmatmul.mubr.msk.f32.vlgmr.msra.gmra.mrb[24].mxu1 %vm1736_vm5, %v2043_v7  ;;  %6888 = vmatprep.mubr.msk.f32.mxu0 %vm7799_vm3, %v7800_v20  ;;  %v2044_v25 = vmul.f32 %v2039_v9, %v8378_v24  ;;  %v2040_v52 = vmul.f32 0.5, %v2035_v26  ;;  %7559 = vtanh.f32 %v1958_v18  ;;  %v1829_v28 = vmul.f32 0.7978846, %v1824_v6 }
 0x1a5   : > { %v7554_v47 = vpop.eup %7553  ;;  %7365 = vmatpush3.bf16.msra.mxu1 %v8344_v58  ;;  %6945 = vmatprep.mubr.msk.f32.mxu1 %vm7799_vm3, %v7800_v20  ;;  %v1915_v29 = vmul.f32 %v1910_v31, %v8381_v32  ;;  %v1911_v45 = vmul.f32 0.5, %v1906_v53  ;;  %v2037_v2 = vadd.f32 1.0, %v7552_v30  ;;  %v1939_v62 = vmul.f32 %v8490_v36, %v8490_v36 }
 0x1a6   : > { %v2045_v59 = vmul.f32 %v2040_v52, %v8384_v33  ;;  %v2036_v41 = vadd.f32 1.0, %v7554_v47  ;;  %7356 = vmatpush3.bf16.msra.mxu0 %v8344_v58  ;;  %7366 = vmatprep.subr.bf16.mxu1 %v7797_v17  ;;  %7561 = vtanh.f32 %v1829_v28  ;;  %v1810_v24 = vmul.f32 %v8493_v8, %v8493_v8 }
 0x1a7   : > { %6889 = vmatmul.mubr.msk.f32.gmra.mrb[18].mxu0 %vm1736_vm5, %v1914_v63  ;;  %v1916_v32 = vmul.f32 %v1911_v45, %v8387_v34  ;;  %v2042_v60 = vmul.f32 0.5, %v2037_v2  ;;  %v1944_v27 = vmul.f32 %v1939_v62, %v8490_v36  ;;  %v1930_v39 = vmul.f32 %v8342_v57, %v1925_v54  ;;  %7357 = vmatprep.subr.bf16.mxu0 %v7797_v17  ;;  %v6441_v45 = vld [vmem:[%s9504_s5 + $0x20] sm:$0xff]  ;;  %v6442_v2 = vld [vmem:[%s9504_s5 + $0x28] sm:$0xff] }
 0x1a8   : > { %6946 = vmatmul.mubr.msk.f32.gmra.mrb[26].mxu1 %vm1736_vm5, %v2044_v25  ;;  %6891 = vmatprep.mubr.msk.f32.mxu0 %vm7799_vm3, %v7800_v20  ;;  %v2041_v58 = vmul.f32 0.5, %v2036_v41  ;;  %v1815_v33 = vmul.f32 %v1810_v24, %v8493_v8  ;;  %v1782_v34 = vmul.f32 %v8339_v56, %v1777_v40  ;;  %v1926_v54 = vmul.f32 %v8339_v56, %v1921_v42 }
 0x1a9   : > { %6948 = vmatprep.mubr.msk.f32.mxu1 %vm7799_vm3, %v7800_v20  ;;  %v2047_v0 = vmul.f32 %v2042_v60, %v8366_v23  ;;  %v1949_v5 = vmul.f32 0.044715, %v1944_v27  ;;  %v8538_v37 = vadd.f32 %v8351_v3, %v1930_v39  ;;  %v1783_v44 = vmul.f32 %v8339_v56, %v1778_v43 }
 0x1aa   : > { %v7556_v40 = vpop.eup %7555  ;;  %v2046_v6 = vmul.f32 %v2041_v58, %v8425_v50  ;;  %v1820_v38 = vmul.f32 0.044715, %v1815_v33  ;;  %v1794_v42 = vmul.f32 %v8342_v57, %v1782_v34  ;;  %v1931_v61 = vmul.f32 %v8342_v57, %v1926_v54 }
 0x1ab   : > { %6892 = vmatmul.mubr.msk.f32.gmra.mrb[20].mxu0 %vm1736_vm5, %v1915_v29  ;;  %v1907_v23 = vadd.f32 1.0, %v7556_v40  ;;  %v1954_v15 = vadd.f32 %v1949_v5, %v8490_v36  ;;  %v1940_v1 = vmul.f32 %v8538_v37, %v8538_v37  ;;  %v1795_v48 = vmul.f32 %v8342_v57, %v1783_v44 }
 0x1ac   : > { %6949 = vmatmul.mubr.msk.f32.gmra.mrb[28].mxu1 %vm1736_vm5, %v2045_v59  ;;  %6894 = vmatprep.mubr.msk.f32.mxu0 %vm7799_vm3, %v7800_v20  ;;  %v1825_v43 = vadd.f32 %v1820_v38, %v8493_v8  ;;  %v8557_v50 = vadd.f32 %v8351_v3, %v1794_v42  ;;  %v8560_v21 = vadd.f32 %v8351_v3, %v1931_v61 }
 0x1ad   : > { %v7558_v16 = vpop.eup %7557  ;;  %6951 = vmatprep.mubr.msk.f32.mxu1 %vm7799_vm3, %v7800_v20  ;;  %v1912_v55 = vmul.f32 0.5, %v1907_v23  ;;  %v1959_v7 = vmul.f32 0.7978846, %v1954_v15  ;;  %v1945_v9 = vmul.f32 %v1940_v1, %v8538_v37  ;;  %v8566_v26 = vadd.f32 %v8351_v3, %v1795_v48 }
 0x1ae   : > { %v7560_v18 = vpop.eup %7559  ;;  %v1838_v63 = vadd.f32 1.0, %v7558_v16  ;;  %v1830_v31 = vmul.f32 0.7978846, %v1825_v43  ;;  %v1811_v53 = vmul.f32 %v8557_v50, %v8557_v50  ;;  %v1941_v30 = vmul.f32 %v8560_v21, %v8560_v21 }
 0x1af   : > { %6895 = vmatmul.mubr.msk.f32.gmra.mrb[22].mxu0 %vm1736_vm5, %v1916_v32  ;;  %v1917_v25 = vmul.f32 %v1912_v55, %v8442_v46  ;;  %v1968_v52 = vadd.f32 1.0, %v7560_v18  ;;  %7563 = vtanh.f32 %v1959_v7  ;;  %v1950_v28 = vmul.f32 0.044715, %v1945_v9 }
 0x1b0   : > { %v7562_v47 = vpop.eup %7561  ;;  %6952 = vmatmul.mubr.msk.f32.gmra.mrb[30].mxu1 %vm1736_vm5, %v2046_v6  ;;  %6897 = vmatprep.mubr.msk.f32.mxu0 %vm7799_vm3, %v7800_v20  ;;  %v1843_v29 = vmul.f32 0.5, %v1838_v63  ;;  %7565 = vtanh.f32 %v1830_v31  ;;  %v1816_v62 = vmul.f32 %v1811_v53, %v8557_v50  ;;  %v1946_v59 = vmul.f32 %v1941_v30, %v8560_v21 }
 0x1b1   : > { %6954 = vmatprep.mubr.msk.f32.mxu1 %vm7799_vm3, %v7800_v20  ;;  %v1973_v46 = vmul.f32 0.5, %v1968_v52  ;;  %v1839_v41 = vadd.f32 1.0, %v7562_v47  ;;  %v1955_v24 = vadd.f32 %v1950_v28, %v8538_v37  ;;  %v1812_v32 = vmul.f32 %v8566_v26, %v8566_v26 }
 0x1b2   : > { %v1848_v60 = vmul.f32 %v1843_v29, %v8456_v49  ;;  %v1821_v27 = vmul.f32 0.044715, %v1816_v62  ;;  %v1951_v39 = vmul.f32 0.044715, %v1946_v59  ;;  %v1927_v58 = vmul.f32 %v8339_v56, %v1922_v35 }
 0x1b3   : > { %6898 = vmatmul.mubr.msk.f32.gmra.mrb[24].mxu0 %vm1736_vm5, %v1917_v25  ;;  %v7358_v33 = vpack.c.bf16 %v6442_v2, %v6441_v45  ;;  %v1844_v34 = vmul.f32 0.5, %v1839_v41  ;;  %v1960_v54 = vmul.f32 0.7978846, %v1955_v24  ;;  %v1817_v5 = vmul.f32 %v1812_v32, %v8566_v26 }
 0x1b4   : > { %6955 = vmatmul.mubr.msk.f32.gmra.mrb[32].mxu1 %vm1736_vm5, %v2047_v0  ;;  %6904 = vmatprep.mubr.msk.f32.mxu0 %vm7799_vm3, %v7800_v20  ;;  %v1826_v49 = vadd.f32 %v1821_v27, %v8557_v50  ;;  %v1956_v44 = vadd.f32 %v1951_v39, %v8560_v21  ;;  %v1932_v51 = vmul.f32 %v8342_v57, %v1927_v58  ;;  %v2572_v56 = vrot.slane %v1848_v60, 1 }
 0x1b5   : > { %6961 = vmatprep.mubr.msk.f32.mxu1 %vm7799_vm3, %v7800_v20  ;;  %v1849_v22 = vmul.f32 %v1844_v34, %v8463_v4  ;;  %7567 = vtanh.f32 %v1960_v54  ;;  %v1822_v35 = vmul.f32 0.044715, %v1817_v5  ;;  %v8603_v0 = vmul.f32 %v1973_v46, %v8459_v19  ;;  %v6464_v34 = vld [vmem:[%s9507_s7 + $0x18] sm:$0xff] }
 0x1b6   : > { %v1831_v40 = vmul.f32 0.7978846, %v1826_v49  ;;  %v1961_v6 = vmul.f32 0.7978846, %v1956_v44  ;;  %v8606_v38 = vadd.f32 %v8351_v3, %v1932_v51 }
 0x1b7   : > { %6905 = vmatmul.mubr.msk.f32.vlgmr.msra.gmra.mrb[16].mxu0 %vm1736_vm5, %v1848_v60  ;;  %v2573_v57 = vrot.slane %v1849_v22, 1  ;;  %v1827_v42 = vadd.f32 %v1822_v35, %v8566_v26 }
 0x1b8   : > { %6962 = vmatmul.mubr.msk.f32.vlgmr.msra.gmra.mrb[24].mxu1 %vm1736_vm5, %v8603_v0  ;;  %6907 = vmatprep.mubr.msk.f32.mxu0 %vm7799_vm3, %v7800_v20  ;;  %7569 = vtanh.f32 %v1831_v40  ;;  %v1942_v19 = vmul.f32 %v8606_v38, %v8606_v38 }
 0x1b9   : > { %v7564_v4 = vpop.eup %7563  ;;  %7368 = vmatpush3.bf16.msra.mxu1 %v7358_v33  ;;  %6964 = vmatprep.mubr.msk.f32.mxu1 %vm7799_vm3, %v7800_v20  ;;  %7571 = vtanh.f32 %v1961_v6  ;;  %v1832_v3 = vmul.f32 0.7978846, %v1827_v42  ;;  %v8619_v61 = vsel %vm2571_vm6, %v2572_v56, %v2573_v57 }
 0x1ba   : > { %v7566_v23 = vpop.eup %7565  ;;  %v1969_v15 = vadd.f32 1.0, %v7564_v4  ;;  %v1947_v1 = vmul.f32 %v1942_v19, %v8606_v38  ;;  %7359 = vmatpush3.bf16.msra.mxu0 %v7358_v33  ;;  %7033 = vmatprep.subr.bf16.mxu1 %v7800_v20 }
 0x1bb   : > { %6908 = vmatmul.mubr.msk.f32.gmra.mrb[18].mxu0 %vm1736_vm5, %v1849_v22  ;;  %v1840_v48 = vadd.f32 1.0, %v7566_v23  ;;  %7573 = vtanh.f32 %v1832_v3  ;;  %7369 = vmatprep.subr.bf16.mxu0 %v7797_v17 }
 0x1bc   : > { %v1974_v43 = vmul.f32 0.5, %v1969_v15  ;;  %6910 = vmatprep.mubr.msk.f32.mxu0 %vm7799_vm3, %v7800_v20  ;;  %v1952_v16 = vmul.f32 0.044715, %v1947_v1 }
 0x1bd   : > { %v1845_v55 = vmul.f32 0.5, %v1840_v48 }
 0x1be   : > { %v1979_v7 = vmul.f32 %v1974_v43, %v8490_v36  ;;  %v1957_v9 = vadd.f32 %v1952_v16, %v8606_v38 }
 0x1bf   : > { %v7568_v18 = vpop.eup %7567  ;;  %v1850_v63 = vmul.f32 %v1845_v55, %v8493_v8 }
 0x1c0   : > { %6965 = vmatmul.mubr.msk.f32.gmra.mrb[26].mxu1 %vm1736_vm5, %v1979_v7  ;;  %v1970_v31 = vadd.f32 1.0, %v7568_v18  ;;  %v1962_v53 = vmul.f32 0.7978846, %v1957_v9 }
 0x1c1   : > { %6967 = vmatprep.mubr.msk.f32.mxu1 %vm7799_vm3, %v7800_v20  ;;  %6911 = vmatmul.mubr.msk.f32.gmra.mrb[20].mxu0 %vm1736_vm5, %v1850_v63  ;;  %v2575_v30 = vrot.slane %v1850_v63, 1 }
 0x1c2   : > { %v7570_v25 = vpop.eup %7569  ;;  %v1975_v52 = vmul.f32 0.5, %v1970_v31  ;;  %6913 = vmatprep.mubr.msk.f32.mxu0 %vm7799_vm3, %v7800_v20  ;;  %7575 = vtanh.f32 %v1962_v53 }
 0x1c3   : > { %v7572_v36 = vpop.eup %7571  ;;  %v1841_v28 = vadd.f32 1.0, %v7570_v25  ;;  %v2576_v8 = vsel %vm2571_vm6, %v2573_v57, %v2575_v30 }
 0x1c4   : > { %v1980_v47 = vmul.f32 %v1975_v52, %v8538_v37  ;;  %v1971_v29 = vadd.f32 1.0, %v7572_v36 }
 0x1c5   : > { %v7574_v45 = vpop.eup %7573  ;;  %v1846_v2 = vmul.f32 0.5, %v1841_v28 }
 0x1c6   : > { %6968 = vmatmul.mubr.msk.f32.gmra.mrb[28].mxu1 %vm1736_vm5, %v1980_v47  ;;  %v1976_v62 = vmul.f32 0.5, %v1971_v29  ;;  %v1842_v59 = vadd.f32 1.0, %v7574_v45 }
 0x1c7   : > { %6970 = vmatprep.mubr.msk.f32.mxu1 %vm7799_vm3, %v7800_v20  ;;  %v1851_v46 = vmul.f32 %v1846_v2, %v8557_v50 }
 0x1c8   : > { %v1981_v41 = vmul.f32 %v1976_v62, %v8560_v21  ;;  %v1847_v24 = vmul.f32 0.5, %v1842_v59 }
 0x1c9   : > { %6914 = vmatmul.mubr.msk.f32.gmra.mrb[22].mxu0 %vm1736_vm5, %v1851_v46  ;;  %v2577_v32 = vrot.slane %v1851_v46, 1 }
 0x1ca   : > { %6971 = vmatmul.mubr.msk.f32.gmra.mrb[30].mxu1 %vm1736_vm5, %v1981_v41  ;;  %6916 = vmatprep.mubr.msk.f32.mxu0 %vm7799_vm3, %v7800_v20  ;;  %v1852_v37 = vmul.f32 %v1847_v24, %v8566_v26  ;;  %v6463_v26 = vld [vmem:[%s9507_s7 + $0x10] sm:$0xff] }
 0x1cb   : > { %6973 = vmatprep.mubr.msk.f32.mxu1 %vm7799_vm3, %v7800_v20  ;;  %v2578_v60 = vsel %vm2571_vm6, %v2575_v30, %v2577_v32  ;;  %v7370_v54 = vpack.c.bf16 %v6464_v34, %v6463_v26 }
 0x1cc   : > { %v7576_v27 = vpop.eup %7575  ;;  %v2579_v50 = vrot.slane %v1852_v37, 1 }
 0x1cd   : > { %6917 = vmatmul.mubr.msk.f32.gmra.mrb[24].mxu0 %vm1736_vm5, %v1852_v37  ;;  %v1972_v21 = vadd.f32 1.0, %v7576_v27 }
 0x1ce   : > { %6923 = vmatprep.mubr.msk.f32.mxu0 %vm7799_vm3, %v7800_v20  ;;  %v2580_v39 = vsel %vm2571_vm6, %v2577_v32, %v2579_v50 }
 0x1cf   : > { %v1977_v58 = vmul.f32 0.5, %v1972_v21 }
 0x1d1   : > { %v1982_v33 = vmul.f32 %v1977_v58, %v8606_v38  ;;  %6924 = vmatmul.mubr.msk.f32.vlgmr.msra.gmra.mrb[16].mxu0 %vm1736_vm5, %v8603_v0 }
 0x1d2   : > { %6926 = vmatprep.mubr.msk.f32.mxu0 %vm7799_vm3, %v7800_v20  ;;  %7371 = vmatpush3.bf16.msra.mxu0 %v7370_v54 }
 0x1d3   : > { %6974 = vmatmul.mubr.msk.f32.gmra.mrb[32].mxu1 %vm1736_vm5, %v1982_v33  ;;  %7372 = vmatprep.subr.bf16.mxu0 %v7797_v17 }
 0x1d4   : > { %6980 = vmatprep.mubr.msk.f32.mxu1 %vm7799_vm3, %v7800_v20 }
 0x1d5   : > { %6927 = vmatmul.mubr.msk.f32.gmra.mrb[18].mxu0 %vm1736_vm5, %v1979_v7 }
 0x1d6   : > { %6929 = vmatprep.mubr.msk.f32.mxu0 %vm7799_vm3, %v7800_v20 }
 0x1d7   : > { %6981 = vmatmul.mubr.msk.f32.vlgmr.msra.gmra.mrb[24].mxu1 %vm1736_vm5, %v8619_v61 }
 0x1d8   : > { %6983 = vmatprep.mubr.msk.f32.mxu1 %vm7799_vm3, %v7800_v20 }
 0x1d9   : > { %6930 = vmatmul.mubr.msk.f32.gmra.mrb[20].mxu0 %vm1736_vm5, %v1980_v47 }
 0x1da   : > { %6932 = vmatprep.mubr.msk.f32.mxu0 %vm7799_vm3, %v7800_v20 }
 0x1db   : > { %6984 = vmatmul.mubr.msk.f32.gmra.mrb[26].mxu1 %vm1736_vm5, %v2576_v8 }
 0x1dc   : > { %6986 = vmatprep.mubr.msk.f32.mxu1 %vm7799_vm3, %v7800_v20 }
 0x1dd   : > { %6933 = vmatmul.mubr.msk.f32.gmra.mrb[22].mxu0 %vm1736_vm5, %v1981_v41 }
 0x1de   : > { %6935 = vmatprep.mubr.msk.f32.mxu0 %vm7799_vm3, %v7800_v20 }
 0x1df   : > { %6987 = vmatmul.mubr.msk.f32.gmra.mrb[28].mxu1 %vm1736_vm5, %v2578_v60 }
 0x1e0   : > { %6989 = vmatprep.mubr.msk.f32.mxu1 %vm7799_vm3, %v7800_v20 }
 0x1e1   : > { %6936 = vmatmul.mubr.msk.f32.gmra.mrb[24].mxu0 %vm1736_vm5, %v1982_v33 }
 0x1e2   : > { %6999 = vmatprep.mubr.msk.f32.mxu0 %vm7799_vm3, %v7800_v20 }
 0x1e3   : > { %6990 = vmatmul.mubr.msk.f32.gmra.mrb[30].mxu1 %vm1736_vm5, %v2580_v39 }
 0x1e4   : > { %6992 = vmatprep.mubr.msk.f32.mxu1 %vm7799_vm3, %v7800_v20 }
 0x1e7   : > { %6993 = vmatmul.mubr.msk.f32.gmra.mrb[32].mxu1 %vm1736_vm5, %v2579_v50 }
 0x1e8   : > { %7035 = vmatprep.mubr.msk.bf16.mxu1 %vm7799_vm3, %v7800_v20 }
 0x2a4   : > { %v8694_v5 = vpop.f32.mrb[16].mxu0 }
 0x2a5   : > { %v6925_v49 = vpop.f32.mrb[17].mxu0  ;;  %v2686_v17 = vmul.f32 %v8694_v5, %v8694_v5 }
 0x2a7   : > { %v2691_v15 = vmul.f32 %v2686_v17, %v8694_v5 }
 0x2a8   : > { %v8696_v44 = vpop.f32.mrb[18].mxu0 }
 0x2a9   : > { %v6928_v51 = vpop.f32.mrb[19].mxu0  ;;  %v2687_v1 = vmul.f32 %v8696_v44, %v8696_v44  ;;  %v2696_v53 = vmul.f32 0.044715, %v2691_v15 }
 0x2aa   : > { %v8698_v22 = vpop.f32.mrb[24].mxu1  ;;  %v2776_v51 = vld [vmem:[%s9507_s7] sm:$0xff] }
 0x2ab   : > { %v2731_v35 = vmul.f32 %v8698_v22, %v8698_v22  ;;  %v6982_v56 = vpop.f32.mrb[25].mxu1  ;;  %v2692_v30 = vmul.f32 %v2687_v1, %v8696_v44  ;;  %v2701_v2 = vadd.f32 %v2696_v53, %v8694_v5 }
 0x2ac   : > { %v8702_v0 = vpop.f32.mrb[20].mxu0 }
 0x2ad   : > { %v2736_v40 = vmul.f32 %v2731_v35, %v8698_v22  ;;  %v6931_v6 = vpop.f32.mrb[21].mxu0  ;;  %v2688_v25 = vmul.f32 %v8702_v0, %v8702_v0  ;;  %v2697_v62 = vmul.f32 0.044715, %v2692_v30  ;;  %v2706_v21 = vmul.f32 0.7978846, %v2701_v2  ;;  %v2777_v35 = vld [vmem:[%s9507_s7 + $0x8] sm:$0xff] }
 0x2ae   : > { %v8707_v38 = vpop.f32.mrb[26].mxu1 }
 0x2af   : > { %v2741_v57 = vmul.f32 0.044715, %v2736_v40  ;;  %v2732_v42 = vmul.f32 %v8707_v38, %v8707_v38  ;;  %v6985_v19 = vpop.f32.mrb[27].mxu1  ;;  %v2693_v59 = vmul.f32 %v2688_v25, %v8702_v0  ;;  %v2702_v39 = vadd.f32 %v2697_v62, %v8696_v44 }
 0x2b0   : > { %v8711_v4 = vpop.f32.mrb[22].mxu0 }
 0x2b1   : > { %v2746_v3 = vadd.f32 %v2741_v57, %v8698_v22  ;;  %v2737_v61 = vmul.f32 %v2732_v42, %v8707_v38  ;;  %v6934_v23 = vpop.f32.mrb[23].mxu0  ;;  %v2689_v24 = vmul.f32 %v8711_v4, %v8711_v4  ;;  %v2698_v58 = vmul.f32 0.044715, %v2693_v59 }
 0x2b2   : > { %v8718_v48 = vpop.f32.mrb[28].mxu1  ;;  %v2707_v17 = vmul.f32 0.7978846, %v2702_v39  ;;  %v7373_v57 = vpack.c.bf16 %v2777_v35, %v2776_v51 }
 0x2b3   : > { %v2751_v43 = vmul.f32 0.7978846, %v2746_v3  ;;  %v2742_v16 = vmul.f32 0.044715, %v2737_v61  ;;  %v2733_v55 = vmul.f32 %v8718_v48, %v8718_v48  ;;  %v6988_v7 = vpop.f32.mrb[29].mxu1  ;;  %v2694_v26 = vmul.f32 %v2689_v24, %v8711_v4 }
 0x2b4   : > { %v8722_v9 = vpop.f32.mrb[24].mxu0  ;;  %v2703_v19 = vadd.f32 %v2698_v58, %v8702_v0 }
 0x2b5   : > { %7577 = vtanh.f32 %v2751_v43  ;;  %v2747_v18 = vadd.f32 %v2742_v16, %v8707_v38  ;;  %v2738_v63 = vmul.f32 %v2733_v55, %v8718_v48  ;;  %v6937_v31 = vpop.f32.mrb[25].mxu0  ;;  %v2690_v54 = vmul.f32 %v8722_v9, %v8722_v9 }
 0x2b6   : > { %v8729_v52 = vpop.f32.mrb[30].mxu1  ;;  %v2699_v3 = vmul.f32 0.044715, %v2694_v26  ;;  %v2708_v55 = vmul.f32 0.7978846, %v2703_v19 }
 0x2b7   : > { %v2752_v36 = vmul.f32 0.7978846, %v2747_v18  ;;  %v2743_v28 = vmul.f32 0.044715, %v2738_v63  ;;  %v2734_v8 = vmul.f32 %v8729_v52, %v8729_v52  ;;  %v6991_v47 = vpop.f32.mrb[31].mxu1  ;;  %v2695_v61 = vmul.f32 %v2690_v54, %v8722_v9 }
 0x2b8   : > { %v2704_v7 = vadd.f32 %v2699_v3, %v8711_v4 }
 0x2b9   : > { %7579 = vtanh.f32 %v2752_v36  ;;  %v2748_v29 = vadd.f32 %v2743_v28, %v8718_v48  ;;  %v2739_v45 = vmul.f32 %v2734_v8, %v8729_v52  ;;  %v2700_v18 = vmul.f32 0.044715, %v2695_v61 }
 0x2ba   : > { %v8737_v46 = vpop.f32.mrb[32].mxu1  ;;  %v2709_v30 = vmul.f32 0.7978846, %v2704_v7 }
 0x2bb   : > { %v2753_v41 = vmul.f32 0.7978846, %v2748_v29  ;;  %v2744_v32 = vmul.f32 0.044715, %v2739_v45  ;;  %v2735_v37 = vmul.f32 %v8737_v46, %v8737_v46  ;;  %v6994_v60 = vpop.f32.mrb[33].mxu1  ;;  %v2705_v25 = vadd.f32 %v2700_v18, %v8722_v9 }
 0x2bd   : > { %7581 = vtanh.f32 %v2753_v41  ;;  %v2749_v27 = vadd.f32 %v2744_v32, %v8729_v52  ;;  %v2740_v50 = vmul.f32 %v2735_v37, %v8737_v46  ;;  %v2710_v29 = vmul.f32 0.7978846, %v2705_v25 }
 0x2bf   : > { %v7578_v33 = vpop.eup %7577  ;;  %v2754_v34 = vmul.f32 0.7978846, %v2749_v27  ;;  %v2745_v49 = vmul.f32 0.044715, %v2740_v50 }
 0x2c0   : > { %v2761_v56 = vadd.f32 1.0, %v7578_v33 }
 0x2c1   : > { %7583 = vtanh.f32 %v2754_v34  ;;  %v2750_v40 = vadd.f32 %v2745_v49, %v8737_v46 }
 0x2c2   : > { %7585 = vtanh.f32 %v2706_v21  ;;  %v2766_v6 = vmul.f32 0.5, %v2761_v56 }
 0x2c3   : > { %v7580_v42 = vpop.eup %7579  ;;  %v2755_v23 = vmul.f32 0.7978846, %v2750_v40 }
 0x2c4   : > { %v2771_v15 = vmul.f32 %v2766_v6, %v8698_v22  ;;  %v2762_v1 = vadd.f32 1.0, %v7580_v42 }
 0x2c5   : > { %7587 = vtanh.f32 %v2755_v23 }
 0x2c6   : > { %v2767_v43 = vmul.f32 0.5, %v2762_v1  ;;  %7000 = vmatmul.mubr.msk.f32.vlgmr.msra.gmra.mrb[26].mxu0 %vm1736_vm5, %v2771_v15  ;;  %7589 = vtanh.f32 %v2707_v17 }
 0x2c7   : > { %v7582_v16 = vpop.eup %7581  ;;  %7374 = vmatpush3.bf16.msra.mxu0 %v7373_v57  ;;  %7002 = vmatprep.mubr.msk.f32.mxu0 %vm7799_vm3, %v7800_v20  ;;  %7591 = vtanh.f32 %v2708_v55 }
 0x2c8   : > { %v2772_v63 = vmul.f32 %v2767_v43, %v8707_v38  ;;  %v2763_v31 = vadd.f32 1.0, %v7582_v16  ;;  %7063 = vmatprep.subr.bf16.mxu0 %v7800_v20  ;;  %7593 = vtanh.f32 %v2709_v30 }
 0x2c9   : > { %7595 = vtanh.f32 %v2710_v29 }
 0x2ca   : > { %v2768_v22 = vmul.f32 0.5, %v2763_v31  ;;  %7003 = vmatmul.mubr.msk.f32.gmra.mrb[28].mxu0 %vm1736_vm5, %v2772_v63 }
 0x2cb   : > { %v7584_v53 = vpop.eup %7583  ;;  %7005 = vmatprep.mubr.msk.f32.mxu0 %vm7799_vm3, %v7800_v20 }
 0x2cc   : > { %v7586_v36 = vpop.eup %7585  ;;  %v2773_v28 = vmul.f32 %v2768_v22, %v8718_v48  ;;  %v2764_v8 = vadd.f32 1.0, %v7584_v53 }
 0x2cd   : > { %v2716_v45 = vadd.f32 1.0, %v7586_v36 }
 0x2ce   : > { %v2769_v47 = vmul.f32 0.5, %v2764_v8  ;;  %7006 = vmatmul.mubr.msk.f32.gmra.mrb[30].mxu0 %vm1736_vm5, %v2773_v28 }
 0x2cf   : > { %v7588_v38 = vpop.eup %7587  ;;  %7008 = vmatprep.mubr.msk.f32.mxu0 %vm7799_vm3, %v7800_v20  ;;  %v2721_v48 = vmul.f32 0.5, %v2716_v45 }
 0x2d0   : > { %v2774_v2 = vmul.f32 %v2769_v47, %v8729_v52  ;;  %v2765_v62 = vadd.f32 1.0, %v7588_v38  ;;  %v7590_v59 = vpop.eup %7589 }
 0x2d1   : > { %v2717_v24 = vadd.f32 1.0, %v7590_v59  ;;  %v7592_v37 = vpop.eup %7591  ;;  %v2726_v52 = vmul.f32 %v2721_v48, %v8694_v5 }
 0x2d2   : > { %v2770_v41 = vmul.f32 0.5, %v2765_v62  ;;  %7009 = vmatmul.mubr.msk.f32.gmra.mrb[32].mxu0 %vm1736_vm5, %v2774_v2  ;;  %v2718_v27 = vadd.f32 1.0, %v7592_v37  ;;  %v7594_v50 = vpop.eup %7593 }
 0x2d3   : > { %7011 = vmatprep.mubr.msk.f32.mxu0 %vm7799_vm3, %v7800_v20  ;;  %v2722_v60 = vmul.f32 0.5, %v2717_v24  ;;  %v7596_v58 = vpop.eup %7595 }
 0x2d4   : > { %v2775_v32 = vmul.f32 %v2770_v41, %v8737_v46  ;;  %v2723_v39 = vmul.f32 0.5, %v2718_v27  ;;  %v2719_v46 = vadd.f32 1.0, %v7594_v50  ;;  %v2720_v26 = vadd.f32 1.0, %v7596_v58 }
 0x2d5   : > { %v2727_v21 = vmul.f32 %v2722_v60, %v8696_v44 }
 0x2d6   : > { %7012 = vmatmul.mubr.msk.f32.gmra.mrb[34].mxu0 %vm1736_vm5, %v2775_v32  ;;  %v2728_v5 = vmul.f32 %v2723_v39, %v8702_v0  ;;  %v2724_v33 = vmul.f32 0.5, %v2719_v46  ;;  %v2725_v44 = vmul.f32 0.5, %v2720_v26 }
 0x2d7   : > { %7018 = vmatprep.mubr.msk.f32.mxu0 %vm7799_vm3, %v7800_v20 }
 0x2d8   : > { %v2729_v34 = vmul.f32 %v2724_v33, %v8711_v4  ;;  %v2730_v54 = vmul.f32 %v2725_v44, %v8722_v9 }
 0x2da   : > { %7019 = vmatmul.mubr.msk.f32.vlgmr.msra.gmra.mrb[26].mxu0 %vm1736_vm5, %v2726_v52 }
 0x2db   : > { %7021 = vmatprep.mubr.msk.f32.mxu0 %vm7799_vm3, %v7800_v20 }
 0x2de   : > { %7022 = vmatmul.mubr.msk.f32.gmra.mrb[28].mxu0 %vm1736_vm5, %v2727_v21 }
 0x2df   : > { %7024 = vmatprep.mubr.msk.f32.mxu0 %vm7799_vm3, %v7800_v20 }
 0x2e2   : > { %7025 = vmatmul.mubr.msk.f32.gmra.mrb[30].mxu0 %vm1736_vm5, %v2728_v5 }
 0x2e3   : > { %7027 = vmatprep.mubr.msk.f32.mxu0 %vm7799_vm3, %v7800_v20 }
 0x2e6   : > { %7028 = vmatmul.mubr.msk.f32.gmra.mrb[32].mxu0 %vm1736_vm5, %v2729_v34 }
 0x2e7   : > { %7030 = vmatprep.mubr.msk.f32.mxu0 %vm7799_vm3, %v7800_v20 }
 0x2ea   : > { %7031 = vmatmul.mubr.msk.f32.gmra.mrb[34].mxu0 %vm1736_vm5, %v2730_v54 }
 0x2eb   : > { %7067 = vmatprep.mubr.msk.bf16.mxu0 %vm7799_vm3, %v7800_v20 }
 0x3ad   : > { %v2967_v0 = vpop.f32.mrb[26].mxu0 }
 0x3ae   : > { %v2991_v49 = vmul.f32 %v2967_v0, %v2967_v0  ;;  %v7020_v51 = vpop.f32.mrb[27].mxu0 }
 0x3b0   : > { %v2996_v35 = vmul.f32 %v2991_v49, %v2967_v0 }
 0x3b1   : > { %v2972_v56 = vpop.f32.mrb[28].mxu0 }
 0x3b2   : > { %v3001_v40 = vmul.f32 0.044715, %v2996_v35  ;;  %v2992_v4 = vmul.f32 %v2972_v56, %v2972_v56  ;;  %v7023_v6 = vpop.f32.mrb[29].mxu0 }
 0x3b4   : > { %v3006_v17 = vadd.f32 %v3001_v40, %v2967_v0  ;;  %v2997_v57 = vmul.f32 %v2992_v4, %v2972_v56 }
 0x3b5   : > { %v2977_v42 = vpop.f32.mrb[30].mxu0 }
 0x3b6   : > { %v3011_v19 = vmul.f32 0.7978846, %v3006_v17  ;;  %v3002_v3 = vmul.f32 0.044715, %v2997_v57  ;;  %v2993_v61 = vmul.f32 %v2977_v42, %v2977_v42  ;;  %v7026_v9 = vpop.f32.mrb[31].mxu0 }
 0x3b8   : > { %7597 = vtanh.f32 %v3011_v19  ;;  %v3007_v23 = vadd.f32 %v3002_v3, %v2972_v56  ;;  %v2998_v15 = vmul.f32 %v2993_v61, %v2977_v42 }
 0x3b9   : > { %v2982_v1 = vpop.f32.mrb[32].mxu0 }
 0x3ba   : > { %v3012_v43 = vmul.f32 0.7978846, %v3007_v23  ;;  %v3003_v16 = vmul.f32 0.044715, %v2998_v15  ;;  %v2994_v55 = vmul.f32 %v2982_v1, %v2982_v1  ;;  %v7029_v7 = vpop.f32.mrb[33].mxu0 }
 0x3bc   : > { %7599 = vtanh.f32 %v3012_v43  ;;  %v3008_v18 = vadd.f32 %v3003_v16, %v2977_v42  ;;  %v2999_v63 = vmul.f32 %v2994_v55, %v2982_v1 }
 0x3bd   : > { %v2987_v31 = vpop.f32.mrb[34].mxu0 }
 0x3be   : > { %v3013_v22 = vmul.f32 0.7978846, %v3008_v18  ;;  %v3004_v53 = vmul.f32 0.044715, %v2999_v63  ;;  %v2995_v30 = vmul.f32 %v2987_v31, %v2987_v31  ;;  %v7032_v25 = vpop.f32.mrb[35].mxu0 }
 0x3bf   : > { %v3211_v25 = vld [vmem:[%s8013_s26 + $0x8] sm:$0xff] }
 0x3c0   : > { %7601 = vtanh.f32 %v3013_v22  ;;  %v3009_v36 = vadd.f32 %v3004_v53, %v2982_v1  ;;  %v3000_v28 = vmul.f32 %v2995_v30, %v2987_v31  ;;  %v7518_v30 = vld [vmem:[%s9508_s10] sm:$0xff]   ;;  %s9512_s10 = sld [smem:[#allocation13_spill]] }
 0x3c1   : > { %7034 = vmatpush3.bf16.msra.mxu1 %v7518_v30 }
 0x3c2   : > { %v7598_v8 = vpop.eup %7597  ;;  %v3014_v47 = vmul.f32 0.7978846, %v3009_v36  ;;  %v3005_v38 = vmul.f32 0.044715, %v3000_v28  ;;  %7047 = vmatprep.subr.bf16.mxu1 %v7800_v20  ;;  %v7801_v36 = vmov 0   ;;  %v3210_v28 = vld [vmem:[%s8013_s26] sm:$0xff] }
 0x3c3   : > { %v3021_v29 = vadd.f32 1.0, %v7598_v8  ;;  %7517 = vset.pattern.permute.xlu1 %v7801_v36  ;;  %7516 = vset.pattern.permute.xlu0 %v7801_v36  ;;  %v3212_v8 = vld [vmem:[%s8013_s26 + $0x10] sm:$0xff] }
 0x3c4   : > { %7603 = vtanh.f32 %v3014_v47  ;;  %v3010_v45 = vadd.f32 %v3005_v38, %v2987_v31  ;;  %v3213_v47 = vld [vmem:[%s8013_s26 + $0x18] sm:$0xff]  ;;  %v3214_v38 = vld [vmem:[%s8013_s26 + $0x20] sm:$0x7f]  ;;  %s9511_s26 = sld [smem:[#allocation14_spill]] }
 0x3c5   : > { %v3026_v2 = vmul.f32 0.5, %v3021_v29 }
 0x3c6   : > { %v7600_v62 = vpop.eup %7599  ;;  %v3015_v59 = vmul.f32 0.7978846, %v3010_v45 }
 0x3c7   : > { %v3031_v41 = vmul.f32 %v3026_v2, %v2967_v0  ;;  %v3022_v48 = vadd.f32 1.0, %v7600_v62 }
 0x3c8   : > { %7605 = vtanh.f32 %v3015_v59 }
 0x3c9   : > { %v3038_v24 = vsel %vm1736_vm5, %v3031_v41, 0.0  ;;  %v3027_v32 = vmul.f32 0.5, %v3022_v48 }
 0x3ca   : > { %v7602_v37 = vpop.eup %7601  ;;  %3039 = vadd.xlane.f32.xlu0 %v3038_v24 }
 0x3cb   : > { %v3032_v52 = vmul.f32 %v3027_v32, %v2972_v56  ;;  %v3023_v60 = vadd.f32 1.0, %v7602_v37 }
 0x3cd   : > { %v3041_v27 = vsel %vm1736_vm5, %v3032_v52, 0.0  ;;  %v3028_v50 = vmul.f32 0.5, %v3023_v60 }
 0x3ce   : > { %v7604_v21 = vpop.eup %7603  ;;  %3042 = vadd.xlane.f32.xlu0 %v3041_v27 }
 0x3cf   : > { %v3033_v39 = vmul.f32 %v3028_v50, %v2977_v42  ;;  %v3024_v46 = vadd.f32 1.0, %v7604_v21 }
 0x3d1   : > { %v3044_v58 = vsel %vm1736_vm5, %v3033_v39, 0.0  ;;  %v3029_v5 = vmul.f32 0.5, %v3024_v46 }
 0x3d2   : > { %v7606_v33 = vpop.eup %7605  ;;  %3045 = vadd.xlane.f32.xlu1 %v3044_v58 }
 0x3d3   : > { %v3034_v26 = vmul.f32 %v3029_v5, %v2982_v1  ;;  %v3025_v34 = vadd.f32 1.0, %v7606_v33 }
 0x3d5   : > { %v3047_v44 = vsel %vm1736_vm5, %v3034_v26, 0.0  ;;  %v3030_v54 = vmul.f32 0.5, %v3025_v34  ;;  %v6476_v34 = vld [vmem:[%s9510_s2] ss:$0 sm:$0xff]  ;;  %s9514_s2 = sld [smem:[#allocation16_spill]] }
 0x3d6   : > { %3048 = vadd.xlane.f32.xlu1 %v3047_v44 }
 0x3d7   : > { %v3035_v0 = vmul.f32 %v3030_v54, %v2987_v31 }
 0x3d9   : > { %v3051_v49 = vsel %vm3050_vm7, %v3035_v0, 0.0 }
 0x3da   : > { %3052 = vadd.xlane.f32.xlu0 %v3051_v49 }
 0x457   : > { %v3040_v51 = vpop.xlane.xlu0 %3039 }
 0x458   : > { %v3055_v35 = vmul.f32 0.0625, %v3040_v51 }
 0x45a   : > { %v3060_v56 = vsub.f32 %v3031_v41, %v3055_v35 }
 0x45b   : > { %v3043_v40 = vpop.xlane.xlu0 %3042 }
 0x45c   : > { %v3056_v4 = vmul.f32 0.0625, %v3043_v40  ;;  %v3065_v6 = vmul.f32 %v3060_v56, %v3060_v56 }
 0x45e   : > { %v8802_v17 = vsub.f32 %v3032_v52, %v3056_v4  ;;  %v3070_v57 = vsel %vm1736_vm5, %v3065_v6, 0.0 }
 0x45f   : > { %v3046_v42 = vpop.xlane.xlu1 %3045  ;;  %3071 = vadd.xlane.f32.xlu1 %v3070_v57 }
 0x460   : > { %v3057_v19 = vmul.f32 0.0625, %v3046_v42  ;;  %v3066_v3 = vmul.f32 %v8802_v17, %v8802_v17 }
 0x462   : > { %v8807_v61 = vsub.f32 %v3033_v39, %v3057_v19  ;;  %v3073_v9 = vsel %vm1736_vm5, %v3066_v3, 0.0  ;;  %v6475_v39 = vld [vmem:[%s9509_s12] ss:$0 sm:$0xff]  ;;  %s9513_s12 = sld [smem:[#allocation15_spill]] }
 0x463   : > { %v3049_v23 = vpop.xlane.xlu1 %3048  ;;  %3074 = vadd.xlane.f32.xlu0 %v3073_v9 }
 0x464   : > { %v3058_v15 = vmul.f32 0.0625, %v3049_v23  ;;  %v3067_v1 = vmul.f32 %v8807_v61, %v8807_v61 }
 0x466   : > { %v3063_v43 = vsub.f32 %v3034_v26, %v3058_v15  ;;  %v3076_v16 = vsel %vm1736_vm5, %v3067_v1, 0.0  ;;  %v7519_v15 = vld [vmem:[%s9511_s26 + $0x10] sm:$0xff]   ;;  %v7520_v1 = vld [vmem:[%s9511_s26] sm:$0xff]  }
 0x467   : > { %3077 = vadd.xlane.f32.xlu1 %v3076_v16  ;;  %v3053_v55 = vpop.xlane.xlu0 %3052  ;;  %7064 = vmatpush3.bf16.msra.mxu0 %v7520_v1  ;;  %v7522_v16 = vld [vmem:[%s9511_s26 + $0x18] sm:$0xff]  }
 0x468   : > { %v3059_v7 = vmul.f32 0.0625, %v3053_v55  ;;  %v3068_v18 = vmul.f32 %v3063_v43, %v3063_v43  ;;  %7065 = vmatprep.subr.bf16.mxu0 %v7800_v20  ;;  %v6477_v55 = vld [vmem:[%s9512_s10] ss:$0 sm:$0xff]  ;;  %s9515_s10 = sld [smem:[#allocation17_spill]] }
 0x46a   : > { %v8813_v63 = vsub.f32 %v3035_v0, %v3059_v7  ;;  %v3079_v31 = vsel %vm1736_vm5, %v3068_v18, 0.0 }
 0x46b   : > { %3080 = vadd.xlane.f32.xlu0 %v3079_v31 }
 0x46c   : > { %v3069_v22 = vmul.f32 %v8813_v63, %v8813_v63 }
 0x46e   : > { %v3082_v53 = vsel %vm3050_vm7, %v3069_v22, 0.0 }
 0x46f   : > { %3083 = vadd.xlane.f32.xlu1 %v3082_v53 }
 0x480   : > { %3222 = vperm.xlu1 %7517, %v3211_v25  }
 0x481   : > { %3217 = vperm.xlu0 %7516, %v3210_v28  }
 0x484   : > { %3227 = vperm.xlu1 %7517, %v3212_v8  }
 0x488   : > { %3232 = vperm.xlu1 %7517, %v3213_v47  }
 0x48c   : > { %3237 = vperm.xlu1 %7517, %v3214_v38  }
 0x4ec   : > { %v3072_v29 = vpop.xlane.xlu1 %3071 }
 0x4ed   : > { %v3085_v45 = vmul.f32 0.0625, %v3072_v29 }
 0x4ef   : > { %v3090_v2 = vadd.f32 1e-05, %v3085_v45 }
 0x4f0   : > { %v3075_v62 = vpop.xlane.xlu0 %3074 }
 0x4f1   : > { %7607 = vrsqrt.f32 %v3090_v2  ;;  %v3086_v59 = vmul.f32 0.0625, %v3075_v62 }
 0x4f3   : > { %v3091_v41 = vadd.f32 1e-05, %v3086_v59 }
 0x4f4   : > { %v3078_v48 = vpop.xlane.xlu1 %3077 }
 0x4f5   : > { %7609 = vrsqrt.f32 %v3091_v41  ;;  %v3087_v24 = vmul.f32 0.0625, %v3078_v48  ;;  %v7524_v41 = vld [vmem:[%s9511_s26 + $0x30] sm:$0xff]  }
 0x4f7   : > { %v3092_v32 = vadd.f32 1e-05, %v3087_v24 }
 0x4f8   : > { %v3081_v37 = vpop.xlane.xlu0 %3080 }
 0x4f9   : > { %7611 = vrsqrt.f32 %v3092_v32  ;;  %v3088_v52 = vmul.f32 0.0625, %v3081_v37 }
 0x4fb   : > { %v7608_v60 = vpop.eup %7607  ;;  %v3093_v27 = vadd.f32 1e-05, %v3088_v52 }
 0x4fc   : > { %v3100_v50 = vmul.f32 %v7608_v60, %v3060_v56  ;;  %v3084_v21 = vpop.xlane.xlu1 %3083 }
 0x4fd   : > { %7613 = vrsqrt.f32 %v3093_v27  ;;  %v3089_v46 = vmul.f32 0.0625, %v3084_v21  ;;  %v7525_v21 = vld [vmem:[%s9511_s26 + $0x38] sm:$0xff]  }
 0x4fe   : > { %v3111_v33 = vmul.f32 %v6475_v39, %v3100_v50 }
 0x4ff   : > { %v7610_v58 = vpop.eup %7609  ;;  %v3094_v5 = vadd.f32 1e-05, %v3089_v46 }
 0x500   : > { %v3101_v26 = vmul.f32 %v7610_v58, %v8802_v17  ;;  %v3122_v0 = vadd.f32 %v6476_v34, %v3111_v33  ;;  %v3223_v7 = vpop.permute.xlu1 %3222 }
 0x501   : > { %7615 = vrsqrt.f32 %v3094_v5 }
 0x502   : > { %v3112_v44 = vmul.f32 %v6475_v39, %v3101_v26 }
 0x503   : > { %v7612_v54 = vpop.eup %7611 }
 0x504   : > { %v3123_v49 = vadd.f32 %v6476_v34, %v3112_v44  ;;  %v3102_v51 = vmul.f32 %v7612_v54, %v8807_v61  ;;  %v3228_v47 = vpop.permute.xlu1 %3227 }
 0x506   : > { %v3127_v35 = vpack.c.bf16 %v3123_v49, %v3122_v0  ;;  %v3113_v4 = vmul.f32 %v6475_v39, %v3102_v51 }
 0x507   : > { %v7614_v40 = vpop.eup %7613 }
 0x508   : > { %v3103_v56 = vmul.f32 %v7614_v40, %v3063_v43  ;;  %7036 = vmatmul.mubr.msk.bf16.vlgmr.msra.gmra.mrb[36].mxu1 %vm1736_vm5, %v3127_v35  ;;  %v3124_v57 = vadd.f32 %v6476_v34, %v3113_v4  ;;  %v7521_v43 = vld [vmem:[%s9511_s26 + $0x8] sm:$0xff]   ;;  %v3233_v60 = vpop.permute.xlu1 %3232 }
 0x509   : > { %7039 = vmatprep.mubr.msk.bf16.mxu1 %vm7799_vm3, %v7800_v20  ;;  %7048 = vmatpush3.bf16.msra.mxu1 %v7519_v15  ;;  %v7526_v15 = vld [vmem:[%s9511_s26 + $0x28] sm:$0xff]  }
 0x50a   : > { %v3114_v6 = vmul.f32 %v6475_v39, %v3103_v56  ;;  %7049 = vmatprep.subr.bf16.mxu1 %v7800_v20  ;;  %7066 = vmatpush3.bf16.msra.mxu0 %v7521_v43 }
 0x50b   : > { %v7616_v17 = vpop.eup %7615  ;;  %7095 = vmatprep.subr.bf16.mxu0 %v7800_v20 }
 0x50c   : > { %v3125_v42 = vadd.f32 %v6476_v34, %v3114_v6  ;;  %v3104_v19 = vmul.f32 %v7616_v17, %v8813_v63  ;;  %v3218_v63 = vpop.permute.xlu0 %3217  ;;  %v3238_v44 = vpop.permute.xlu1 %3237 }
 0x50d   : > { %7050 = vmatpush3.bf16.msra.mxu1 %v7522_v16 }
 0x50e   : > { %v3128_v3 = vpack.c.bf16 %v3125_v42, %v3124_v57  ;;  %v3115_v61 = vmul.f32 %v6475_v39, %v3104_v19  ;;  %7079 = vmatprep.subr.bf16.mxu1 %v7800_v20  ;;  %v7523_v57 = vld [vmem:[%s9511_s26 + $0x20] sm:$0xff]  }
 0x510   : > { %7040 = vmatmul.mubr.msk.bf16.gmra.mrb[40].mxu1 %vm1736_vm5, %v3128_v3  ;;  %v3126_v9 = vadd.f32 %v6476_v34, %v3115_v61 }
 0x511   : > { %7043 = vmatprep.mubr.msk.bf16.mxu1 %vm7799_vm3, %v7800_v20 }
 0x512   : > { %v3129_v23 = vpack.c.bf16 %v3126_v9, %v3126_v9 }
 0x518   : > { %7044 = vmatmul.mubr.msk.bf16.gmra.mrb[44].mxu1 %vm1736_vm5, %v3129_v23 }
 0x519   : > { %7051 = vmatprep.mubr.msk.bf16.mxu1 %vm7799_vm3, %v7800_v20 }
 0x5db   : > { %v3188_v18 = vpop.f32.mrb[36].mxu1 }
 0x5dc   : > { %v3189_v31 = vadd.f32 %v6477_v55, %v3188_v18  ;;  %v7037_v22 = vpop.f32.mrb[37].mxu1 }
 0x5dd   : > { %v3191_v53 = vpop.f32.mrb[38].mxu1 }
 0x5de   : > { %v3192_v30 = vadd.f32 %v6477_v55, %v3191_v53  ;;  %v8849_v25 = vmul.f32 %v3218_v63, %v3189_v31  ;;  %v7038_v36 = vpop.f32.mrb[39].mxu1 }
 0x5e0   : > { %v8851_v28 = vmul.f32 %v3223_v7, %v3192_v30  ;;  %v3251_v8 = vrot.slane %v8849_v25, 4 }
 0x5e2   : > { %v3252_v38 = vrot.slane %v8851_v28, 4  ;;  %v3266_v2 = vsel %vm3250_vm8, 0.0, %v3251_v8 }
 0x5e3   : > { %v3196_v29 = vpop.f32.mrb[40].mxu1 }
 0x5e4   : > { %v3253_v45 = vsel %vm3250_vm8, %v3251_v8, %v3252_v38  ;;  %v3197_v62 = vadd.f32 %v6477_v55, %v3196_v29  ;;  %v7041_v59 = vpop.f32.mrb[41].mxu1 }
 0x5e5   : > { %v8858_v48 = vpack.c.bf16 %v3253_v45, %v3266_v2  ;;  %v3199_v24 = vpop.f32.mrb[42].mxu1  ;;  %v7528_v45 = vld [vmem:[%s9511_s26 + $0x50] sm:$0xff]  }
 0x5e6   : > { %v8860_v32 = vmul.f32 %v3228_v47, %v3197_v62  ;;  %v3200_v37 = vadd.f32 %v6477_v55, %v3199_v24  ;;  %v7042_v52 = vpop.f32.mrb[43].mxu1 }
 0x5e7   : > { %7068 = vmatmul.mubr.msk.bf16.vlgmr.msra.gmra.mrb[36].mxu0 %vm3317_vm9, %v8858_v48  ;;  %v8871_v39 = vshll.u32 %v8858_v48, 16  ;;  %v8886_v40 = vshrl.u32 %v8858_v48, 16  ;;  %v3856_v31 = vrot.slane %v8858_v48, 3 }
 0x5e8   : > { %v3254_v27 = vrot.slane %v8860_v32, 4  ;;  %v8865_v50 = vmul.f32 %v3233_v60, %v3200_v37  ;;  %7071 = vmatprep.mubr.msk.bf16.mxu0 %vm7799_vm3, %v7800_v20  ;;  %7096 = vmatpush3.bf16.msra.mxu0 %v7524_v41  ;;  %v7529_v37 = vld [vmem:[%s9511_s26 + $0x58] sm:$0xff]  }
 0x5e9   : > { %7097 = vmatprep.subr.bf16.mxu0 %v7800_v20  ;;  %v3287_v49 = vrot.slane %v8871_v39, 1  ;;  %v3560_v18 = vrot.slane %v8886_v40, 1  ;;  %v3561_v63 = vrot.slane %v8871_v39, 2 }
 0x5ea   : > { %v3256_v46 = vrot.slane %v8865_v50, 4  ;;  %v3255_v5 = vsel %vm3250_vm8, %v3252_v38, %v3254_v27 }
 0x5eb   : > { %v3204_v58 = vpop.f32.mrb[44].mxu1  ;;  %v3288_v6 = vor.u32 %v3287_v49, %v8886_v40  ;;  %v3562_v29 = vor.u32 %v3561_v63, %v3560_v18  ;;  %v3758_v49 = vrot.slane %v8871_v39, 3  ;;  %v3949_v63 = vrot.slane %v8886_v40, 3 }
 0x5ec   : > { %v3257_v33 = vsel %vm3250_vm8, %v3254_v27, %v3256_v46  ;;  %v3205_v26 = vadd.f32 %v6477_v55, %v3204_v58  ;;  %v7045_v34 = vpop.f32.mrb[45].mxu1  ;;  %7098 = vmatpush3.bf16.msra.mxu0 %v7525_v21  ;;  %v7527_v58 = vld [vmem:[%s9511_s26 + $0x40] sm:$0xff]  }
 0x5ed   : > { %v8877_v54 = vpack.c.bf16 %v3257_v33, %v3255_v5  ;;  %v3207_v0 = vpop.f32.mrb[46].mxu1  ;;  %7127 = vmatprep.subr.bf16.mxu0 %v7800_v20  ;;  %v7530_v33 = vld [vmem:[%s9511_s26 + $0x48] sm:$0xff]  }
 0x5ee   : > { %v8881_v51 = vmul.f32 %v3238_v44, %v3205_v26  ;;  %v7046_v35 = vpop.f32.mrb[47].mxu1  ;;  %v3757_v0 = vrot.slane %v8886_v40, 2 }
 0x5ef   : > { %7072 = vmatmul.mubr.msk.bf16.gmra.mrb[40].mxu0 %vm3317_vm9, %v8877_v54  ;;  %v8889_v56 = vshll.u32 %v8877_v54, 16  ;;  %v8899_v19 = vshrl.u32 %v8877_v54, 16  ;;  %v3857_v55 = vrot.slane %v8877_v54, 3  ;;  %v3468_v21 = vrot.slane %v8877_v54, 1 }
 0x5f0   : > { %v3258_v4 = vrot.slane %v8881_v51, 4  ;;  %7075 = vmatprep.mubr.msk.bf16.mxu0 %vm7799_vm3, %v7800_v20 }
 0x5f1   : > { %v3292_v17 = vrot.slane %v8889_v56, 1  ;;  %v3563_v43 = vrot.slane %v8899_v19, 1  ;;  %v3564_v16 = vrot.slane %v8889_v56, 2  ;;  %v8927_v8 = vsel %vm3855_vm12, %v3856_v31, %v3857_v55 }
 0x5f2   : > { %v3259_v42 = vsel %vm3250_vm8, %v3256_v46, %v3258_v4  ;;  %v3268_v3 = vsel %vm3267_vm10, %v3258_v4, 0.0  ;;  %v3467_v46 = vrot.slane %v8858_v48, 1  ;;  %v3760_v26 = vrot.slane %v8899_v19, 2 }
 0x5f3   : > { %v3293_v61 = vsel %vm3281_vm11, %v3288_v6, %v3292_v17  ;;  %v3271_v9 = vpack.c.bf16 %v3259_v42, %v3259_v42  ;;  %v8906_v1 = vpack.c.bf16 %v3268_v3, %v3259_v42  ;;  %v3296_v22 = vor.u32 %v8899_v19, %v3292_v17  ;;  %v7532_v17 = vld [vmem:[%s9511_s26 + $0x70] sm:$0xff]  }
 0x5f4   : > { %7052 = vmatmul.mubr.msk.bf16.vlgmr.msra.gmra.mrb[48].mxu1 %vm3317_vm9, %v3293_v61  ;;  %v3565_v53 = vor.u32 %v3564_v16, %v3563_v43  ;;  %v3469_v5 = vsel %vm2571_vm6, %v3467_v46, %v3468_v21  ;;  %v3761_v34 = vrot.slane %v8889_v56, 3  ;;  %v3759_v6 = vor.u32 %v3758_v49, %v3757_v0  ;;  %v7533_v61 = vld [vmem:[%s9511_s26 + $0x78] sm:$0xff]   ;;  %v7531_v16 = vld [vmem:[%s9511_s26 + $0x60] sm:$0xff]  }
 0x5f5   : > { %7080 = vmatpush3.bf16.msra.mxu1 %v7523_v57  ;;  %7055 = vmatprep.mubr.msk.bf16.mxu1 %vm7799_vm3, %v7800_v20  ;;  %v3298_v23 = vshll.u32 %v3271_v9, 16  ;;  %v8920_v30 = vshrl.u32 %v8906_v1, 16  ;;  %v8923_v36 = vshll.u32 %v8906_v1, 16  ;;  %v3859_v38 = vrot.slane %v8906_v1, 3 }
 0x5f6   : > { %7081 = vmatprep.subr.bf16.mxu1 %v7800_v20  ;;  %v3566_v62 = vsel %vm3559_vm13, %v3562_v29, %v3565_v53  ;;  %v3302_v24 = vshrl.u32 %v3271_v9, 16  ;;  %v3470_v44 = vrot.slane %v8906_v1, 1  ;;  %v3762_v35 = vor.u32 %v3761_v34, %v3760_v26 }
 0x5f7   : > { %7076 = vmatmul.mubr.msk.bf16.gmra.mrb[44].mxu0 %vm3317_vm9, %v3271_v9  ;;  %v3300_v7 = vrot.slane %v3298_v23, 1  ;;  %v8938_v2 = vsel %vm3855_vm12, %v3857_v55, %v3859_v38  ;;  %v3570_v59 = vrot.slane %v8920_v30, 1  ;;  %v3573_v41 = vrot.slane %v8923_v36, 2 }
 0x5f8   : > { %7099 = vmatprep.mubr.msk.bf16.mxu0 %vm7799_vm3, %v7800_v20  ;;  %v3471_v4 = vsel %vm2571_vm6, %v3468_v21, %v3470_v44  ;;  %v3763_v57 = vsel %vm3756_vm14, %v3759_v6, %v3762_v35  ;;  %v3764_v42 = vrot.slane %v8920_v30, 2  ;;  %v3765_v3 = vrot.slane %v8923_v36, 3 }
 0x5f9   : > { %7082 = vmatpush3.bf16.msra.mxu1 %v7526_v15  ;;  %v3301_v47 = vsel %vm3281_vm11, %v3296_v22, %v3300_v7  ;;  %v3304_v52 = vor.u32 %v3302_v24, %v3300_v7  ;;  %v3574_v60 = vor.u32 %v3573_v41, %v3570_v59  ;;  %v3665_v15 = vrot.slane %v8877_v54, 2  ;;  %v7534_v7 = vld [vmem:[%s9511_s26 + $0x68] sm:$0xff]  }
 0x5fa   : > { %7111 = vmatprep.subr.bf16.mxu1 %v7800_v20  ;;  %v3766_v9 = vor.u32 %v3765_v3, %v3764_v42  ;;  %v3664_v43 = vrot.slane %v8858_v48, 2  ;;  %v3952_v18 = vrot.slane %v8899_v19, 3  ;;  %v3953_v54 = vrot.slane %v8889_v56, 4 }
 0x5fb   : > { %v3575_v27 = vsel %vm3559_vm13, %v3565_v53, %v3574_v60  ;;  %v3667_v48 = vrot.slane %v8906_v1, 2  ;;  %v3950_v31 = vrot.slane %v8871_v39, 4  ;;  %v3957_v29 = vrot.slane %v8923_v36, 4 }
 0x5fc   : > { %7056 = vmatmul.mubr.msk.bf16.gmra.mrb[52].mxu1 %vm3317_vm9, %v3301_v47  ;;  %v3767_v23 = vsel %vm3756_vm14, %v3762_v35, %v3766_v9  ;;  %v3666_v55 = vsel %vm3663_vm15, %v3664_v43, %v3665_v15  ;;  %v3954_v22 = vor.u32 %v3953_v54, %v3952_v18  ;;  %v3956_v47 = vrot.slane %v8920_v30, 3 }
 0x5fd   : > { %7059 = vmatprep.mubr.msk.bf16.mxu1 %vm7799_vm3, %v7800_v20  ;;  %v3668_v53 = vsel %vm3663_vm15, %v3665_v15, %v3667_v48  ;;  %v3951_v56 = vor.u32 %v3950_v31, %v3949_v63 }
 0x5fe   : > { %v3958_v39 = vor.u32 %v3957_v29, %v3956_v47 }
 0x5ff   : > { %7100 = vmatmul.mubr.msk.bf16.vlgmr.msra.gmra.mrb[48].mxu0 %vm3317_vm9, %v3566_v62  ;;  %v3955_v19 = vsel %vm3948_vm0, %v3951_v56, %v3954_v22 }
 0x600   : > { %7103 = vmatprep.mubr.msk.bf16.mxu0 %vm7799_vm3, %v7800_v20  ;;  %7128 = vmatpush3.bf16.msra.mxu0 %v7528_v45  ;;  %v3959_v40 = vsel %vm3948_vm0, %v3954_v22, %v3958_v39 }
 0x601   : > { %7129 = vmatprep.subr.bf16.mxu0 %v7800_v20 }
 0x604   : > { %7060 = vmatmul.mubr.msk.bf16.gmra.mrb[56].mxu1 %vm3317_vm9, %v3304_v52  ;;  %7130 = vmatpush3.bf16.msra.mxu0 %v7529_v37 }
 0x605   : > { %7083 = vmatprep.mubr.msk.bf16.mxu1 %vm7799_vm3, %v7800_v20  ;;  %7159 = vmatprep.subr.bf16.mxu0 %v7800_v20 }
 0x607   : > { %7104 = vmatmul.mubr.msk.bf16.gmra.mrb[52].mxu0 %vm3317_vm9, %v3575_v27 }
 0x608   : > { %7107 = vmatprep.mubr.msk.bf16.mxu0 %vm7799_vm3, %v7800_v20 }
 0x60c   : > { %7084 = vmatmul.mubr.msk.bf16.vlgmr.msra.gmra.mrb[60].mxu1 %vm3317_vm9, %v3469_v5 }
 0x60d   : > { %7112 = vmatpush3.bf16.msra.mxu1 %v7527_v58  ;;  %7087 = vmatprep.mubr.msk.bf16.mxu1 %vm7799_vm3, %v7800_v20 }
 0x60e   : > { %7113 = vmatprep.subr.bf16.mxu1 %v7800_v20 }
 0x60f   : > { %7108 = vmatmul.mubr.msk.bf16.gmra.mrb[56].mxu0 %vm3317_vm9, %v3574_v60 }
 0x610   : > { %7131 = vmatprep.mubr.msk.bf16.mxu0 %vm7799_vm3, %v7800_v20 }
 0x611   : > { %7114 = vmatpush3.bf16.msra.mxu1 %v7530_v33 }
 0x612   : > { %7143 = vmatprep.subr.bf16.mxu1 %v7800_v20 }
 0x614   : > { %7088 = vmatmul.mubr.msk.bf16.gmra.mrb[64].mxu1 %vm3317_vm9, %v3471_v4 }
 0x615   : > { %7091 = vmatprep.mubr.msk.bf16.mxu1 %vm7799_vm3, %v7800_v20 }
 0x617   : > { %7132 = vmatmul.mubr.msk.bf16.vlgmr.msra.gmra.mrb[60].mxu0 %vm3317_vm9, %v3763_v57 }
 0x618   : > { %7135 = vmatprep.mubr.msk.bf16.mxu0 %vm7799_vm3, %v7800_v20  ;;  %7160 = vmatpush3.bf16.msra.mxu0 %v7532_v17 }
 0x619   : > { %7161 = vmatprep.subr.bf16.mxu0 %v7800_v20 }
 0x61c   : > { %7092 = vmatmul.mubr.msk.bf16.gmra.mrb[68].mxu1 %vm3317_vm9, %v3470_v44  ;;  %7162 = vmatpush3.bf16.msra.mxu0 %v7533_v61 }
 0x61d   : > { %7115 = vmatprep.mubr.msk.bf16.mxu1 %vm7799_vm3, %v7800_v20 }
 0x61f   : > { %7136 = vmatmul.mubr.msk.bf16.gmra.mrb[64].mxu0 %vm3317_vm9, %v3767_v23 }
 0x620   : > { %7139 = vmatprep.mubr.msk.bf16.mxu0 %vm7799_vm3, %v7800_v20 }
 0x624   : > { %7116 = vmatmul.mubr.msk.bf16.vlgmr.msra.gmra.mrb[72].mxu1 %vm3317_vm9, %v3666_v55 }
 0x625   : > { %7144 = vmatpush3.bf16.msra.mxu1 %v7531_v16  ;;  %7119 = vmatprep.mubr.msk.bf16.mxu1 %vm7799_vm3, %v7800_v20 }
 0x626   : > { %7145 = vmatprep.subr.bf16.mxu1 %v7800_v20 }
 0x627   : > { %7140 = vmatmul.mubr.msk.bf16.gmra.mrb[68].mxu0 %vm3317_vm9, %v3766_v9 }
 0x628   : > { %7163 = vmatprep.mubr.msk.bf16.mxu0 %vm7799_vm3, %v7800_v20 }
 0x629   : > { %7146 = vmatpush3.bf16.msra.mxu1 %v7534_v7 }
 0x62c   : > { %7120 = vmatmul.mubr.msk.bf16.gmra.mrb[76].mxu1 %vm3317_vm9, %v3668_v53 }
 0x62d   : > { %7123 = vmatprep.mubr.msk.bf16.mxu1 %vm7799_vm3, %v7800_v20 }
 0x62f   : > { %7164 = vmatmul.mubr.msk.bf16.vlgmr.msra.gmra.mrb[72].mxu0 %vm3317_vm9, %v3955_v19 }
 0x630   : > { %7167 = vmatprep.mubr.msk.bf16.mxu0 %vm7799_vm3, %v7800_v20 }
 0x634   : > { %7124 = vmatmul.mubr.msk.bf16.gmra.mrb[80].mxu1 %vm3317_vm9, %v3667_v48 }
 0x635   : > { %7147 = vmatprep.mubr.msk.bf16.mxu1 %vm7799_vm3, %v7800_v20 }
 0x637   : > { %7168 = vmatmul.mubr.msk.bf16.gmra.mrb[76].mxu0 %vm3317_vm9, %v3959_v40 }
 0x638   : > { %7171 = vmatprep.mubr.msk.bf16.mxu0 %vm7799_vm3, %v7800_v20 }
 0x63c   : > { %7148 = vmatmul.mubr.msk.bf16.vlgmr.msra.gmra.mrb[84].mxu1 %vm3317_vm9, %v8927_v8 }
 0x63d   : > { %7151 = vmatprep.mubr.msk.bf16.mxu1 %vm7799_vm3, %v7800_v20 }
 0x63f   : > { %7172 = vmatmul.mubr.msk.bf16.gmra.mrb[80].mxu0 %vm3317_vm9, %v3958_v39 }
 0x644   : > { %7152 = vmatmul.mubr.msk.bf16.gmra.mrb[88].mxu1 %vm3317_vm9, %v8938_v2 }
 0x645   : > { %7155 = vmatprep.mubr.msk.bf16.mxu1 %vm7799_vm3, %v7800_v20 }
 0x64c   : > { %7156 = vmatmul.mubr.msk.bf16.gmra.mrb[92].mxu1 %vm3317_vm9, %v3859_v38 }
 0x6ba   : > { %v3435_v30 = vpop.f32.mrb[36].mxu0 }
 0x6bb   : > { %v7069_v36 = vpop.f32.mrb[37].mxu0 }
 0x6bc   : > { %v3438_v45 = vpop.f32.mrb[38].mxu0 }
 0x6bd   : > { %v7070_v62 = vpop.f32.mrb[39].mxu0 }
 0x6c2   : > { %v3443_v8 = vpop.f32.mrb[40].mxu0 }
 0x6c3   : > { %v7073_v59 = vpop.f32.mrb[41].mxu0 }
 0x6c4   : > { %v3446_v41 = vpop.f32.mrb[42].mxu0 }
 0x6c5   : > { %v7074_v24 = vpop.f32.mrb[43].mxu0 }
 0x6c7   : > { %v3361_v37 = vpop.f32.mrb[48].mxu1 }
 0x6c8   : > { %v3436_v52 = vadd.f32 %v3435_v30, %v3361_v37  ;;  %v7053_v60 = vpop.f32.mrb[49].mxu1 }
 0x6c9   : > { %v3364_v27 = vpop.f32.mrb[50].mxu1 }
 0x6ca   : > { %v3439_v2 = vadd.f32 %v3438_v45, %v3364_v27  ;;  %v7054_v21 = vpop.f32.mrb[51].mxu1  ;;  %v3451_v46 = vpop.f32.mrb[44].mxu0 }
 0x6cb   : > { %v7077_v20 = vpop.f32.mrb[45].mxu0 }
 0x6cc   : > { %v3454_v58 = vpop.f32.mrb[46].mxu0 }
 0x6cd   : > { %v7078_v1 = vpop.f32.mrb[47].mxu0 }
 0x6cf   : > { %v3369_v5 = vpop.f32.mrb[52].mxu1 }
 0x6d0   : > { %v3444_v38 = vadd.f32 %v3443_v8, %v3369_v5  ;;  %v7057_v33 = vpop.f32.mrb[53].mxu1 }
 0x6d1   : > { %v3372_v26 = vpop.f32.mrb[54].mxu1 }
 0x6d2   : > { %v3447_v34 = vadd.f32 %v3446_v41, %v3372_v26  ;;  %v7058_v44 = vpop.f32.mrb[55].mxu1  ;;  %v3631_v0 = vpop.f32.mrb[48].mxu0 }
 0x6d3   : > { %v7101_v49 = vpop.f32.mrb[49].mxu0 }
 0x6d4   : > { %v3634_v35 = vpop.f32.mrb[50].mxu0 }
 0x6d5   : > { %v7102_v4 = vpop.f32.mrb[51].mxu0 }
 0x6d7   : > { %v3377_v6 = vpop.f32.mrb[56].mxu1 }
 0x6d8   : > { %v3452_v17 = vadd.f32 %v3451_v46, %v3377_v6  ;;  %v7061_v57 = vpop.f32.mrb[57].mxu1 }
 0x6d9   : > { %v3380_v42 = vpop.f32.mrb[58].mxu1 }
 0x6da   : > { %v7062_v3 = vpop.f32.mrb[59].mxu1  ;;  %v3639_v61 = vpop.f32.mrb[52].mxu0 }
 0x6db   : > { %v7105_v9 = vpop.f32.mrb[53].mxu0 }
 0x6dc   : > { %v3642_v23 = vpop.f32.mrb[54].mxu0 }
 0x6dd   : > { %v7106_v15 = vpop.f32.mrb[55].mxu0 }
 0x6df   : > { %v3527_v43 = vpop.f32.mrb[60].mxu1 }
 0x6e0   : > { %v3549_v16 = vadd.f32 %v3527_v43, %v3436_v52  ;;  %v7085_v55 = vpop.f32.mrb[61].mxu1 }
 0x6e1   : > { %v3530_v7 = vpop.f32.mrb[62].mxu1 }
 0x6e2   : > { %v3550_v18 = vadd.f32 %v3530_v7, %v3439_v2  ;;  %v7086_v54 = vpop.f32.mrb[63].mxu1  ;;  %v3647_v48 = vpop.f32.mrb[56].mxu0  ;;  %v3653_v63 = vadd.f32 %v3631_v0, %v3549_v16 }
 0x6e3   : > { %v7109_v31 = vpop.f32.mrb[57].mxu0 }
 0x6e4   : > { %v3650_v22 = vpop.f32.mrb[58].mxu0  ;;  %v3654_v53 = vadd.f32 %v3634_v35, %v3550_v18 }
 0x6e5   : > { %v7110_v56 = vpop.f32.mrb[59].mxu0 }
 0x6e7   : > { %v3535_v19 = vpop.f32.mrb[64].mxu1 }
 0x6e8   : > { %v3551_v47 = vadd.f32 %v3535_v19, %v3444_v38  ;;  %v7089_v29 = vpop.f32.mrb[65].mxu1 }
 0x6e9   : > { %v3538_v39 = vpop.f32.mrb[66].mxu1 }
 0x6ea   : > { %v3552_v40 = vadd.f32 %v3538_v39, %v3447_v34  ;;  %v7090_v30 = vpop.f32.mrb[67].mxu1  ;;  %v3823_v36 = vpop.f32.mrb[60].mxu0  ;;  %v3655_v45 = vadd.f32 %v3639_v61, %v3551_v47 }
 0x6eb   : > { %v7133_v62 = vpop.f32.mrb[61].mxu0  ;;  %v6550_v30 = vld [vmem:[%s9513_s12] ss:$0 sm:$0xff] }
 0x6ec   : > { %v3826_v8 = vpop.f32.mrb[62].mxu0  ;;  %v3656_v59 = vadd.f32 %v3642_v23, %v3552_v40 }
 0x6ed   : > { %v7134_v41 = vpop.f32.mrb[63].mxu0 }
 0x6ef   : > { %v3543_v24 = vpop.f32.mrb[68].mxu1 }
 0x6f0   : > { %v3553_v37 = vadd.f32 %v3543_v24, %v3452_v17  ;;  %v7093_v52 = vpop.f32.mrb[69].mxu1 }
 0x6f1   : > { %v3546_v60 = vpop.f32.mrb[70].mxu1 }
 0x6f2   : > { %v7094_v27 = vpop.f32.mrb[71].mxu1  ;;  %v3831_v2 = vpop.f32.mrb[64].mxu0  ;;  %v3657_v21 = vadd.f32 %v3647_v48, %v3553_v37 }
 0x6f3   : > { %v7137_v46 = vpop.f32.mrb[65].mxu0 }
 0x6f4   : > { %v3834_v20 = vpop.f32.mrb[66].mxu0 }
 0x6f5   : > { %v7138_v58 = vpop.f32.mrb[67].mxu0 }
 0x6f7   : > { %v3724_v1 = vpop.f32.mrb[72].mxu1 }
 0x6f8   : > { %v3746_v5 = vadd.f32 %v3724_v1, %v3653_v63  ;;  %v7117_v38 = vpop.f32.mrb[73].mxu1 }
 0x6f9   : > { %v3727_v33 = vpop.f32.mrb[74].mxu1 }
 0x6fa   : > { %v3747_v26 = vadd.f32 %v3727_v33, %v3654_v53  ;;  %v7118_v34 = vpop.f32.mrb[75].mxu1  ;;  %v3839_v44 = vpop.f32.mrb[68].mxu0  ;;  %v3845_v0 = vadd.f32 %v3823_v36, %v3746_v5 }
 0x6fb   : > { %v7141_v49 = vpop.f32.mrb[69].mxu0 }
 0x6fc   : > { %v3842_v35 = vpop.f32.mrb[70].mxu0  ;;  %v3846_v4 = vadd.f32 %v3826_v8, %v3747_v26 }
 0x6fd   : > { %v7142_v6 = vpop.f32.mrb[71].mxu0 }
 0x6ff   : > { %v3732_v17 = vpop.f32.mrb[76].mxu1 }
 0x700   : > { %v3748_v57 = vadd.f32 %v3732_v17, %v3655_v45  ;;  %v7121_v42 = vpop.f32.mrb[77].mxu1 }
 0x701   : > { %v3735_v3 = vpop.f32.mrb[78].mxu1 }
 0x702   : > { %v3749_v61 = vadd.f32 %v3735_v3, %v3656_v59  ;;  %v7122_v9 = vpop.f32.mrb[79].mxu1  ;;  %v4015_v23 = vpop.f32.mrb[72].mxu0  ;;  %v3847_v15 = vadd.f32 %v3831_v2, %v3748_v57 }
 0x703   : > { %v7165_v43 = vpop.f32.mrb[73].mxu0 }
 0x704   : > { %v4018_v16 = vpop.f32.mrb[74].mxu0  ;;  %v3848_v55 = vadd.f32 %v3834_v20, %v3749_v61 }
 0x705   : > { %v7166_v7 = vpop.f32.mrb[75].mxu0 }
 0x707   : > { %v3740_v18 = vpop.f32.mrb[80].mxu1 }
 0x708   : > { %v3750_v54 = vadd.f32 %v3740_v18, %v3657_v21  ;;  %v7125_v48 = vpop.f32.mrb[81].mxu1 }
 0x709   : > { %v3743_v63 = vpop.f32.mrb[82].mxu1 }
 0x70a   : > { %v7126_v31 = vpop.f32.mrb[83].mxu1  ;;  %v4023_v22 = vpop.f32.mrb[76].mxu0  ;;  %v3849_v53 = vadd.f32 %v3839_v44, %v3750_v54 }
 0x70b   : > { %v7169_v56 = vpop.f32.mrb[77].mxu0 }
 0x70c   : > { %v4026_v19 = vpop.f32.mrb[78].mxu0 }
 0x70d   : > { %v7170_v47 = vpop.f32.mrb[79].mxu0 }
 0x70f   : > { %v3916_v29 = vpop.f32.mrb[84].mxu1 }
 0x710   : > { %v3938_v39 = vadd.f32 %v3916_v29, %v3845_v0  ;;  %v7149_v40 = vpop.f32.mrb[85].mxu1 }
 0x711   : > { %v3919_v36 = vpop.f32.mrb[86].mxu1 }
 0x712   : > { %v4037_v45 = vadd.f32 %v4015_v23, %v3938_v39  ;;  %v3939_v62 = vadd.f32 %v3919_v36, %v3846_v4  ;;  %v7150_v8 = vpop.f32.mrb[87].mxu1  ;;  %v4031_v59 = vpop.f32.mrb[80].mxu0 }
 0x713   : > { %v7173_v41 = vpop.f32.mrb[81].mxu0 }
 0x714   : > { %v4049_v24 = vadd.f32 %v6550_v30, %v4037_v45  ;;  %v4038_v37 = vadd.f32 %v4018_v16, %v3939_v62  ;;  %v4034_v52 = vpop.f32.mrb[82].mxu0 }
 0x715   : > { %v7174_v60 = vpop.f32.mrb[83].mxu0 }
 0x716   : > { %v4054_v27 = vmul.f32 %v4049_v24, %v4049_v24  ;;  %v4050_v2 = vadd.f32 %v6550_v30, %v4038_v37 }
 0x717   : > { %v3924_v21 = vpop.f32.mrb[88].mxu1 }
 0x718   : > { %v4059_v46 = vmul.f32 %v4054_v27, %v4049_v24  ;;  %v4055_v20 = vmul.f32 %v4050_v2, %v4050_v2  ;;  %v3940_v58 = vadd.f32 %v3924_v21, %v3847_v15  ;;  %v7153_v1 = vpop.f32.mrb[89].mxu1 }
 0x719   : > { %v3927_v5 = vpop.f32.mrb[90].mxu1 }
 0x71a   : > { %v4060_v38 = vmul.f32 %v4055_v20, %v4050_v2  ;;  %v4039_v33 = vadd.f32 %v4023_v22, %v3940_v58  ;;  %v3941_v26 = vadd.f32 %v3927_v5, %v3848_v55  ;;  %v7154_v34 = vpop.f32.mrb[91].mxu1  ;;  %v4064_v44 = vmul.f32 0.044715, %v4059_v46 }
 0x71c   : > { %v4051_v0 = vadd.f32 %v6550_v30, %v4039_v33  ;;  %v4040_v49 = vadd.f32 %v4026_v19, %v3941_v26  ;;  %v4069_v35 = vadd.f32 %v4064_v44, %v4049_v24  ;;  %v4065_v4 = vmul.f32 0.044715, %v4060_v38 }
 0x71e   : > { %v4056_v6 = vmul.f32 %v4051_v0, %v4051_v0  ;;  %v4052_v17 = vadd.f32 %v6550_v30, %v4040_v49  ;;  %v4074_v57 = vmul.f32 0.7978846, %v4069_v35  ;;  %v4070_v42 = vadd.f32 %v4065_v4, %v4050_v2 }
 0x71f   : > { %v3932_v3 = vpop.f32.mrb[92].mxu1 }
 0x720   : > { %v4061_v61 = vmul.f32 %v4056_v6, %v4051_v0  ;;  %v4057_v9 = vmul.f32 %v4052_v17, %v4052_v17  ;;  %v3942_v23 = vadd.f32 %v3932_v3, %v3849_v53  ;;  %v7157_v15 = vpop.f32.mrb[93].mxu1  ;;  %7617 = vtanh.f32 %v4074_v57 }
 0x721   : > { %v3935_v43 = vpop.f32.mrb[94].mxu1  ;;  %v4075_v16 = vmul.f32 0.7978846, %v4070_v42 }
 0x722   : > { %v4062_v7 = vmul.f32 %v4057_v9, %v4052_v17  ;;  %v4041_v55 = vadd.f32 %v4031_v59, %v3942_v23  ;;  %v7158_v18 = vpop.f32.mrb[95].mxu1  ;;  %v4066_v54 = vmul.f32 0.044715, %v4061_v61 }
 0x723   : > { %7619 = vtanh.f32 %v4075_v16 }
 0x724   : > { %v4053_v48 = vadd.f32 %v6550_v30, %v4041_v55  ;;  %v4071_v63 = vadd.f32 %v4066_v54, %v4051_v0  ;;  %v4067_v31 = vmul.f32 0.044715, %v4062_v7 }
 0x726   : > { %v4058_v22 = vmul.f32 %v4053_v48, %v4053_v48  ;;  %v4076_v56 = vmul.f32 0.7978846, %v4071_v63  ;;  %v4072_v19 = vadd.f32 %v4067_v31, %v4052_v17 }
 0x728   : > { %v4063_v47 = vmul.f32 %v4058_v22, %v4053_v48  ;;  %7621 = vtanh.f32 %v4076_v56  ;;  %v4077_v29 = vmul.f32 0.7978846, %v4072_v19 }
 0x72a   : > { %v7618_v39 = vpop.eup %7617  ;;  %7623 = vtanh.f32 %v4077_v29  ;;  %v4068_v53 = vmul.f32 0.044715, %v4063_v47 }
 0x72b   : > { %v4084_v40 = vadd.f32 1.0, %v7618_v39 }
 0x72c   : > { %v4073_v36 = vadd.f32 %v4068_v53, %v4053_v48 }
 0x72d   : > { %v7620_v45 = vpop.eup %7619  ;;  %v4089_v62 = vmul.f32 0.5, %v4084_v40 }
 0x72e   : > { %v4085_v8 = vadd.f32 1.0, %v7620_v45  ;;  %v4078_v59 = vmul.f32 0.7978846, %v4073_v36 }
 0x72f   : > { %v4094_v41 = vmul.f32 %v4089_v62, %v4049_v24 }
 0x730   : > { %v4090_v37 = vmul.f32 0.5, %v4085_v8  ;;  %7625 = vtanh.f32 %v4078_v59 }
 0x731   : > { %v4099_v30 = vadd.f32 %v4094_v41, %v8849_v25 }
 0x732   : > { %v7622_v52 = vpop.eup %7621  ;;  %v4095_v60 = vmul.f32 %v4090_v37, %v4050_v2 }
 0x733   : > { %v4106_v27 = vsel %vm3317_vm9, %v4099_v30, 0.0  ;;  %v4086_v21 = vadd.f32 1.0, %v7622_v52 }
 0x734   : > { %v7624_v46 = vpop.eup %7623  ;;  %4107 = vadd.xlane.f32.xlu1 %v4106_v27  ;;  %v4100_v20 = vadd.f32 %v4095_v60, %v8851_v28  ;;  %v6551_v60 = vld [vmem:[%s9514_s2] ss:$0 sm:$0xff] }
 0x735   : > { %v4091_v58 = vmul.f32 0.5, %v4086_v21  ;;  %v4087_v1 = vadd.f32 1.0, %v7624_v46 }
 0x736   : > { %v4109_v5 = vsel %vm3317_vm9, %v4100_v20, 0.0 }
 0x737   : > { %4110 = vadd.xlane.f32.xlu0 %v4109_v5  ;;  %v4096_v38 = vmul.f32 %v4091_v58, %v4051_v0  ;;  %v4092_v24 = vmul.f32 0.5, %v4087_v1 }
 0x739   : > { %v4101_v33 = vadd.f32 %v4096_v38, %v8860_v32  ;;  %v4097_v26 = vmul.f32 %v4092_v24, %v4052_v17 }
 0x73a   : > { %v7626_v25 = vpop.eup %7625 }
 0x73b   : > { %v4112_v2 = vsel %vm3317_vm9, %v4101_v33, 0.0  ;;  %v4102_v34 = vadd.f32 %v4097_v26, %v8865_v50  ;;  %v4088_v44 = vadd.f32 1.0, %v7626_v25 }
 0x73c   : > { %4113 = vadd.xlane.f32.xlu1 %v4112_v2 }
 0x73d   : > { %v4093_v49 = vmul.f32 0.5, %v4088_v44  ;;  %v4115_v28 = vsel %vm3317_vm9, %v4102_v34, 0.0 }
 0x73f   : > { %v4098_v35 = vmul.f32 %v4093_v49, %v4053_v48 }
 0x740   : > { %4116 = vadd.xlane.f32.xlu1 %v4115_v28 }
 0x741   : > { %v4103_v4 = vadd.f32 %v4098_v35, %v8881_v51 }
 0x743   : > { %v4119_v0 = vsel %vm4118_vm1, %v4103_v4, 0.0 }
 0x744   : > { %4120 = vadd.xlane.f32.xlu1 %v4119_v0 }
 0x7c1   : > { %v4108_v32 = vpop.xlane.xlu1 %4107 }
 0x7c2   : > { %v4123_v6 = vmul.f32 0.03125, %v4108_v32 }
 0x7c4   : > { %v4128_v17 = vsub.f32 %v4099_v30, %v4123_v6  ;;  %v4111_v57 = vpop.xlane.xlu0 %4110 }
 0x7c5   : > { %v4124_v42 = vmul.f32 0.03125, %v4111_v57 }
 0x7c6   : > { %v4133_v3 = vmul.f32 %v4128_v17, %v4128_v17 }
 0x7c7   : > { %v4129_v50 = vsub.f32 %v4100_v20, %v4124_v42  ;;  %v6552_v20 = vld [vmem:[%s9515_s10] ss:$0 sm:$0xff] }
 0x7c8   : > { %v4138_v61 = vsel %vm3317_vm9, %v4133_v3, 0.0 }
 0x7c9   : > { %4139 = vadd.xlane.f32.xlu0 %v4138_v61  ;;  %v4114_v9 = vpop.xlane.xlu1 %4113  ;;  %v4134_v23 = vmul.f32 %v4129_v50, %v4129_v50 }
 0x7ca   : > { %v4125_v15 = vmul.f32 0.03125, %v4114_v9 }
 0x7cb   : > { %v4141_v43 = vsel %vm3317_vm9, %v4134_v23, 0.0 }
 0x7cc   : > { %v4130_v16 = vsub.f32 %v4101_v33, %v4125_v15  ;;  %4142 = vadd.xlane.f32.xlu1 %v4141_v43 }
 0x7cd   : > { %v4117_v51 = vpop.xlane.xlu1 %4116 }
 0x7ce   : > { %v4126_v7 = vmul.f32 0.03125, %v4117_v51  ;;  %v4135_v55 = vmul.f32 %v4130_v16, %v4130_v16 }
 0x7d0   : > { %v4131_v18 = vsub.f32 %v4102_v34, %v4126_v7  ;;  %v4144_v54 = vsel %vm3317_vm9, %v4135_v55, 0.0 }
 0x7d1   : > { %4145 = vadd.xlane.f32.xlu0 %v4144_v54  ;;  %v4121_v48 = vpop.xlane.xlu1 %4120 }
 0x7d2   : > { %v4127_v63 = vmul.f32 0.03125, %v4121_v48  ;;  %v4136_v31 = vmul.f32 %v4131_v18, %v4131_v18 }
 0x7d4   : > { %v4132_v22 = vsub.f32 %v4103_v4, %v4127_v63  ;;  %v4147_v56 = vsel %vm3317_vm9, %v4136_v31, 0.0 }
 0x7d5   : > { %4148 = vadd.xlane.f32.xlu1 %v4147_v56 }
 0x7d6   : > { %v4137_v19 = vmul.f32 %v4132_v22, %v4132_v22 }
 0x7d8   : > { %v4150_v47 = vsel %vm4118_vm1, %v4137_v19, 0.0 }
 0x7d9   : > { %4151 = vadd.xlane.f32.xlu0 %v4150_v47 }
 0x856   : > { %v4140_v29 = vpop.xlane.xlu0 %4139 }
 0x857   : > { %v4153_v39 = vmul.f32 0.03125, %v4140_v29 }
 0x859   : > { %v4158_v53 = vadd.f32 1e-05, %v4153_v39  ;;  %v4143_v40 = vpop.xlane.xlu1 %4142 }
 0x85a   : > { %v4154_v36 = vmul.f32 0.03125, %v4143_v40 }
 0x85b   : > { %7627 = vrsqrt.f32 %v4158_v53 }
 0x85c   : > { %v4159_v45 = vadd.f32 1e-05, %v4154_v36 }
 0x85e   : > { %7629 = vrsqrt.f32 %v4159_v45  ;;  %v4146_v62 = vpop.xlane.xlu0 %4145 }
 0x85f   : > { %v4155_v8 = vmul.f32 0.03125, %v4146_v62 }
 0x861   : > { %v4160_v59 = vadd.f32 1e-05, %v4155_v8 }
 0x862   : > { %v4149_v41 = vpop.xlane.xlu1 %4148 }
 0x863   : > { %7631 = vrsqrt.f32 %v4160_v59  ;;  %v4156_v37 = vmul.f32 0.03125, %v4149_v41 }
 0x865   : > { %v7628_v30 = vpop.eup %7627  ;;  %v4161_v52 = vadd.f32 1e-05, %v4156_v37 }
 0x866   : > { %v4152_v27 = vpop.xlane.xlu0 %4151  ;;  %v4168_v21 = vmul.f32 %v7628_v30, %v4128_v17 }
 0x867   : > { %7633 = vrsqrt.f32 %v4161_v52  ;;  %v4157_v46 = vmul.f32 0.03125, %v4152_v27 }
 0x868   : > { %v7630_v58 = vpop.eup %7629  ;;  %v4179_v1 = vmul.f32 %v6551_v60, %v4168_v21 }
 0x869   : > { %v4162_v5 = vadd.f32 1e-05, %v4157_v46  ;;  %v4169_v38 = vmul.f32 %v7630_v58, %v4129_v50 }
 0x86a   : > { %v4190_v24 = vadd.f32 %v6552_v20, %v4179_v1 }
 0x86b   : > { %7635 = vrsqrt.f32 %v4162_v5  ;;  %v4180_v33 = vmul.f32 %v6551_v60, %v4169_v38 }
 0x86c   : > { %4195 = vxpose.xlu1.b32.start [1/5] (short) (narrow) %v4190_v24, 32 }
 0x86d   : > { %v7632_v26 = vpop.eup %7631  ;;  %v4191_v25 = vadd.f32 %v6552_v20, %v4180_v33 }
 0x86e   : > { %v4170_v2 = vmul.f32 %v7632_v26, %v4130_v16 }
 0x870   : > { %4196 = vxpose.xlu1.b32.cont [2/5] (short) (narrow) %v4191_v25, 32  ;;  %v4181_v34 = vmul.f32 %v6551_v60, %v4170_v2 }
 0x871   : > { %v7634_v44 = vpop.eup %7633 }
 0x872   : > { %v4192_v49 = vadd.f32 %v6552_v20, %v4181_v34  ;;  %v4171_v28 = vmul.f32 %v7634_v44, %v4131_v18 }
 0x874   : > { %4197 = vxpose.xlu1.b32.cont [3/5] (short) (narrow) %v4192_v49, 32  ;;  %v4182_v35 = vmul.f32 %v6551_v60, %v4171_v28 }
 0x875   : > { %v7636_v4 = vpop.eup %7635 }
 0x876   : > { %v4193_v0 = vadd.f32 %v6552_v20, %v4182_v35  ;;  %v4172_v32 = vmul.f32 %v7636_v4, %v4132_v22 }
 0x878   : > { %4198 = vxpose.xlu1.b32.cont [4/5] (short) (narrow) %v4193_v0, 32  ;;  %v4183_v6 = vmul.f32 %v6551_v60, %v4172_v32 }
 0x87a   : > { %v4194_v17 = vadd.f32 %v6552_v20, %v4183_v6 }
 0x87c   : > { %4199 = vxpose.xlu1.b32.end [5/5] (short) (narrow) %v4194_v17, 32 }
 0x8ec   : > { %v4211_v57 = vpop.trf.xlu1 }
 0x8ed   : > { %4228 = vst.msk [vmem:[#allocation2] sm:$0xff] %vm4227_vm2, %v4211_v57 }
 0x8f0   : > { %v4212_v42 = vpop.trf.xlu1 }
 0x8f1   : > { %4229 = vst.msk [vmem:[#allocation2 + $0x8] sm:$0xff] %vm4227_vm2, %v4212_v42 }
 0x8f4   : > { %v4213_v3 = vpop.trf.xlu1 }
 0x8f5   : > { %4230 = vst.msk [vmem:[#allocation2 + $0x10] sm:$0xff] %vm4227_vm2, %v4213_v3 }
 0x8f8   : > { %v4214_v50 = vpop.trf.xlu1 }
 0x8f9   : > { %4231 = vst.msk [vmem:[#allocation2 + $0x18] sm:$0xff] %vm4227_vm2, %v4214_v50 }
 0x8fa PF: > { %v4232_v61 = vld [vmem:[#allocation2] sm:$0xff]  ;;  %v4233_v9 = vld [vmem:[#allocation2 + $0x8] sm:$0xff]  ;;  %vm4352_vm3 = vcmask 261120   ;;  %v7802_v16 = vmov 0   ;;  %v7641_v54 = vld [vmem:[%s8017_s22 + $0x10] sm:$0xff]   ;;  %v7803_v47 = vmov 0.0  }
 0x8fb   : > { %v4248_v15 = vpack.c.bf16 %v4233_v9, %v4232_v61  ;;  %7638 = vset.pattern.permute.xlu1 %v7802_v16  ;;  %7637 = vset.pattern.permute.xlu0 %v7802_v16  ;;  %v7639_v7 = vld [vmem:[%s8017_s22] sm:$0xff]   ;;  %v7640_v55 = vld [vmem:[%s8017_s22 + $0x8] sm:$0xff]   ;;  %v7642_v22 = vld [vmem:[%s8017_s22 + $0x18] sm:$0xff]   ;;  %vm4523_vm4 = vcmask 1043456   ;;  %vm7804_vm5 = vmmov 0   ;;  %vm4513_vm6 = vcmask 64512  }
 0x8fc   : > { %v4234_v23 = vld [vmem:[#allocation2 + $0x10] sm:$0xff]  ;;  %7179 = vmatprep.mubr.msk.bf16.mxu0 %vm4352_vm3, %v7639_v7  ;;  %v4250_v18 = vld [vmem:[%s8026_s1] sm:$0xff]  ;;  %v4251_v63 = vld [vmem:[%s8026_s1 + $0x8] sm:$0xff]  ;;  %7191 = vmatprep.subr.bf16.mxu1 %v7803_v47  ;;  %vm4583_vm7 = vcmask 318464   ;;  %vm4588_vm8 = vcmask 317440   ;;  %vm4643_vm9 = vcmask 1042432  }
 0x8fd   : > { %7175 = vmatprep.subr.bf16.mxu0 %v4248_v15  ;;  %4264 = vperm.xlu1 %7638, %v4250_v18   ;;  %v4254_v48 = vld [vmem:[%s8026_s1 + $0x20] sm:$0xff]  ;;  %v4255_v31 = vld [vmem:[%s8026_s1 + $0x28] sm:$0xff]  ;;  %v4256_v5 = vld [vmem:[%s8026_s1 + $0x30] sm:$0xff]  ;;  %vm5771_vm10 = vcmask 523264   ;;  %p6597_p8 = scmp.ne.s32.totalorder %s7749_s15, 1 }
 0x8fe   : > { %7176 = vmatpush3.bf16.msra.mxu0 %v4248_v15  ;;  %4284 = vperm.xlu0 %7637, %v4254_v48   ;;  %v7643_v56 = vld [vmem:[%s8017_s22 + $0x20] sm:$0xff]   ;;  %v7644_v19 = vld [vmem:[%s8017_s22 + $0x28] sm:$0xff]   ;;  %v4257_v2 = vld [vmem:[%s8026_s1 + $0x38] sm:$0xff]  ;;  %vm7807_vm11 = vmmov (!%p6597_p8), 0   ;;  %vm5973_vm12 = vcmask (!%p6597_p8), 260096  }
 0x8ff   : > { %7193 = vmatprep.mubr.msk.bf16.mxu1 %vm7804_vm5, %v7803_v47  ;;  %v4259_v24 = vld [vmem:[%s8026_s1 + $0x48] sm:$0xff]  ;;  %v4260_v34 = vld [vmem:[%s8026_s1 + $0x50] sm:$0xff] }
 0x900   : > { %v4235_v43 = vld [vmem:[#allocation2 + $0x18] sm:$0xff] }
 0x901   : > { %v4249_v51 = vpack.c.bf16 %v4235_v43, %v4234_v23  ;;  %4269 = vperm.xlu1 %7638, %v4251_v63  }
 0x902   : > { %4289 = vperm.xlu0 %7637, %v4255_v31  }
 0x903   : > { %7177 = vmatprep.subr.bf16.mxu0 %v4249_v51 }
 0x904   : > { %7178 = vmatpush3.bf16.msra.mxu0 %v4249_v51 }
 0x905   : > { %7215 = vmatprep.subr.bf16.mxu0 %v7803_v47 }
 0x907   : > { %7180 = vmatmul.mubr.msk.bf16.vlgmr.msra.gmra.mrb[0].mxu0 %vm4352_vm3, %v7640_v55 }
 0x908   : > { %7183 = vmatprep.mubr.msk.bf16.mxu0 %vm4352_vm3, %v7641_v54 }
 0x90f   : > { %7184 = vmatmul.mubr.msk.bf16.gmra.mrb[4].mxu0 %vm4352_vm3, %v7642_v22  ;;  %v4261_v22 = vld [vmem:[%s8026_s1 + $0x58] sm:$0xff] }
 0x910   : > { %7187 = vmatprep.mubr.msk.bf16.mxu0 %vm4352_vm3, %v7643_v56  ;;  %v5311_v56 = vld [vmem:[%s8032_s11 + $0x8] sm:$0xff] }
 0x917   : > { %7188 = vmatmul.mubr.msk.bf16.gmra.mrb[8].mxu0 %vm4352_vm3, %v7644_v19  ;;  %v5312_v19 = vld [vmem:[%s8032_s11 + $0x10] sm:$0xff] }
 0x918   : > { %7217 = vmatprep.mubr.msk.bf16.mxu0 %vm7804_vm5, %v7803_v47 }
 0x97c   : > { %v4265_v29 = vpop.permute.xlu1 %4264 }
 0x97d   : > { %v4285_v41 = vpop.permute.xlu0 %4284 }
 0x980   : > { %v4270_v40 = vpop.permute.xlu1 %4269 }
 0x981   : > { %v4290_v20 = vpop.permute.xlu0 %4289 }
 0x9da   : > { %v9074_v39 = vpop.f32.mrb[0].mxu0 }
 0x9db   : > { %v4405_v53 = vpop.f32.mrb[1].mxu0 }
 0x9dc   : > { %v4406_v36 = vadd.f32 %v4405_v53, %v4265_v29  ;;  %v9076_v45 = vpop.f32.mrb[2].mxu0  ;;  %v5313_v29 = vld [vmem:[%s8032_s11 + $0x18] sm:$0xff]  ;;  %v5407_v53 = vld [vmem:[%s8038_s0] sm:$0xff] }
 0x9dd   : > { %v4408_v62 = vpop.f32.mrb[3].mxu0 }
 0x9de   : > { %v4487_v8 = vpack.c.bf16 %v4406_v36, %v4406_v36  ;;  %v4409_v59 = vadd.f32 %v4408_v62, %v4270_v40  ;;  %v5405_v40 = vld [vmem:[%s8035_s4 + $0x10] sm:$0xff]  ;;  %v5512_v62 = vld [vmem:[%s8056_s6] sm:$0xff] }
 0x9df   : > { %v5409_v36 = vld [vmem:[%s8038_s0 + $0x10] sm:$0xff] }
 0x9e0   : > { %v4724_v37 = vpack.c.bf16 %v4409_v59, %v4409_v59  ;;  %v4525_v30 = vsel %vm4523_vm4, %v4487_v8, 0  ;;  %v5310_v8 = vld [vmem:[%s8032_s11] sm:$0xff]  ;;  %v5514_v59 = vld [vmem:[%s8056_s6 + $0x10] sm:$0xff] }
 0x9e1   : > { %7192 = vmatpush3.bf16.msra.mxu1 %v4525_v30  ;;  %v5408_v30 = vld [vmem:[%s8038_s0 + $0x8] sm:$0xff] }
 0x9e2   : > { %v4735_v52 = vsel %vm4523_vm4, %v4724_v37, 0  ;;  %v9080_v60 = vpop.f32.mrb[4].mxu0  ;;  %7205 = vmatprep.subr.bf16.mxu1 %v7803_v47  ;;  %v5516_v37 = vld [vmem:[%s8056_s6 + $0x20] sm:$0xff] }
 0x9e3   : > { %v4421_v27 = vpop.f32.mrb[5].mxu0  ;;  %7216 = vmatpush3.bf16.msra.mxu0 %v4735_v52  ;;  %v5518_v52 = vld [vmem:[%s8056_s6 + $0x30] sm:$0xff] }
 0x9e4   : > { %v4422_v21 = vadd.f32 %v4421_v27, %v4285_v41  ;;  %v9083_v46 = vpop.f32.mrb[6].mxu0  ;;  %7253 = vmatprep.subr.bf16.mxu0 %v7803_v47  ;;  %v5404_v41 = vld [vmem:[%s8035_s4 + $0x8] sm:$0xff]  ;;  %v5737_v27 = vld [vmem:[%s8059_s27] sm:$0xff] }
 0x9e5   : > { %v4424_v58 = vpop.f32.mrb[7].mxu0 }
 0x9e6   : > { %v4425_v1 = vadd.f32 %v4424_v58, %v4290_v20  ;;  %4452 = vxpose.xlu0.b32.start.end [1/1] (short) (narrow) %v4422_v21, 40  ;;  %v5410_v21 = vld [vmem:[%s8038_s0 + $0x18] sm:$0xff]  ;;  %v5513_v20 = vld [vmem:[%s8056_s6 + $0x8] sm:$0xff]  ;;  %v5831_v58 = vld [vmem:[%s8064_s30] sm:$0xff] }
 0x9e8   : > { %4689 = vxpose.xlu1.b32.start.end [1/1] (short) (narrow) %v4425_v1, 40  ;;  %v5515_v1 = vld [vmem:[%s8056_s6 + $0x18] sm:$0xff] }
 0x9ea   : > { %v9093_v38 = vpop.f32.mrb[8].mxu0 }
 0x9eb   : > { %v4437_v33 = vpop.f32.mrb[9].mxu0 }
 0x9ec   : > { %v9097_v26 = vpop.f32.mrb[10].mxu0 }
 0x9ed   : > { %v9099_v25 = vpop.f32.mrb[11].mxu0 }
 0xa16   : > { %4510 = vperm.xlu1 %7638, %v8061_v14   ;;  %v4252_v14 = vld [vmem:[%s8026_s1 + $0x10] sm:$0xff] }
 0xa1a   : > { %4500 = vperm.xlu1 %7638, %v8051_v12   ;;  %v4258_v12 = vld [vmem:[%s8026_s1 + $0x40] sm:$0xff] }
 0xa1e   : > { %4294 = vperm.xlu1 %7638, %v4256_v5   ;;  %v5833_v5 = vld [vmem:[%s8064_s30 + $0x10] sm:$0xff] }
 0xa1f   : > { %4490 = vperm.xlu0 %7637, %v8043_v10   ;;  %v4253_v10 = vld [vmem:[%s8026_s1 + $0x18] sm:$0xff] }
 0xa22   : > { %4309 = vperm.xlu1 %7638, %v4259_v24   ;;  %v5517_v24 = vld [vmem:[%s8056_s6 + $0x28] sm:$0xff] }
 0xa23   : > { %4495 = vperm.xlu0 %7637, %v8045_v11  }
 0xa27   : > { %4505 = vperm.xlu0 %7637, %v8053_v13  }
 0xa2b   : > { %4304 = vperm.xlu0 %7637, %v4258_v12   ;;  %v5519_v12 = vld [vmem:[%s8056_s6 + $0x38] sm:$0xff] }
 0xa2f   : > { %4274 = vperm.xlu0 %7637, %v4252_v14   ;;  %v5837_v14 = vld [vmem:[%s8067_s19 + $0x10] sm:$0xff] }
 0xa33   : > { %4299 = vperm.xlu0 %7637, %v4257_v2   ;;  %v5738_v2 = vld [vmem:[%s8059_s27 + $0x8] sm:$0xff] }
 0xa37   : > { %4314 = vperm.xlu0 %7637, %v4260_v34   ;;  %v5740_v34 = vld [vmem:[%s8059_s27 + $0x18] sm:$0xff] }
 0xa3b   : > { %4279 = vperm.xlu0 %7637, %v4253_v10   ;;  %v5832_v10 = vld [vmem:[%s8064_s30 + $0x8] sm:$0xff] }
 0xa66   : > { %v4468_v44 = vpop.trf.xlu0 }
 0xa68   : > { %v4705_v49 = vpop.trf.xlu1 }
 0xa6a   : > { %v4469_v28 = vpop.trf.xlu0 }
 0xa6b   : > { %v4484_v35 = vpack.c.bf16 %v4469_v28, %v4468_v44  ;;  %v5834_v44 = vld [vmem:[%s8064_s30 + $0x18] sm:$0xff] }
 0xa6c   : > { %v4706_v4 = vpop.trf.xlu1  ;;  %v5838_v28 = vld [vmem:[%s8067_s19 + $0x18] sm:$0xff] }
 0xa6d   : > { %v4721_v0 = vpack.c.bf16 %v4706_v4, %v4705_v49  ;;  %7194 = vmatmul.mubr.msk.bf16.vlgmr.msra.gmra.mrb[0].mxu1 %vm4513_vm6, %v4484_v35  ;;  %v5836_v49 = vld [vmem:[%s8067_s19 + $0x8] sm:$0xff] }
 0xa6e   : > { %v4470_v11 = vpop.trf.xlu0  ;;  %7197 = vmatprep.mubr.msk.bf16.mxu1 %vm7804_vm5, %v7803_v47 }
 0xa6f   : > { %7218 = vmatmul.mubr.msk.bf16.vlgmr.msra.gmra.mrb[12].mxu0 %vm4513_vm6, %v4721_v0 }
 0xa70   : > { %v4707_v13 = vpop.trf.xlu1  ;;  %7221 = vmatprep.mubr.msk.bf16.mxu0 %vm7804_vm5, %v7803_v47 }
 0xa72   : > { %v4471_v32 = vpop.trf.xlu0 }
 0xa73   : > { %v4485_v6 = vpack.c.bf16 %v4471_v32, %v4470_v11 }
 0xa74   : > { %v4708_v17 = vpop.trf.xlu1 }
 0xa75   : > { %v4722_v57 = vpack.c.bf16 %v4708_v17, %v4707_v13  ;;  %7198 = vmatmul.mubr.msk.bf16.gmra.mrb[4].mxu1 %vm4513_vm6, %v4485_v6 }
 0xa76   : > { %v4472_v42 = vpop.trf.xlu0  ;;  %7201 = vmatprep.mubr.msk.bf16.mxu1 %vm7804_vm5, %v7803_v47 }
 0xa77   : > { %7222 = vmatmul.mubr.msk.bf16.gmra.mrb[16].mxu0 %vm4513_vm6, %v4722_v57  ;;  %v4486_v50 = vpack.c.bf16 %v4472_v42, %v4472_v42 }
 0xa78   : > { %v4709_v3 = vpop.trf.xlu1  ;;  %7225 = vmatprep.mubr.msk.bf16.mxu0 %vm7804_vm5, %v7803_v47 }
 0xa79   : > { %v4723_v61 = vpack.c.bf16 %v4709_v3, %v4709_v3 }
 0xa7d   : > { %7202 = vmatmul.mubr.msk.bf16.gmra.mrb[8].mxu1 %vm4513_vm6, %v4486_v50 }
 0xa7e   : > { %7211 = vmatprep.mubr.msk.bf16.mxu1 %vm7804_vm5, %v7803_v47 }
 0xa7f   : > { %7226 = vmatmul.mubr.msk.bf16.gmra.mrb[20].mxu0 %vm4513_vm6, %v4723_v61 }
 0xa80   : > { %7259 = vmatprep.mubr.msk.bf16.mxu0 %vm7804_vm5, %v7803_v47 }
 0xa95   : > { %v9126_v9 = vpop.permute.xlu1 %4510 }
 0xa99   : > { %v9128_v23 = vpop.permute.xlu1 %4500 }
 0xa9d   : > { %v4295_v15 = vpop.permute.xlu1 %4294 }
 0xa9e   : > { %v4430_v43 = vadd.f32 %v9080_v60, %v4295_v15  ;;  %v9131_v16 = vpop.permute.xlu0 %4490  ;;  %v5406_v60 = vld [vmem:[%s8035_s4 + $0x18] sm:$0xff] }
 0xaa0   : > { %4894 = vxpose.xlu1.b32.start.end [1/1] (short) (narrow) %v4430_v43, 40 }
 0xaa2   : > { %v9133_v51 = vpop.permute.xlu0 %4495 }
 0xaa6   : > { %v9135_v7 = vpop.permute.xlu0 %4505 }
 0xaaa   : > { %v4305_v55 = vpop.permute.xlu0 %4304 }
 0xaab   : > { %v9137_v18 = vadd.f32 %v4437_v33, %v4305_v55  ;;  %v5835_v33 = vld [vmem:[%s8067_s19] sm:$0xff] }
 0xaae   : > { %v4275_v54 = vpop.permute.xlu0 %4274 }
 0xaaf   : > { %v9140_v48 = vadd.f32 %v9074_v39, %v4275_v54  ;;  %v5403_v39 = vld [vmem:[%s8035_s4] sm:$0xff] }
 0xab2   : > { %v4300_v63 = vpop.permute.xlu0 %4299 }
 0xab3   : > { %v4433_v31 = vadd.f32 %v9083_v46, %v4300_v63  ;;  %v5739_v46 = vld [vmem:[%s8059_s27 + $0x10] sm:$0xff] }
 0xab5   : > { %5099 = vxpose.xlu0.b32.start.end [1/1] (short) (narrow) %v4433_v31, 40 }
 0xace   : > { %4319 = vperm.xlu1 %7638, %v4261_v22  }
 0xad2   : > { %5321 = vperm.xlu1 %7638, %v5311_v56  }
 0xad6   : > { %5326 = vperm.xlu1 %7638, %v5312_v19  }
 0xada   : > { %5331 = vperm.xlu1 %7638, %v5313_v29  }
 0xade   : > { %5456 = vperm.xlu1 %7638, %v5403_v39  }
 0xae2   : > { %5480 = vperm.xlu1 %7638, %v5407_v53  }
 0xae6   : > { %5466 = vperm.xlu1 %7638, %v5405_v40  }
 0xaea   : > { %5490 = vperm.xlu1 %7638, %v5409_v36  }
 0xaee   : > { %5522 = vperm.xlu1 %7638, %v5512_v62   ;;  %5316 = vperm.xlu0 %7637, %v5310_v8  }
 0xaf2   : > { %5532 = vperm.xlu1 %7638, %v5514_v59   ;;  %5461 = vperm.xlu0 %7637, %v5404_v41  }
 0xaf6   : > { %5542 = vperm.xlu1 %7638, %v5516_v37   ;;  %5485 = vperm.xlu0 %7637, %v5408_v30  }
 0xafa   : > { %5552 = vperm.xlu1 %7638, %v5518_v52   ;;  %5471 = vperm.xlu0 %7637, %v5406_v60  }
 0xafe   : > { %5743 = vperm.xlu1 %7638, %v5737_v27   ;;  %5495 = vperm.xlu0 %7637, %v5410_v21  }
 0xb02   : > { %5753 = vperm.xlu1 %7638, %v5739_v46   ;;  %5527 = vperm.xlu0 %7637, %v5513_v20  }
 0xb06   : > { %5883 = vperm.xlu1 %7638, %v5831_v58   ;;  %5537 = vperm.xlu0 %7637, %v5515_v1  }
 0xb0a   : > { %5893 = vperm.xlu1 %7638, %v5833_v5   ;;  %5547 = vperm.xlu0 %7637, %v5517_v24  }
 0xb0e   : > { %5907 = vperm.xlu1 %7638, %v5835_v33   ;;  %5557 = vperm.xlu0 %7637, %v5519_v12  }
 0xb12   : > { %5917 = vperm.xlu1 %7638, %v5837_v14   ;;  %5748 = vperm.xlu0 %7637, %v5738_v2  }
 0xb16   : > { %5758 = vperm.xlu0 %7637, %v5740_v34  }
 0xb1a   : > { %5888 = vperm.xlu0 %7637, %v5832_v10  }
 0xb1e   : > { %5898 = vperm.xlu0 %7637, %v5834_v44  }
 0xb22   : > { %5912 = vperm.xlu0 %7637, %v5836_v49  }
 0xb26   : > { %5922 = vperm.xlu0 %7637, %v5838_v28  }
 0xb40   : > { %v4561_v35 = vpop.f32.mrb[0].mxu1 }
 0xb41   : > { %v7195_v4 = vpop.f32.mrb[1].mxu1  ;;  %v4562_v39 = vadd.f32 %v4561_v35, %v9131_v16 }
 0xb42   : > { %v4564_v0 = vpop.f32.mrb[2].mxu1  ;;  %v4771_v11 = vpop.f32.mrb[12].mxu0 }
 0xb43   : > { %v7196_v13 = vpop.f32.mrb[3].mxu1  ;;  %v7219_v32 = vpop.f32.mrb[13].mxu0  ;;  %v4565_v8 = vadd.f32 %v4564_v0, %v9133_v51  ;;  %v4772_v59 = vadd.f32 %v4771_v11, %v9131_v16  ;;  %v4584_v60 = vsel %vm4583_vm7, %v4562_v39, -inf }
 0xb44   : > { %v4774_v6 = vpop.f32.mrb[14].mxu0 }
 0xb45   : > { %v7220_v17 = vpop.f32.mrb[15].mxu0  ;;  %v4775_v27 = vadd.f32 %v4774_v6, %v9133_v51  ;;  %v4585_v24 = vsel %vm4583_vm7, %v4565_v8, -inf  ;;  %v4793_v33 = vsel %vm4583_vm7, %v4772_v59, -inf }
 0xb47   : > { %v4794_v10 = vsel %vm4583_vm7, %v4775_v27, -inf }
 0xb48   : > { %v4569_v57 = vpop.f32.mrb[4].mxu1 }
 0xb49   : > { %v9177_v42 = vadd.f32 %v4569_v57, %v9128_v23  ;;  %v7199_v3 = vpop.f32.mrb[5].mxu1 }
 0xb4a   : > { %v4572_v50 = vpop.f32.mrb[6].mxu1  ;;  %v4779_v61 = vpop.f32.mrb[16].mxu0 }
 0xb4b   : > { %v4573_v15 = vadd.f32 %v4572_v50, %v9135_v7  ;;  %v9181_v43 = vadd.f32 %v4779_v61, %v9128_v23  ;;  %v7200_v55 = vpop.f32.mrb[7].mxu1  ;;  %v7223_v54 = vpop.f32.mrb[17].mxu0  ;;  %v4586_v31 = vsel %vm4583_vm7, %v9177_v42, -inf }
 0xb4c   : > { %v4782_v63 = vpop.f32.mrb[18].mxu0 }
 0xb4d   : > { %v4587_v22 = vsel %vm4583_vm7, %v4573_v15, -inf  ;;  %v9187_v56 = vadd.f32 %v4782_v63, %v9135_v7  ;;  %v7224_v19 = vpop.f32.mrb[19].mxu0  ;;  %v4795_v53 = vsel %vm4583_vm7, %v9181_v43, -inf }
 0xb4e   : > { %v4592_v29 = vmax.f32 %v4586_v31, %v4587_v22 }
 0xb4f   : > { %v4796_v40 = vsel %vm4583_vm7, %v9187_v56, -inf }
 0xb50   : > { %v4800_v36 = vmax.f32 %v4795_v53, %v4796_v40  ;;  %v4577_v62 = vpop.f32.mrb[8].mxu1 }
 0xb51   : > { %v4578_v41 = vadd.f32 %v4577_v62, %v9126_v9  ;;  %v7203_v37 = vpop.f32.mrb[9].mxu1 }
 0xb52   : > { %v4580_v30 = vpop.f32.mrb[10].mxu1  ;;  %v4787_v52 = vpop.f32.mrb[20].mxu0 }
 0xb53   : > { %v4589_v21 = vsel %vm4588_vm8, %v4578_v41, -inf  ;;  %v4788_v46 = vadd.f32 %v4787_v52, %v9126_v9  ;;  %v7204_v20 = vpop.f32.mrb[11].mxu1  ;;  %v7227_v58 = vpop.f32.mrb[21].mxu0 }
 0xb54   : > { %v4590_v1 = vmax.f32 %v4584_v60, %v4589_v21  ;;  %v4790_v5 = vpop.f32.mrb[22].mxu0 }
 0xb55   : > { %v4797_v12 = vsel %vm4588_vm8, %v4788_v46, -inf  ;;  %v7228_v14 = vpop.f32.mrb[23].mxu0 }
 0xb56   : > { %v4591_v2 = vmax.f32 %v4590_v1, %v4585_v24  ;;  %v4798_v34 = vmax.f32 %v4793_v33, %v4797_v12 }
 0xb58   : > { %v4593_v44 = vmax.f32 %v4591_v2, %v4592_v29  ;;  %v4799_v49 = vmax.f32 %v4798_v34, %v4794_v10 }
 0xb5a   : > { %v4594_v28 = vrot.slane %v4593_v44, 4  ;;  %v4801_v35 = vmax.f32 %v4799_v49, %v4800_v36 }
 0xb5c   : > { %v4595_v4 = vmax.f32 %v4593_v44, %v4594_v28  ;;  %v4802_v0 = vrot.slane %v4801_v35, 4 }
 0xb5e   : > { %v4596_v11 = vrot.slane %v4595_v4, 2  ;;  %v4803_v13 = vmax.f32 %v4801_v35, %v4802_v0 }
 0xb60   : > { %v4597_v32 = vmax.f32 %v4595_v4, %v4596_v11  ;;  %v4804_v6 = vrot.slane %v4803_v13, 2 }
 0xb62   : > { %v4598_v17 = vrot.slane %v4597_v32, 1  ;;  %v4805_v57 = vmax.f32 %v4803_v13, %v4804_v6 }
 0xb64   : > { %v4599_v3 = vmax.f32 %v4597_v32, %v4598_v17  ;;  %v4806_v50 = vrot.slane %v4805_v57, 1 }
 0xb66   : > { %v4600_v61 = vsub.f32 %v4562_v39, %v4599_v3  ;;  %v4601_v55 = vsub.f32 %v4565_v8, %v4599_v3  ;;  %v4602_v54 = vsub.f32 %v9177_v42, %v4599_v3  ;;  %v4603_v63 = vsub.f32 %v4573_v15, %v4599_v3 }
 0xb67   : > { %v4604_v31 = vsub.f32 %v4578_v41, %v4599_v3  ;;  %v4807_v22 = vmax.f32 %v4805_v57, %v4806_v50 }
 0xb68   : > { %v4605_v19 = vmul.f32 1.442695, %v4600_v61  ;;  %v4607_v29 = vmul.f32 1.442695, %v4601_v55  ;;  %v4609_v53 = vmul.f32 1.442695, %v4602_v54 }
 0xb69   : > { %v4611_v40 = vmul.f32 1.442695, %v4603_v63  ;;  %v4613_v36 = vmul.f32 1.442695, %v4604_v31  ;;  %v4808_v62 = vsub.f32 %v4772_v59, %v4807_v22  ;;  %v4809_v37 = vsub.f32 %v4775_v27, %v4807_v22 }
 0xb6a   : > { %7653 = vpow2.f32 %v4605_v19  ;;  %v4810_v30 = vsub.f32 %v9181_v43, %v4807_v22  ;;  %v4811_v52 = vsub.f32 %v9187_v56, %v4807_v22  ;;  %v4812_v60 = vsub.f32 %v4788_v46, %v4807_v22 }
 0xb6b   : > { %7655 = vpow2.f32 %v4607_v29  ;;  %v4813_v39 = vmul.f32 1.442695, %v4808_v62  ;;  %v4815_v42 = vmul.f32 1.442695, %v4809_v37 }
 0xb6c   : > { %7657 = vpow2.f32 %v4609_v53  ;;  %v4817_v15 = vmul.f32 1.442695, %v4810_v30  ;;  %v4819_v8 = vmul.f32 1.442695, %v4811_v52  ;;  %v4821_v41 = vmul.f32 1.442695, %v4812_v60 }
 0xb6d   : > { %7659 = vpow2.f32 %v4611_v40 }
 0xb6e   : > { %7661 = vpow2.f32 %v4613_v36 }
 0xb6f   : > { %7663 = vpow2.f32 %v4813_v39 }
 0xb70   : > { %7665 = vpow2.f32 %v4815_v42 }
 0xb71   : > { %7667 = vpow2.f32 %v4817_v15  ;;  %v7805_v15 = vmov 65535  }
 0xb72   : > { %7669 = vpow2.f32 %v4819_v8  ;;  %v4644_v8 = vsel %vm4643_vm9, 4294967295, %v7805_v15 }
 0xb73   : > { %7671 = vpow2.f32 %v4821_v41 }
 0xb74   : > { %v7654_v59 = vpop.eup %7653 }
 0xb75   : > { %v7656_v27 = vpop.eup %7655  ;;  %v4615_v43 = vsel %vm4583_vm7, %v7654_v59, 0.0 }
 0xb76   : > { %v7658_v56 = vpop.eup %7657  ;;  %v4616_v21 = vsel %vm4583_vm7, %v7656_v27, 0.0 }
 0xb77   : > { %v7660_v46 = vpop.eup %7659  ;;  %v4617_v20 = vadd.f32 %v4616_v21, %v4615_v43  ;;  %v4618_v1 = vsel %vm4583_vm7, %v7658_v56, 0.0 }
 0xb78   : > { %v7662_v58 = vpop.eup %7661  ;;  %v4620_v12 = vsel %vm4583_vm7, %v7660_v46, 0.0 }
 0xb79   : > { %v7664_v5 = vpop.eup %7663  ;;  %v4619_v24 = vadd.f32 %v4618_v1, %v4617_v20  ;;  %v4622_v49 = vsel %vm4588_vm8, %v7662_v58, 0.0 }
 0xb7a   : > { %v7666_v33 = vpop.eup %7665  ;;  %v4823_v14 = vsel %vm4583_vm7, %v7664_v5, 0.0 }
 0xb7b   : > { %v7668_v2 = vpop.eup %7667  ;;  %v4621_v34 = vadd.f32 %v4620_v12, %v4619_v24  ;;  %v4824_v10 = vsel %vm4583_vm7, %v7666_v33, 0.0 }
 0xb7c   : > { %v7670_v44 = vpop.eup %7669  ;;  %v4825_v28 = vadd.f32 %v4824_v10, %v4823_v14  ;;  %v4826_v4 = vsel %vm4583_vm7, %v7668_v2, 0.0 }
 0xb7d   : > { %v4623_v35 = vadd.f32 %v4622_v49, %v4621_v34  ;;  %v7672_v0 = vpop.eup %7671  ;;  %v4828_v32 = vsel %vm4583_vm7, %v7670_v44, 0.0 }
 0xb7e   : > { %v4827_v11 = vadd.f32 %v4826_v4, %v4825_v28  ;;  %v4830_v57 = vsel %vm4588_vm8, %v7672_v0, 0.0 }
 0xb7f   : > { %v4624_v13 = vrot.slane %v4623_v35, 4 }
 0xb80   : > { %v4829_v6 = vadd.f32 %v4828_v32, %v4827_v11 }
 0xb81   : > { %v4625_v17 = vadd.f32 %v4624_v13, %v4623_v35 }
 0xb82   : > { %v4831_v3 = vadd.f32 %v4830_v57, %v4829_v6 }
 0xb83   : > { %v4626_v50 = vrot.slane %v4625_v17, 2 }
 0xb84   : > { %v4832_v61 = vrot.slane %v4831_v3, 4 }
 0xb85   : > { %v4627_v55 = vadd.f32 %v4626_v50, %v4625_v17 }
 0xb86   : > { %v4833_v54 = vadd.f32 %v4832_v61, %v4831_v3 }
 0xb87   : > { %v4628_v63 = vrot.slane %v4627_v55, 1 }
 0xb88   : > { %v4834_v31 = vrot.slane %v4833_v54, 2 }
 0xb89   : > { %v4629_v22 = vadd.f32 %v4628_v63, %v4627_v55 }
 0xb8a   : > { %v4835_v19 = vadd.f32 %v4834_v31, %v4833_v54 }
 0xb8b   : > { %7673 = vrcp.f32 %v4629_v22 }
 0xb8c   : > { %v4836_v29 = vrot.slane %v4835_v19, 1 }
 0xb8e   : > { %v4837_v53 = vadd.f32 %v4836_v29, %v4835_v19 }
 0xb90   : > { %7675 = vrcp.f32 %v4837_v53 }
 0xb95   : > { %v7674_v40 = vpop.eup %7673 }
 0xb96   : > { %v4631_v36 = vmul.f32 %v7674_v40, %v7654_v59  ;;  %v4632_v62 = vmul.f32 %v7674_v40, %v7656_v27  ;;  %v4633_v37 = vmul.f32 %v7674_v40, %v7658_v56  ;;  %v4634_v30 = vmul.f32 %v7674_v40, %v7660_v46 }
 0xb97   : > { %v4635_v52 = vmul.f32 %v7674_v40, %v7662_v58  ;;  %v9220_v59 = vsel %vm4523_vm4, %v4644_v8, 0  ;;  %v4636_v58 = vpack.c.bf16 %v9137_v18, %v9137_v18 }
 0xb98   : > { %v4637_v60 = vpack.c.bf16 %v4632_v62, %v4631_v36  ;;  %v4638_v39 = vpack.c.bf16 %v4634_v30, %v4633_v37 }
 0xb99   : > { %v4639_v20 = vpack.c.bf16 %v4635_v52, %v4635_v52 }
 0xb9a   : > { %v7676_v42 = vpop.eup %7675  ;;  %7206 = vmatpush3.bf16.msra.mxu1 %v4637_v60 }
 0xb9b   : > { %7207 = vmatprep.subr.bf16.mxu1 %v7803_v47  ;;  %v4839_v41 = vmul.f32 %v7676_v42, %v7664_v5  ;;  %v4840_v43 = vmul.f32 %v7676_v42, %v7666_v33  ;;  %v4841_v21 = vmul.f32 %v7676_v42, %v7668_v2  ;;  %v4842_v1 = vmul.f32 %v7676_v42, %v7670_v44  ;;  %v4310_v5 = vpop.permute.xlu1 %4309 }
 0xb9c   : > { %v4843_v24 = vmul.f32 %v7676_v42, %v7672_v0  ;;  %v4647_v46 = vand.u32 %v9220_v59, %v4639_v20  ;;  %v4441_v12 = vadd.f32 %v9099_v25, %v4310_v5  ;;  %v4929_v2 = vpack.c.bf16 %v9140_v48, %v9140_v48 }
 0xb9d   : > { %v4845_v27 = vpack.c.bf16 %v4840_v43, %v4839_v41  ;;  %v4846_v56 = vpack.c.bf16 %v4842_v1, %v4841_v21 }
 0xb9e   : > { %7208 = vmatpush3.bf16.msra.mxu1 %v4638_v39  ;;  %v4847_v33 = vpack.c.bf16 %v4843_v24, %v4843_v24  ;;  %v4844_v34 = vpack.c.bf16 %v4441_v12, %v4441_v12  ;;  %v4940_v10 = vsel %vm4523_vm4, %v4929_v2, 0 }
 0xb9f   : > { %7209 = vmatprep.subr.bf16.mxu1 %v7803_v47  ;;  %v4910_v14 = vpop.trf.xlu1 }
 0xba0   : > { %v4852_v18 = vand.u32 %v4847_v33, %v9220_v59 }
 0xba2   : > { %7210 = vmatpush3.bf16.msra.mxu1 %v4647_v46 }
 0xba3   : > { %7229 = vmatprep.subr.bf16.mxu1 %v7803_v47  ;;  %v4911_v44 = vpop.trf.xlu1 }
 0xba4   : > { %v4926_v25 = vpack.c.bf16 %v4911_v44, %v4910_v14 }
 0xba5   : > { %7212 = vmatmul.mubr.msk.bf16.vlgmr.msra.gmra.mrb[12].mxu1 %vm4583_vm7, %v4636_v58 }
 0xba6   : > { %7230 = vmatpush3.bf16.msra.mxu1 %v4845_v27  ;;  %7235 = vmatprep.mubr.msk.bf16.mxu1 %vm7804_vm5, %v7803_v47 }
 0xba7   : > { %7231 = vmatprep.subr.bf16.mxu1 %v7803_v47  ;;  %v4912_v49 = vpop.trf.xlu1 }
 0xbaa   : > { %7232 = vmatpush3.bf16.msra.mxu1 %v4846_v56 }
 0xbab   : > { %7233 = vmatprep.subr.bf16.mxu1 %v7803_v47  ;;  %v4913_v48 = vpop.trf.xlu1 }
 0xbac   : > { %v4927_v28 = vpack.c.bf16 %v4913_v48, %v4912_v49 }
 0xbae   : > { %7234 = vmatpush3.bf16.msra.mxu1 %v4852_v18 }
 0xbaf   : > { %7239 = vmatprep.subr.bf16.mxu1 %v7803_v47  ;;  %v4914_v35 = vpop.trf.xlu1 }
 0xbb0   : > { %v4928_v4 = vpack.c.bf16 %v4914_v35, %v4914_v35 }
 0xbb1   : > { %7236 = vmatmul.mubr.msk.bf16.vlgmr.msra.gmra.mrb[16].mxu1 %vm4583_vm7, %v4844_v34 }
 0xbb2   : > { %7240 = vmatpush3.bf16.msra.mxu1 %v4940_v10  ;;  %7241 = vmatprep.mubr.msk.bf16.mxu1 %vm7804_vm5, %v7803_v47 }
 0xbb3   : > { %7277 = vmatprep.subr.bf16.mxu1 %v7803_v47 }
 0xbb9   : > { %7242 = vmatmul.mubr.msk.bf16.vlgmr.msra.gmra.mrb[20].mxu1 %vm4513_vm6, %v4926_v25 }
 0xbba   : > { %7245 = vmatprep.mubr.msk.bf16.mxu1 %vm7804_vm5, %v7803_v47 }
 0xbc1   : > { %7246 = vmatmul.mubr.msk.bf16.gmra.mrb[24].mxu1 %vm4513_vm6, %v4927_v28 }
 0xbc2   : > { %7249 = vmatprep.mubr.msk.bf16.mxu1 %vm7804_vm5, %v7803_v47 }
 0xbc9   : > { %7250 = vmatmul.mubr.msk.bf16.gmra.mrb[28].mxu1 %vm4513_vm6, %v4928_v4 }
 0xbca   : > { %7283 = vmatprep.mubr.msk.bf16.mxu1 %vm7804_vm5, %v7803_v47 }
 0xc78   : > { %v4683_v0 = vpop.f32.mrb[12].mxu1 }
 0xc79   : > { %v7213_v11 = vpop.f32.mrb[13].mxu1 }
 0xc7a   : > { %v4686_v13 = vpop.f32.mrb[14].mxu1 }
 0xc7b   : > { %v7214_v32 = vpop.f32.mrb[15].mxu1 }
 0xc84   : > { %v4888_v6 = vpop.f32.mrb[16].mxu1 }
 0xc85   : > { %v9251_v17 = vpack.c.bf16 %v4888_v6, %v4683_v0  ;;  %v7237_v57 = vpop.f32.mrb[17].mxu1 }
 0xc86   : > { %v4891_v3 = vpop.f32.mrb[18].mxu1 }
 0xc87   : > { %v7238_v50 = vpop.f32.mrb[19].mxu1 }
 0xc8c   : > { %v4976_v61 = vpop.f32.mrb[20].mxu1 }
 0xc8d   : > { %v7243_v55 = vpop.f32.mrb[21].mxu1  ;;  %v4977_v30 = vadd.f32 %v4976_v61, %v9131_v16 }
 0xc8e   : > { %v4979_v54 = vpop.f32.mrb[22].mxu1 }
 0xc8f   : > { %v7244_v63 = vpop.f32.mrb[23].mxu1  ;;  %v4980_v60 = vadd.f32 %v4979_v54, %v9133_v51  ;;  %v4998_v8 = vsel %vm4583_vm7, %v4977_v30, -inf }
 0xc91   : > { %v4999_v20 = vsel %vm4583_vm7, %v4980_v60, -inf }
 0xc94   : > { %v4984_v31 = vpop.f32.mrb[24].mxu1 }
 0xc95   : > { %v4985_v22 = vadd.f32 %v4984_v31, %v9128_v23  ;;  %v7247_v19 = vpop.f32.mrb[25].mxu1 }
 0xc96   : > { %v4987_v29 = vpop.f32.mrb[26].mxu1 }
 0xc97   : > { %v4988_v53 = vadd.f32 %v4987_v29, %v9135_v7  ;;  %v7248_v40 = vpop.f32.mrb[27].mxu1  ;;  %v5000_v36 = vsel %vm4583_vm7, %v4985_v22, -inf }
 0xc98   : > { %v4315_v40 = vpop.permute.xlu0 %4314 }
 0xc99   : > { %v5001_v62 = vsel %vm4583_vm7, %v4988_v53, -inf }
 0xc9a   : > { %v5005_v37 = vmax.f32 %v5000_v36, %v5001_v62 }
 0xc9c   : > { %v4992_v52 = vpop.f32.mrb[28].mxu1 }
 0xc9d   : > { %v4993_v39 = vadd.f32 %v4992_v52, %v9126_v9  ;;  %v7251_v42 = vpop.f32.mrb[29].mxu1 }
 0xc9e   : > { %v4995_v15 = vpop.f32.mrb[30].mxu1 }
 0xc9f   : > { %v5002_v41 = vsel %vm4588_vm8, %v4993_v39, -inf  ;;  %v7252_v43 = vpop.f32.mrb[31].mxu1  ;;  %v4280_v15 = vpop.permute.xlu0 %4279 }
 0xca0   : > { %v5003_v21 = vmax.f32 %v4998_v8, %v5002_v41  ;;  %v4417_v41 = vadd.f32 %v9076_v45, %v4280_v15  ;;  %v4446_v43 = vadd.f32 %v9093_v38, %v4315_v40 }
 0xca2   : > { %v5004_v1 = vmax.f32 %v5003_v21, %v4999_v20 }
 0xca3   : > { %v5115_v21 = vpop.trf.xlu0 }
 0xca4   : > { %v5006_v24 = vmax.f32 %v5004_v1, %v5005_v37  ;;  %v5134_v1 = vpack.c.bf16 %v4417_v41, %v4417_v41 }
 0xca6   : > { %v5007_v27 = vrot.slane %v5006_v24, 4 }
 0xca8   : > { %v5008_v56 = vmax.f32 %v5006_v24, %v5007_v27  ;;  %v5049_v24 = vpack.c.bf16 %v4446_v43, %v4446_v43  ;;  %v5145_v27 = vsel %vm4523_vm4, %v5134_v1, 0 }
 0xcaa   : > { %v5009_v46 = vrot.slane %v5008_v56, 2 }
 0xcac   : > { %v5010_v58 = vmax.f32 %v5008_v56, %v5009_v46  ;;  %v5116_v56 = vpop.trf.xlu0 }
 0xcad   : > { %v5131_v45 = vpack.c.bf16 %v5116_v56, %v5115_v21 }
 0xcae   : > { %v5011_v5 = vrot.slane %v5010_v58, 1 }
 0xcb0   : > { %v5012_v33 = vmax.f32 %v5010_v58, %v5011_v5  ;;  %v5117_v38 = vpop.trf.xlu0 }
 0xcb2   : > { %v5013_v12 = vsub.f32 %v4977_v30, %v5012_v33  ;;  %v5014_v14 = vsub.f32 %v4980_v60, %v5012_v33  ;;  %v5015_v18 = vsub.f32 %v4985_v22, %v5012_v33  ;;  %v5016_v2 = vsub.f32 %v4988_v53, %v5012_v33 }
 0xcb3   : > { %v5017_v34 = vsub.f32 %v4993_v39, %v5012_v33 }
 0xcb4   : > { %v5018_v10 = vmul.f32 1.442695, %v5013_v12  ;;  %v5020_v44 = vmul.f32 1.442695, %v5014_v14  ;;  %v5022_v25 = vmul.f32 1.442695, %v5015_v18  ;;  %v5118_v46 = vpop.trf.xlu0 }
 0xcb5   : > { %v5024_v49 = vmul.f32 1.442695, %v5016_v2  ;;  %v5026_v48 = vmul.f32 1.442695, %v5017_v34  ;;  %v5132_v58 = vpack.c.bf16 %v5118_v46, %v5117_v38 }
 0xcb6   : > { %7677 = vpow2.f32 %v5018_v10 }
 0xcb7   : > { %7679 = vpow2.f32 %v5020_v44 }
 0xcb8   : > { %7681 = vpow2.f32 %v5022_v25  ;;  %v5119_v5 = vpop.trf.xlu0 }
 0xcb9   : > { %7683 = vpow2.f32 %v5024_v49  ;;  %v5133_v33 = vpack.c.bf16 %v5119_v5, %v5119_v5 }
 0xcba   : > { %7685 = vpow2.f32 %v5026_v48 }
 0xcc0   : > { %v7678_v28 = vpop.eup %7677 }
 0xcc1   : > { %v7680_v35 = vpop.eup %7679  ;;  %v5028_v4 = vsel %vm4583_vm7, %v7678_v28, 0.0 }
 0xcc2   : > { %v7682_v0 = vpop.eup %7681  ;;  %v5029_v11 = vsel %vm4583_vm7, %v7680_v35, 0.0 }
 0xcc3   : > { %v7684_v13 = vpop.eup %7683  ;;  %v5030_v32 = vadd.f32 %v5029_v11, %v5028_v4  ;;  %v5031_v6 = vsel %vm4583_vm7, %v7682_v0, 0.0 }
 0xcc4   : > { %v7686_v57 = vpop.eup %7685  ;;  %v5033_v50 = vsel %vm4583_vm7, %v7684_v13, 0.0 }
 0xcc5   : > { %v5032_v3 = vadd.f32 %v5031_v6, %v5030_v32  ;;  %v5035_v55 = vsel %vm4588_vm8, %v7686_v57, 0.0 }
 0xcc7   : > { %v5034_v61 = vadd.f32 %v5033_v50, %v5032_v3 }
 0xcc9   : > { %v5036_v54 = vadd.f32 %v5035_v55, %v5034_v61 }
 0xccb   : > { %v5037_v63 = vrot.slane %v5036_v54, 4 }
 0xccd   : > { %v5038_v31 = vadd.f32 %v5037_v63, %v5036_v54 }
 0xccf   : > { %v5039_v22 = vrot.slane %v5038_v31, 2 }
 0xcd1   : > { %v5040_v19 = vadd.f32 %v5039_v22, %v5038_v31 }
 0xcd3   : > { %v5041_v29 = vrot.slane %v5040_v19, 1 }
 0xcd5   : > { %v5042_v53 = vadd.f32 %v5041_v29, %v5040_v19 }
 0xcd7   : > { %7687 = vrcp.f32 %v5042_v53 }
 0xce1   : > { %v7688_v36 = vpop.eup %7687 }
 0xce2   : > { %v5044_v62 = vmul.f32 %v7688_v36, %v7678_v28  ;;  %v5045_v37 = vmul.f32 %v7688_v36, %v7680_v35  ;;  %v5046_v30 = vmul.f32 %v7688_v36, %v7682_v0  ;;  %v5047_v52 = vmul.f32 %v7688_v36, %v7684_v13 }
 0xce3   : > { %v5048_v60 = vmul.f32 %v7688_v36, %v7686_v57 }
 0xce4   : > { %v5050_v39 = vpack.c.bf16 %v5045_v37, %v5044_v62  ;;  %v5051_v42 = vpack.c.bf16 %v5047_v52, %v5046_v30 }
 0xce5   : > { %v5052_v8 = vpack.c.bf16 %v5048_v60, %v5048_v60 }
 0xce6   : > { %7254 = vmatpush3.bf16.msra.mxu0 %v5050_v39 }
 0xce7   : > { %7255 = vmatprep.subr.bf16.mxu0 %v7803_v47  ;;  %v5057_v20 = vand.u32 %v5052_v8, %v9220_v59 }
 0xcea   : > { %7256 = vmatpush3.bf16.msra.mxu0 %v5051_v42 }
 0xceb   : > { %7257 = vmatprep.subr.bf16.mxu0 %v7803_v47 }
 0xcee   : > { %7258 = vmatpush3.bf16.msra.mxu0 %v5057_v20 }
 0xcef   : > { %7263 = vmatprep.subr.bf16.mxu0 %v7803_v47 }
 0xcf1   : > { %7260 = vmatmul.mubr.msk.bf16.vlgmr.msra.gmra.mrb[24].mxu0 %vm4583_vm7, %v5049_v24 }
 0xcf2   : > { %7264 = vmatpush3.bf16.msra.mxu0 %v5145_v27  ;;  %7265 = vmatprep.mubr.msk.bf16.mxu0 %vm7804_vm5, %v7803_v47 }
 0xcf9   : > { %7266 = vmatmul.mubr.msk.bf16.vlgmr.msra.gmra.mrb[28].mxu0 %vm4513_vm6, %v5131_v45 }
 0xcfa   : > { %7269 = vmatprep.mubr.msk.bf16.mxu0 %vm7804_vm5, %v7803_v47 }
 0xd01   : > { %7270 = vmatmul.mubr.msk.bf16.gmra.mrb[32].mxu0 %vm4513_vm6, %v5132_v58 }
 0xd02   : > { %7273 = vmatprep.mubr.msk.bf16.mxu0 %vm7804_vm5, %v7803_v47 }
 0xd09   : > { %7274 = vmatmul.mubr.msk.bf16.gmra.mrb[36].mxu0 %vm4513_vm6, %v5133_v33 }
 0xdc4   : > { %v9285_v12 = vpop.f32.mrb[24].mxu0 }
 0xdc5   : > { %v7261_v14 = vpop.f32.mrb[25].mxu0 }
 0xdc6   : > { %v5096_v18 = vpop.f32.mrb[26].mxu0 }
 0xdc7   : > { %v7262_v2 = vpop.f32.mrb[27].mxu0 }
 0xdcc   : > { %v5181_v34 = vpop.f32.mrb[28].mxu0 }
 0xdcd   : > { %v7267_v10 = vpop.f32.mrb[29].mxu0  ;;  %v5182_v6 = vadd.f32 %v5181_v34, %v9131_v16 }
 0xdce   : > { %v5184_v44 = vpop.f32.mrb[30].mxu0 }
 0xdcf   : > { %v7268_v25 = vpop.f32.mrb[31].mxu0  ;;  %v5185_v3 = vadd.f32 %v5184_v44, %v9133_v51 }
 0xdd1   : > { %v5204_v31 = vsel %vm4583_vm7, %v5185_v3, -inf }
 0xdd4   : > { %v5189_v49 = vpop.f32.mrb[32].mxu0 }
 0xdd5   : > { %v5190_v48 = vadd.f32 %v5189_v49, %v9128_v23  ;;  %v7271_v28 = vpop.f32.mrb[33].mxu0  ;;  %v5203_v23 = vsel %vm4583_vm7, %v5182_v6, -inf }
 0xdd6   : > { %v5192_v35 = vpop.f32.mrb[34].mxu0 }
 0xdd7   : > { %v5193_v4 = vadd.f32 %v5192_v35, %v9135_v7  ;;  %v7272_v0 = vpop.f32.mrb[35].mxu0  ;;  %v5205_v11 = vsel %vm4583_vm7, %v5190_v48, -inf }
 0xdd9   : > { %v5206_v13 = vsel %vm4583_vm7, %v5193_v4, -inf }
 0xdda   : > { %v5210_v32 = vmax.f32 %v5205_v11, %v5206_v13  ;;  %v4320_v13 = vpop.permute.xlu1 %4319 }
 0xddc   : > { %v5197_v57 = vpop.f32.mrb[36].mxu0 }
 0xddd   : > { %v5198_v50 = vadd.f32 %v5197_v57, %v9126_v9  ;;  %v7275_v61 = vpop.f32.mrb[37].mxu0 }
 0xdde   : > { %v5200_v55 = vpop.f32.mrb[38].mxu0 }
 0xddf   : > { %v5207_v54 = vsel %vm4588_vm8, %v5198_v50, -inf  ;;  %v7276_v7 = vpop.f32.mrb[39].mxu0 }
 0xde0   : > { %v5208_v63 = vmax.f32 %v5203_v23, %v5207_v54  ;;  %v7647_v54 = vld [vmem:[%s8041_s9] sm:$0xff]   ;;  %v5322_v7 = vpop.permute.xlu1 %5321 }
 0xde1   : > { %7299 = vmatprep.mubr.msk.bf16.mxu0 %vm4352_vm3, %v7647_v54 }
 0xde2   : > { %v5209_v22 = vmax.f32 %v5208_v63, %v5204_v31  ;;  %v5317_v31 = vpop.permute.xlu0 %5316 }
 0xde4   : > { %v5211_v19 = vmax.f32 %v5209_v22, %v5210_v32  ;;  %v5327_v63 = vpop.permute.xlu1 %5326 }
 0xde6   : > { %v5212_v29 = vrot.slane %v5211_v19, 4 }
 0xde8   : > { %v5213_v53 = vmax.f32 %v5211_v19, %v5212_v29 }
 0xdea   : > { %v5214_v16 = vrot.slane %v5213_v53, 2 }
 0xdec   : > { %v5215_v40 = vmax.f32 %v5213_v53, %v5214_v16 }
 0xdee   : > { %v5216_v36 = vrot.slane %v5215_v40, 1 }
 0xdf0   : > { %v5217_v51 = vmax.f32 %v5215_v40, %v5216_v36  ;;  %v7721_v40 = vld [vmem:[#allocation2] sm:$0xff] }
 0xdf2   : > { %v5218_v62 = vsub.f32 %v5182_v6, %v5217_v51  ;;  %v5219_v9 = vsub.f32 %v5185_v3, %v5217_v51  ;;  %v5220_v37 = vsub.f32 %v5190_v48, %v5217_v51  ;;  %v5221_v30 = vsub.f32 %v5193_v4, %v5217_v51 }
 0xdf3   : > { %v5222_v52 = vsub.f32 %v5198_v50, %v5217_v51  ;;  %v4449_v6 = vadd.f32 %v9097_v26, %v4320_v13  ;;  %v7645_v50 = vld [vmem:[%s8020_s16] sm:$0xff]  }
 0xdf4   : > { %v5223_v60 = vmul.f32 1.442695, %v5218_v62  ;;  %v5225_v39 = vmul.f32 1.442695, %v5219_v9  ;;  %v5227_v42 = vmul.f32 1.442695, %v5220_v37 }
 0xdf5   : > { %v5229_v15 = vmul.f32 1.442695, %v5221_v30  ;;  %v5231_v8 = vmul.f32 1.442695, %v5222_v52  ;;  %v5254_v3 = vpack.c.bf16 %v4449_v6, %v4449_v6  ;;  %v7722_v9 = vld [vmem:[#allocation2 + $0x10] sm:$0xff]  ;;  %v7723_v30 = vld [vmem:[#allocation2 + $0x8] sm:$0xff] }
 0xdf6   : > { %7689 = vpow2.f32 %v5223_v60 }
 0xdf7   : > { %7691 = vpow2.f32 %v5225_v39  ;;  %v7724_v39 = vld [vmem:[#allocation2 + $0x18] sm:$0xff] }
 0xdf8   : > { %7693 = vpow2.f32 %v5227_v42 }
 0xdf9   : > { %7695 = vpow2.f32 %v5229_v15 }
 0xdfa   : > { %7697 = vpow2.f32 %v5231_v8 }
 0xe00   : > { %v7690_v41 = vpop.eup %7689 }
 0xe01   : > { %v7692_v43 = vpop.eup %7691  ;;  %v5233_v21 = vsel %vm4583_vm7, %v7690_v41, 0.0 }
 0xe02   : > { %v7694_v20 = vpop.eup %7693  ;;  %v5234_v1 = vsel %vm4583_vm7, %v7692_v43, 0.0 }
 0xe03   : > { %v7696_v24 = vpop.eup %7695  ;;  %v5235_v27 = vadd.f32 %v5234_v1, %v5233_v21  ;;  %v5236_v56 = vsel %vm4583_vm7, %v7694_v20, 0.0 }
 0xe04   : > { %v7698_v45 = vpop.eup %7697  ;;  %v5238_v46 = vsel %vm4583_vm7, %v7696_v24, 0.0 }
 0xe05   : > { %v5237_v38 = vadd.f32 %v5236_v56, %v5235_v27  ;;  %v5240_v5 = vsel %vm4588_vm8, %v7698_v45, 0.0 }
 0xe07   : > { %v5239_v58 = vadd.f32 %v5238_v46, %v5237_v38 }
 0xe09   : > { %v5241_v33 = vadd.f32 %v5240_v5, %v5239_v58 }
 0xe0b   : > { %v5242_v14 = vrot.slane %v5241_v33, 4 }
 0xe0d   : > { %v5243_v18 = vadd.f32 %v5242_v14, %v5241_v33 }
 0xe0f   : > { %v5244_v2 = vrot.slane %v5243_v18, 2 }
 0xe11   : > { %v5245_v34 = vadd.f32 %v5244_v2, %v5243_v18 }
 0xe13   : > { %v5246_v10 = vrot.slane %v5245_v34, 1 }
 0xe15   : > { %v5247_v44 = vadd.f32 %v5246_v10, %v5245_v34 }
 0xe17   : > { %7699 = vrcp.f32 %v5247_v44 }
 0xe21   : > { %v7700_v25 = vpop.eup %7699 }
 0xe22   : > { %v5249_v49 = vmul.f32 %v7700_v25, %v7690_v41  ;;  %v5250_v48 = vmul.f32 %v7700_v25, %v7692_v43  ;;  %v5251_v28 = vmul.f32 %v7700_v25, %v7694_v20  ;;  %v5252_v35 = vmul.f32 %v7700_v25, %v7696_v24 }
 0xe23   : > { %v5253_v4 = vmul.f32 %v7700_v25, %v7698_v45 }
 0xe24   : > { %v5255_v0 = vpack.c.bf16 %v5250_v48, %v5249_v49  ;;  %v5256_v11 = vpack.c.bf16 %v5252_v35, %v5251_v28 }
 0xe25   : > { %v5257_v32 = vpack.c.bf16 %v5253_v4, %v5253_v4 }
 0xe26   : > { %7278 = vmatpush3.bf16.msra.mxu1 %v5255_v0 }
 0xe27   : > { %7279 = vmatprep.subr.bf16.mxu1 %v7803_v47  ;;  %v5262_v57 = vand.u32 %v5257_v32, %v9220_v59  ;;  %v7646_v59 = vld [vmem:[%s8020_s16 + $0x8] sm:$0xff]  }
 0xe2a   : > { %7280 = vmatpush3.bf16.msra.mxu1 %v5256_v11 }
 0xe2b   : > { %7281 = vmatprep.subr.bf16.mxu1 %v7803_v47 }
 0xe2e   : > { %7282 = vmatpush3.bf16.msra.mxu1 %v5262_v57 }
 0xe2f   : > { %7287 = vmatprep.subr.bf16.mxu1 %v9251_v17 }
 0xe31   : > { %7284 = vmatmul.mubr.msk.bf16.vlgmr.msra.gmra.mrb[32].mxu1 %vm4583_vm7, %v5254_v3 }
 0xe32   : > { %7288 = vmatpush3.bf16.msra.mxu1 %v9251_v17  ;;  %7291 = vmatprep.mubr.msk.bf16.mxu1 %vm4352_vm3, %v7645_v50  ;;  %v5462_v50 = vpop.permute.xlu0 %5461 }
 0xf04   : > { %v5298_v61 = vpop.f32.mrb[32].mxu1 }
 0xf05   : > { %v5309_v26 = vpack.c.bf16 %v5298_v61, %v9285_v12  ;;  %v7285_v55 = vpop.f32.mrb[33].mxu1  ;;  %v5332_v12 = vpop.permute.xlu1 %5331 }
 0xf06   : > { %v5301_v23 = vpop.f32.mrb[34].mxu1 }
 0xf07   : > { %v7286_v47 = vpop.f32.mrb[35].mxu1  ;;  %7289 = vmatprep.subr.bf16.mxu1 %v5309_v26  ;;  %v5486_v23 = vpop.permute.xlu0 %5485 }
 0xf08   : > { %7290 = vmatpush3.bf16.msra.mxu1 %v5309_v26 }
 0xf09   : > { %v5457_v3 = vpop.permute.xlu1 %5456 }
 0xf0b   : > { %7292 = vmatmul.mubr.msk.bf16.vlgmr.msra.gmra.mrb[36].mxu1 %vm4352_vm3, %v7646_v59  ;;  %v5472_v59 = vpop.permute.xlu0 %5471 }
 0xf0d   : > { %v5481_v55 = vpop.permute.xlu1 %5480 }
 0xf11   : > { %v5467_v47 = vpop.permute.xlu1 %5466 }
 0xfde   : > { %v7293_v17 = vpop.f32.mrb[36].mxu1 }
 0xfdf   : > { %v5384_v22 = vpop.f32.mrb[37].mxu1  ;;  %v5393_v19 = vadd.f32 %v7293_v17, %v5327_v63 }
 0xfe0   : > { %v5385_v29 = vadd.f32 %v5384_v22, %v5317_v31  ;;  %v7294_v53 = vpop.f32.mrb[38].mxu1 }
 0xfe1   : > { %v5387_v16 = vpop.f32.mrb[39].mxu1  ;;  %v5396_v51 = vadd.f32 %v7294_v53, %v5332_v12  ;;  %v5401_v37 = vadd.f32 %v7722_v9, %v5393_v19  ;;  %v5491_v12 = vpop.permute.xlu1 %5490 }
 0xfe2   : > { %v5399_v36 = vadd.f32 %v7721_v40, %v5385_v29  ;;  %v5388_v62 = vadd.f32 %v5387_v16, %v5322_v7  ;;  %v5496_v16 = vpop.permute.xlu0 %5495 }
 0xfe3   : > { %v5402_v42 = vadd.f32 %v7724_v39, %v5396_v51  ;;  %v5414_v41 = vsel %vm4583_vm7, %v5401_v37, 0.0  ;;  %v7651_v39 = vld [vmem:[%s8049_s20] sm:$0xff]  }
 0xfe4   : > { %v5400_v52 = vadd.f32 %v7723_v30, %v5388_v62  ;;  %v5411_v60 = vsel %vm4583_vm7, %v5399_v36, 0.0  ;;  %v7648_v30 = vld [vmem:[%s8041_s9 + $0x8] sm:$0xff]   ;;  %7315 = vmatprep.mubr.msk.bf16.mxu1 %vm5771_vm10, %v7651_v39 }
 0xfe5   : > { %v5416_v21 = vsel %vm4583_vm7, %v5402_v42, 0.0 }
 0xfe6   : > { %v5412_v15 = vsel %vm4583_vm7, %v5400_v52, 0.0 }
 0xfe7   : > { %v5413_v8 = vadd.f32 %v5412_v15, %v5411_v60  ;;  %v7650_v60 = vld [vmem:[%s8041_s9 + $0x18] sm:$0xff]   ;;  %v5528_v15 = vpop.permute.xlu0 %5527 }
 0xfe9   : > { %v5415_v43 = vadd.f32 %v5414_v41, %v5413_v8 }
 0xfeb   : > { %v5417_v20 = vadd.f32 %v5416_v21, %v5415_v43  ;;  %v5538_v41 = vpop.permute.xlu0 %5537 }
 0xfed   : > { %v5418_v1 = vrot.slane %v5417_v20, 4 }
 0xfef   : > { %v5419_v24 = vadd.f32 %v5418_v1, %v5417_v20 }
 0xff1   : > { %v5420_v27 = vrot.slane %v5419_v24, 2 }
 0xff3   : > { %v5421_v56 = vadd.f32 %v5420_v27, %v5419_v24 }
 0xff5   : > { %v5422_v45 = vrot.slane %v5421_v56, 1 }
 0xff7   : > { %v5423_v38 = vadd.f32 %v5422_v45, %v5421_v56 }
 0xff9   : > { %v5425_v46 = vmul.f32 0.03125, %v5423_v38 }
 0xffb   : > { %v5426_v58 = vsub.f32 %v5399_v36, %v5425_v46  ;;  %v5427_v5 = vsub.f32 %v5400_v52, %v5425_v46  ;;  %v5428_v33 = vsub.f32 %v5401_v37, %v5425_v46  ;;  %v5429_v14 = vsub.f32 %v5402_v42, %v5425_v46  ;;  %v7649_v52 = vld [vmem:[%s8041_s9 + $0x10] sm:$0xff]   ;;  %v5523_v42 = vpop.permute.xlu1 %5522  ;;  %v5548_v46 = vpop.permute.xlu0 %5547 }
 0xffd   : > { %v5430_v18 = vmul.f32 %v5426_v58, %v5426_v58  ;;  %v5431_v2 = vmul.f32 %v5427_v5, %v5427_v5  ;;  %v5432_v34 = vmul.f32 %v5428_v33, %v5428_v33  ;;  %v5433_v10 = vmul.f32 %v5429_v14, %v5429_v14 }
 0xfff   : > { %v5434_v44 = vsel %vm4583_vm7, %v5430_v18, 0.0  ;;  %v5435_v25 = vsel %vm4583_vm7, %v5431_v2, 0.0  ;;  %v5437_v48 = vsel %vm4583_vm7, %v5432_v34, 0.0  ;;  %v5439_v35 = vsel %vm4583_vm7, %v5433_v10, 0.0  ;;  %v5533_v8 = vpop.permute.xlu1 %5532 }
0x1000   : > { %v5436_v49 = vadd.f32 %v5435_v25, %v5434_v44 }
0x1002   : > { %v5438_v28 = vadd.f32 %v5437_v48, %v5436_v49 }
0x1003   : > { %v5543_v1 = vpop.permute.xlu1 %5542 }
0x1004   : > { %v5440_v4 = vadd.f32 %v5439_v35, %v5438_v28 }
0x1006   : > { %v5441_v0 = vrot.slane %v5440_v4, 4 }
0x1007   : > { %v5553_v44 = vpop.permute.xlu1 %5552 }
0x1008   : > { %v5442_v11 = vadd.f32 %v5441_v0, %v5440_v4 }
0x100a   : > { %v5443_v13 = vrot.slane %v5442_v11, 2 }
0x100c   : > { %v5444_v32 = vadd.f32 %v5443_v13, %v5442_v11  ;;  %v5558_v11 = vpop.permute.xlu0 %5557 }
0x100e   : > { %v5445_v6 = vrot.slane %v5444_v32, 1 }
0x1010   : > { %v5446_v57 = vadd.f32 %v5445_v6, %v5444_v32 }
0x1012   : > { %v5447_v61 = vmul.f32 0.03125, %v5446_v57 }
0x1014   : > { %v5448_v26 = vadd.f32 1e-05, %v5447_v61 }
0x1016   : > { %7701 = vrsqrt.f32 %v5448_v26 }
0x1020   : > { %v7702_v54 = vpop.eup %7701 }
0x1021   : > { %v5451_v7 = vmul.f32 %v7702_v54, %v5427_v5  ;;  %v5450_v63 = vmul.f32 %v7702_v54, %v5426_v58  ;;  %v5452_v17 = vmul.f32 %v7702_v54, %v5428_v33  ;;  %v5453_v31 = vmul.f32 %v7702_v54, %v5429_v14 }
0x1023   : > { %v5474_v22 = vmul.f32 %v5457_v3, %v5450_v63  ;;  %v5475_v19 = vmul.f32 %v5462_v50, %v5451_v7  ;;  %v5476_v29 = vmul.f32 %v5467_v47, %v5452_v17  ;;  %v5477_v53 = vmul.f32 %v5472_v59, %v5453_v31 }
0x1025   : > { %v9324_v40 = vadd.f32 %v5481_v55, %v5474_v22  ;;  %v9326_v36 = vadd.f32 %v5486_v23, %v5475_v19  ;;  %v9328_v51 = vadd.f32 %v5491_v12, %v5476_v29  ;;  %v9330_v62 = vadd.f32 %v5496_v16, %v5477_v53 }
0x1027   : > { %v5510_v9 = vpack.c.bf16 %v9326_v36, %v9324_v40  ;;  %v5511_v37 = vpack.c.bf16 %v9330_v62, %v9328_v51 }
0x1029   : > { %7295 = vmatprep.subr.bf16.mxu0 %v5510_v9 }
0x102a   : > { %7296 = vmatpush3.bf16.msra.mxu0 %v5510_v9 }
0x102b   : > { %7297 = vmatprep.subr.bf16.mxu0 %v5511_v37 }
0x102e   : > { %7298 = vmatpush3.bf16.msra.mxu0 %v5511_v37 }
0x1031   : > { %7300 = vmatmul.mubr.msk.bf16.vlgmr.msra.gmra.mrb[40].mxu0 %vm4352_vm3, %v7648_v30 }
0x1032   : > { %7303 = vmatprep.mubr.msk.bf16.mxu0 %vm4352_vm3, %v7649_v52 }
0x1039   : > { %7304 = vmatmul.mubr.msk.bf16.gmra.mrb[44].mxu0 %vm4352_vm3, %v7650_v60 }
0x1104   : > { %v7301_v43 = vpop.f32.mrb[40].mxu0 }
0x1105   : > { %v9344_v21 = vadd.f32 %v7301_v43, %v5533_v8  ;;  %v5626_v20 = vpop.f32.mrb[41].mxu0 }
0x1106   : > { %v9346_v24 = vadd.f32 %v5626_v20, %v5523_v42  ;;  %v7302_v27 = vpop.f32.mrb[42].mxu0 }
0x1107   : > { %v5659_v56 = vmul.f32 %v9344_v21, %v9344_v21  ;;  %v9350_v45 = vadd.f32 %v7302_v27, %v5538_v41  ;;  %v5629_v38 = vpop.f32.mrb[43].mxu0 }
0x1108   : > { %v5657_v58 = vmul.f32 %v9346_v24, %v9346_v24  ;;  %v9354_v5 = vadd.f32 %v5629_v38, %v5528_v15 }
0x1109   : > { %v5667_v33 = vmul.f32 %v5659_v56, %v9344_v21  ;;  %v5660_v14 = vmul.f32 %v9350_v45, %v9350_v45 }
0x110a   : > { %v5665_v18 = vmul.f32 %v5657_v58, %v9346_v24  ;;  %v5658_v2 = vmul.f32 %v9354_v5, %v9354_v5 }
0x110b   : > { %v5675_v34 = vmul.f32 0.044715, %v5667_v33  ;;  %v5668_v10 = vmul.f32 %v5660_v14, %v9350_v45 }
0x110c   : > { %v5673_v25 = vmul.f32 0.044715, %v5665_v18  ;;  %v5666_v49 = vmul.f32 %v5658_v2, %v9354_v5  ;;  %v7305_v48 = vpop.f32.mrb[44].mxu0 }
0x110d   : > { %v5683_v28 = vadd.f32 %v5675_v34, %v9344_v21  ;;  %v5676_v35 = vmul.f32 0.044715, %v5668_v10  ;;  %v9365_v4 = vadd.f32 %v7305_v48, %v5553_v44  ;;  %v5642_v0 = vpop.f32.mrb[45].mxu0 }
0x110e   : > { %v5681_v13 = vadd.f32 %v5673_v25, %v9346_v24  ;;  %v5674_v32 = vmul.f32 0.044715, %v5666_v49  ;;  %v9368_v6 = vadd.f32 %v5642_v0, %v5543_v1  ;;  %v7306_v57 = vpop.f32.mrb[46].mxu0 }
0x110f   : > { %v5691_v3 = vmul.f32 0.7978846, %v5683_v28  ;;  %v5684_v50 = vadd.f32 %v5676_v35, %v9350_v45  ;;  %v5663_v61 = vmul.f32 %v9365_v4, %v9365_v4  ;;  %v9373_v26 = vadd.f32 %v7306_v57, %v5558_v11  ;;  %v5645_v55 = vpop.f32.mrb[47].mxu0 }
0x1110   : > { %v5689_v23 = vmul.f32 0.7978846, %v5681_v13  ;;  %v5682_v47 = vadd.f32 %v5674_v32, %v9354_v5  ;;  %v5661_v59 = vmul.f32 %v9368_v6, %v9368_v6  ;;  %v9378_v54 = vadd.f32 %v5645_v55, %v5548_v46 }
0x1111   : > { %7703 = vtanh.f32 %v5691_v3  ;;  %v5692_v7 = vmul.f32 0.7978846, %v5684_v50  ;;  %v5671_v63 = vmul.f32 %v5663_v61, %v9365_v4  ;;  %v5664_v17 = vmul.f32 %v9373_v26, %v9373_v26 }
0x1112   : > { %7705 = vtanh.f32 %v5689_v23  ;;  %v5690_v31 = vmul.f32 0.7978846, %v5682_v47  ;;  %v5669_v22 = vmul.f32 %v5661_v59, %v9368_v6  ;;  %v5662_v19 = vmul.f32 %v9378_v54, %v9378_v54 }
0x1113   : > { %7707 = vtanh.f32 %v5692_v7  ;;  %v5679_v29 = vmul.f32 0.044715, %v5671_v63  ;;  %v5672_v53 = vmul.f32 %v5664_v17, %v9373_v26  ;;  %v7652_v7 = vld [vmem:[%s8049_s20 + $0x8] sm:$0xff]   ;;  %v5744_v63 = vpop.permute.xlu1 %5743  ;;  %v5749_v17 = vpop.permute.xlu0 %5748 }
0x1114   : > { %7709 = vtanh.f32 %v5690_v31  ;;  %v5677_v12 = vmul.f32 0.044715, %v5669_v22  ;;  %v5670_v16 = vmul.f32 %v5662_v19, %v9378_v54 }
0x1115   : > { %v5687_v9 = vadd.f32 %v5679_v29, %v9365_v4  ;;  %v5680_v37 = vmul.f32 0.044715, %v5672_v53 }
0x1116   : > { %v5685_v30 = vadd.f32 %v5677_v12, %v9368_v6  ;;  %v5678_v52 = vmul.f32 0.044715, %v5670_v16 }
0x1117   : > { %v5695_v60 = vmul.f32 0.7978846, %v5687_v9  ;;  %v5688_v39 = vadd.f32 %v5680_v37, %v9373_v26  ;;  %v5759_v29 = vpop.permute.xlu0 %5758 }
0x1118   : > { %v5693_v42 = vmul.f32 0.7978846, %v5685_v30  ;;  %v5686_v15 = vadd.f32 %v5678_v52, %v9378_v54 }
0x1119   : > { %7711 = vtanh.f32 %v5695_v60  ;;  %v5696_v8 = vmul.f32 0.7978846, %v5688_v39 }
0x111a   : > { %7713 = vtanh.f32 %v5693_v42  ;;  %v5694_v41 = vmul.f32 0.7978846, %v5686_v15 }
0x111b   : > { %v7704_v43 = vpop.eup %7703  ;;  %7715 = vtanh.f32 %v5696_v8 }
0x111c   : > { %v7706_v20 = vpop.eup %7705  ;;  %7717 = vtanh.f32 %v5694_v41  ;;  %v5707_v1 = vadd.f32 1.0, %v7704_v43 }
0x111d   : > { %v7708_v27 = vpop.eup %7707  ;;  %v5705_v56 = vadd.f32 1.0, %v7706_v20 }
0x111e   : > { %v7710_v38 = vpop.eup %7709  ;;  %v5708_v46 = vadd.f32 1.0, %v7708_v27  ;;  %v5715_v58 = vmul.f32 0.5, %v5707_v1 }
0x111f   : > { %v5706_v33 = vadd.f32 1.0, %v7710_v38  ;;  %v5713_v14 = vmul.f32 0.5, %v5705_v56 }
0x1120   : > { %v5716_v18 = vmul.f32 0.5, %v5708_v46  ;;  %v5723_v34 = vmul.f32 %v5715_v58, %v9344_v21 }
0x1121   : > { %v5714_v2 = vmul.f32 0.5, %v5706_v33  ;;  %v5721_v25 = vmul.f32 %v5713_v14, %v9346_v24 }
0x1122   : > { %v5724_v10 = vmul.f32 %v5716_v18, %v9350_v45 }
0x1123   : > { %v7712_v44 = vpop.eup %7711  ;;  %v5722_v49 = vmul.f32 %v5714_v2, %v9354_v5 }
0x1124   : > { %v7714_v48 = vpop.eup %7713  ;;  %v5734_v28 = vpack.c.bf16 %v5724_v10, %v5723_v34  ;;  %v5711_v35 = vadd.f32 1.0, %v7712_v44 }
0x1125   : > { %v7716_v0 = vpop.eup %7715  ;;  %v5733_v11 = vpack.c.bf16 %v5722_v49, %v5721_v25  ;;  %v5709_v13 = vadd.f32 1.0, %v7714_v48 }
0x1126   : > { %v7718_v32 = vpop.eup %7717  ;;  %v5712_v57 = vadd.f32 1.0, %v7716_v0  ;;  %v5719_v3 = vmul.f32 0.5, %v5711_v35 }
0x1127   : > { %7307 = vmatprep.subr.bf16.mxu1 %v5733_v11  ;;  %v5710_v50 = vadd.f32 1.0, %v7718_v32  ;;  %v5717_v21 = vmul.f32 0.5, %v5709_v13 }
0x1128   : > { %7308 = vmatpush3.bf16.msra.mxu1 %v5733_v11  ;;  %v5720_v45 = vmul.f32 0.5, %v5712_v57  ;;  %v5727_v24 = vmul.f32 %v5719_v3, %v9365_v4  ;;  %v5754_v4 = vpop.permute.xlu1 %5753  ;;  %v5889_v3 = vpop.permute.xlu0 %5888 }
0x1129   : > { %7309 = vmatprep.subr.bf16.mxu1 %v5734_v28  ;;  %v5718_v61 = vmul.f32 0.5, %v5710_v50  ;;  %v5725_v55 = vmul.f32 %v5717_v21, %v9368_v6 }
0x112a   : > { %v5728_v5 = vmul.f32 %v5720_v45, %v9373_v26 }
0x112b   : > { %v5726_v23 = vmul.f32 %v5718_v61, %v9378_v54 }
0x112c   : > { %7310 = vmatpush3.bf16.msra.mxu1 %v5734_v28  ;;  %v5736_v47 = vpack.c.bf16 %v5728_v5, %v5727_v24  ;;  %v5884_v57 = vpop.permute.xlu1 %5883  ;;  %v5899_v61 = vpop.permute.xlu0 %5898 }
0x112d   : > { %v5735_v59 = vpack.c.bf16 %v5726_v23, %v5725_v55 }
0x112f   : > { %7311 = vmatprep.subr.bf16.mxu1 %v5735_v59 }
0x1130   : > { %7312 = vmatpush3.bf16.msra.mxu1 %v5735_v59  ;;  %v5894_v45 = vpop.permute.xlu1 %5893  ;;  %v5913_v5 = vpop.permute.xlu0 %5912 }
0x1131   : > { %7313 = vmatprep.subr.bf16.mxu1 %v5736_v47 }
0x1134   : > { %7314 = vmatpush3.bf16.msra.mxu1 %v5736_v47  ;;  %v5908_v24 = vpop.permute.xlu1 %5907 }
0x1137   : > { %7316 = vmatmul.mubr.msk.bf16.vlgmr.msra.gmra.mrb[40].mxu1 %vm5771_vm10, %v7652_v7 }
0x120a   : > { %v7317_v31 = vpop.f32.mrb[40].mxu1 }
0x120b   : > { %v5812_v22 = vpop.f32.mrb[41].mxu1  ;;  %v5821_v26 = vadd.f32 %v7317_v31, %v5754_v4 }
0x120c   : > { %v5813_v19 = vadd.f32 %v5812_v22, %v5744_v63  ;;  %v7318_v6 = vpop.f32.mrb[42].mxu1  ;;  %v5918_v22 = vpop.permute.xlu1 %5917 }
0x120d   : > { %v5815_v54 = vpop.f32.mrb[43].mxu1  ;;  %v5824_v12 = vadd.f32 %v7318_v6, %v5759_v29  ;;  %v5829_v9 = vadd.f32 %v5821_v26, %v9328_v51  ;;  %v5923_v26 = vpop.permute.xlu0 %5922 }
0x120e   : > { %v5827_v53 = vadd.f32 %v5813_v19, %v9324_v40  ;;  %v5816_v16 = vadd.f32 %v5815_v54, %v5749_v17 }
0x120f   : > { %v5830_v52 = vadd.f32 %v5824_v12, %v9330_v62  ;;  %v5842_v42 = vsel %vm4583_vm7, %v5829_v9, 0.0  ;;  %v7725_v12 = vld [vmem:[%s7951_s21] sm:$0xff] (!%p6597_p8)  }
0x1210   : > { %v5828_v37 = vadd.f32 %v5816_v16, %v9326_v36  ;;  %v5839_v30 = vsel %vm4583_vm7, %v5827_v53, 0.0  ;;  %v7726_v16 = vld [vmem:[%s7951_s21 + $0x8] sm:$0xff] (!%p6597_p8)  }
0x1211   : > { %v5844_v8 = vsel %vm4583_vm7, %v5830_v52, 0.0 }
0x1212   : > { %v5840_v60 = vsel %vm4583_vm7, %v5828_v37, 0.0 }
0x1213   : > { %v5841_v39 = vadd.f32 %v5840_v60, %v5839_v30 }
0x1215   : > { %v5843_v15 = vadd.f32 %v5842_v42, %v5841_v39 }
0x1217   : > { %v5845_v41 = vadd.f32 %v5844_v8, %v5843_v15  ;;  %v6598_v8 = vld [vmem:[%s7956_s17] ss:$0 sm:$0xff] (!%p6597_p8) }
0x1219   : > { %v5846_v40 = vrot.slane %v5845_v41, 4 }
0x121b   : > { %v5847_v43 = vadd.f32 %v5846_v40, %v5845_v41 }
0x121d   : > { %v5848_v20 = vrot.slane %v5847_v43, 2 }
0x121f   : > { %v5849_v1 = vadd.f32 %v5848_v20, %v5847_v43 }
0x1221   : > { %v5850_v51 = vrot.slane %v5849_v1, 1 }
0x1223   : > { %v5851_v27 = vadd.f32 %v5850_v51, %v5849_v1 }
0x1225   : > { %v5852_v36 = vmul.f32 0.03125, %v5851_v27 }
0x1227   : > { %v5853_v56 = vsub.f32 %v5827_v53, %v5852_v36  ;;  %v5854_v38 = vsub.f32 %v5828_v37, %v5852_v36  ;;  %v5855_v46 = vsub.f32 %v5829_v9, %v5852_v36  ;;  %v5856_v62 = vsub.f32 %v5830_v52, %v5852_v36 }
0x1228   : > { %v7806_v53 = vmov (!%p6597_p8), 0.0  }
0x1229   : > { %v5857_v58 = vmul.f32 %v5853_v56, %v5853_v56  ;;  %v5858_v33 = vmul.f32 %v5854_v38, %v5854_v38  ;;  %v5859_v14 = vmul.f32 %v5855_v46, %v5855_v46  ;;  %v5860_v18 = vmul.f32 %v5856_v62, %v5856_v62  ;;  %7319 = vmatprep.subr.bf16.mxu0 (!%p6597_p8), %v7806_v53 }
0x122a   : > { %7427 = vmatprep.subr.bf16.mxu1 (!%p6597_p8), %v7806_v53  ;;  %7320 = vmatpush3.bf16.msra.mxu0 (!%p6597_p8), %v7725_v12 }
0x122b   : > { %v5861_v2 = vsel %vm4583_vm7, %v5857_v58, 0.0  ;;  %v5862_v34 = vsel %vm4583_vm7, %v5858_v33, 0.0  ;;  %v5864_v44 = vsel %vm4583_vm7, %v5859_v14, 0.0  ;;  %v5866_v49 = vsel %vm4583_vm7, %v5860_v18, 0.0  ;;  %7429 = vmatpush3.bf16.msra.mxu1 (!%p6597_p8), %v7725_v12  ;;  %7321 = vmatprep.subr.bf16.mxu0 (!%p6597_p8), %v7806_v53 }
0x122c   : > { %v5863_v10 = vadd.f32 %v5862_v34, %v5861_v2  ;;  %7428 = vmatprep.subr.bf16.mxu1 (!%p6597_p8), %v7806_v53  ;;  %7323 = vmatprep.mubr.msk.bf16.mxu0 (!%p6597_p8), %vm7807_vm11, %v7806_v53 }
0x122d   : > { %7327 = vmatprep.mubr.msk.bf16.mxu1 (!%p6597_p8), %vm7807_vm11, %v7806_v53 }
0x122e   : > { %v5865_v25 = vadd.f32 %v5864_v44, %v5863_v10  ;;  %7322 = vmatpush3.bf16.msra.mxu0 (!%p6597_p8), %v7726_v16 }
0x122f   : > { %7430 = vmatpush3.bf16.msra.mxu1 (!%p6597_p8), %v7726_v16 }
0x1230   : > { %v5867_v48 = vadd.f32 %v5866_v49, %v5865_v25 }
0x1232   : > { %v5868_v28 = vrot.slane %v5867_v48, 4 }
0x1234   : > { %v5869_v35 = vadd.f32 %v5868_v28, %v5867_v48 }
0x1236   : > { %v5870_v0 = vrot.slane %v5869_v35, 2 }
0x1238   : > { %v5871_v11 = vadd.f32 %v5870_v0, %v5869_v35 }
0x123a   : > { %v5872_v13 = vrot.slane %v5871_v11, 1 }
0x123c   : > { %v5873_v32 = vadd.f32 %v5872_v13, %v5871_v11 }
0x123e   : > { %v5874_v50 = vmul.f32 0.03125, %v5873_v32 }
0x1240   : > { %v5875_v21 = vadd.f32 1e-05, %v5874_v50 }
0x1242   : > { %7719 = vrsqrt.f32 %v5875_v21 }
0x124c   : > { %v7720_v55 = vpop.eup %7719 }
0x124d   : > { %v5877_v23 = vmul.f32 %v7720_v55, %v5853_v56  ;;  %v5878_v47 = vmul.f32 %v7720_v55, %v5854_v38  ;;  %v5879_v59 = vmul.f32 %v7720_v55, %v5855_v46  ;;  %v5880_v7 = vmul.f32 %v7720_v55, %v5856_v62 }
0x124e   : > { %5936 = sbr.rel (%p6597_p8) target bundleno = 5057 (0x13c1), region = 144 }
0x124f   : > { %v5901_v63 = vmul.f32 %v5884_v57, %v5877_v23  ;;  %v5902_v17 = vmul.f32 %v5889_v3, %v5878_v47  ;;  %v5903_v31 = vmul.f32 %v5894_v45, %v5879_v59  ;;  %v5904_v4 = vmul.f32 %v5899_v61, %v5880_v7 }
0x1251   : > { %v5925_v19 = vadd.f32 %v5908_v24, %v5901_v63  ;;  %v5926_v6 = vadd.f32 %v5913_v5, %v5902_v17  ;;  %v5927_v29 = vadd.f32 %v5918_v22, %v5903_v31  ;;  %v5928_v54 = vadd.f32 %v5923_v26, %v5904_v4 }
0x1253   : > { %5929 = vst.msk [vmem:[#allocation2] sm:$0xff] %vm4583_vm7, %v5925_v19  ;;  %5930 = vst.msk [vmem:[#allocation2 + $0x8] sm:$0xff] %vm4583_vm7, %v5926_v6  ;;  %5937 = vxpose.xlu0.b32.start [1/4] (short) (narrow) (!%p6597_p8), %v5925_v19, 40 }
0x1254   : > { %5931 = vst.msk [vmem:[#allocation2 + $0x10] sm:$0xff] %vm4583_vm7, %v5927_v29  ;;  %5932 = vst.msk [vmem:[#allocation2 + $0x18] sm:$0xff] %vm4583_vm7, %v5928_v54 }
0x1257   : > { %5938 = vxpose.xlu0.b32.cont [2/4] (short) (narrow) %v5926_v6, 40 }
0x125b   : > { %5939 = vxpose.xlu0.b32.cont [3/4] (short) (narrow) %v5927_v29, 40 }
0x125f   : > { %5940 = vxpose.xlu0.b32.end [4/4] (short) (narrow) %v5928_v54, 40 }
0x12d3   : > { %v5953_v9 = vpop.trf.xlu0 }
0x12d4   : > { %5969 = vst.msk [vmem:[%s8071_s18] sm:$0xff] %vm4352_vm3, %v5953_v9 }
0x12d7   : > { %v5954_v37 = vpop.trf.xlu0 }
0x12d8   : > { %5970 = vst.msk [vmem:[%s8071_s18 + $0x8] sm:$0xff] %vm4352_vm3, %v5954_v37  ;;  %v5975_v30 = vpack.c.bf16 %v5954_v37, %v5953_v9 }
0x12da   : > { %7324 = vmatmul.mubr.msk.bf16.vlgmr.msra.gmra.mrb[0].mxu0 %vm4352_vm3, %v5975_v30 }
0x12db   : > { %v5955_v52 = vpop.trf.xlu0 }
0x12dc   : > { %5971 = vst.msk [vmem:[%s8071_s18 + $0x10] sm:$0xff] %vm4352_vm3, %v5955_v52 }
0x12df   : > { %v5956_v60 = vpop.trf.xlu0 }
0x12e0   : > { %5972 = vst.msk [vmem:[%s8071_s18 + $0x18] sm:$0xff] %vm4352_vm3, %v5956_v60  ;;  %v5976_v39 = vpack.c.bf16 %v5956_v60, %v5955_v52 }
0x12e2   : > { %7328 = vmatmul.mubr.msk.bf16.vlgmr.msra.gmra.mrb[0].mxu1 %vm4352_vm3, %v5976_v39 }
0x12e3   : > { %v5957_v42 = vpop.trf.xlu0  ;;  %7331 = vmatprep.mubr.msk.bf16.mxu1 %vm7807_vm11, %v7806_v53 }
0x12e4   : > { %5974 = vst.msk [vmem:[%s8071_s18 + $0x20] sm:$0x7f] %vm5973_vm12, %v5957_v42  ;;  %v5977_v15 = vpack.c.bf16 %v5957_v42, %v5957_v42 }
0x12ea   : > { %7332 = vmatmul.mubr.msk.bf16.gmra.mrb[4].mxu1 %vm4352_vm3, %v5977_v15 }
0x13ad   : > { %v6044_v41 = vpop.f32.mrb[0].mxu0 }
0x13ae   : > { %v6045_v40 = vadd.f32 %v6598_v8, %v6044_v41  ;;  %v7325_v43 = vpop.f32.mrb[1].mxu0 }
0x13af   : > { %v6047_v20 = vpop.f32.mrb[2].mxu0 }
0x13b0   : > { %6066 = vst [vmem:[%s8075_s23] sm:$0xff] %v6045_v40  ;;  %v6048_v1 = vadd.f32 %v6598_v8, %v6047_v20  ;;  %v7326_v51 = vpop.f32.mrb[3].mxu0 }
0x13b2   : > { %6067 = vst [vmem:[%s8075_s23 + $0x8] sm:$0xff] %v6048_v1 }
0x13b5   : > { %v6052_v27 = vpop.f32.mrb[0].mxu1 }
0x13b6   : > { %v6053_v36 = vadd.f32 %v6598_v8, %v6052_v27  ;;  %v7329_v56 = vpop.f32.mrb[1].mxu1 }
0x13b7   : > { %v6055_v38 = vpop.f32.mrb[2].mxu1 }
0x13b8   : > { %6068 = vst [vmem:[%s8075_s23 + $0x10] sm:$0xff] %v6053_v36  ;;  %v6056_v46 = vadd.f32 %v6598_v8, %v6055_v38  ;;  %v7330_v62 = vpop.f32.mrb[3].mxu1 }
0x13ba   : > { %6069 = vst [vmem:[%s8075_s23 + $0x18] sm:$0xff] %v6056_v46 }
0x13bd   : > { %v6060_v58 = vpop.f32.mrb[4].mxu1 }
0x13be   : > { %v6061_v33 = vadd.f32 %v6598_v8, %v6060_v58  ;;  %v7333_v14 = vpop.f32.mrb[5].mxu1 }
0x13bf   : > { %v6063_v18 = vpop.f32.mrb[6].mxu1 }
0x13c0   : > { %6070 = vst [vmem:[%s8075_s23 + $0x20] sm:$0x7f] %v6061_v33  ;;  %v7334_v2 = vpop.f32.mrb[7].mxu1 }
0x13c1 PF: > { %s9516_s9 = sld [smem:[#allocation27_spill]]  ;;  %s9517_s15 = sld [smem:[#allocation25_spill]] }
0x13c2   : > { %s9518_s16 = sld [smem:[#allocation26_spill]]  ;;  %s9519_s18 = sld [smem:[#allocation28_spill]] }
0x13c3   : > { %s9520_s22 = sld [smem:[#allocation29_spill]] }
0x13c7   : > { %s72_s23 = sadd.s32 1, %s9516_s9  }
0x13c8   : > { %p69_p9 = scmp.ge.s32.totalorder %s72_s23, 6  }
0x13ca   :  { %71 = sbr.rel (!%p69_p9) target bundleno = 54 (0x36), region = 268 }

</bundles_post_ra>
